<compile_context>
chip_gen: v5e
topology: v5e:2x2
jax: 0.10.0
libtpu: 0.0.40
codegen_flags: <defaults>
</compile_context>

<pallas_src>
import functools

import jax
import jax.numpy as jnp
from jax.experimental import pallas as pl
from jax.experimental.pallas import tpu as pltpu

# ----- constants from PhysORD.__init__ -----
XDIM, RDIM = 3, 9
POSEDIM = XDIM + RDIM            # 12
TWISTDIM = 6
UDIM = 3
STATEDIM = POSEDIM + TWISTDIM + 4 + 4 + UDIM   # 29
SPAD = 32                        # state rows padded to a sublane-friendly 32
H = 0.1                          # time_step
C = 0.5
ALPHA = 0.5
CIRC = 2.0                       # circumference
M_DIAG = (900.0, 900.0, 900.0)   # FixedMass eps (diagonal mass matrix)
J_DIAG = (400.0, 400.0, 1000.0)  # FixedInertia eps (diagonal inertia matrix)
IMPLICIT_STEPS = 3
TILE_B = 128                     # lanes per batch tile (keep modest: ~80 live
                                 # (1,bs) temporaries; also v7x has 64 MiB VMEM)


# ----------------- small 3x3 helpers (component lists of (1, bs) arrays) ----
def _hat(v):
    z = jnp.zeros_like(v[0])
    return [[z, -v[2], v[1]],
            [v[2], z, -v[0]],
            [-v[1], v[0], z]]


def _matmul3(A, B):
    return [[A[i][0] * B[0][j] + A[i][1] * B[1][j] + A[i][2] * B[2][j]
             for j in range(3)] for i in range(3)]


def _matTmat(A, B):   # A^T @ B
    return [[A[0][i] * B[0][j] + A[1][i] * B[1][j] + A[2][i] * B[2][j]
             for j in range(3)] for i in range(3)]


def _mat_sub(A, B):
    return [[A[i][j] - B[i][j] for j in range(3)] for i in range(3)]


def _inv3(m):
    # closed-form 3x3 inverse (adjugate / det), componentwise over the batch
    c00 = m[1][1] * m[2][2] - m[1][2] * m[2][1]
    c01 = m[1][2] * m[2][0] - m[1][0] * m[2][2]
    c02 = m[1][0] * m[2][1] - m[1][1] * m[2][0]
    det = m[0][0] * c00 + m[0][1] * c01 + m[0][2] * c02
    inv_det = 1.0 / det
    c10 = m[0][2] * m[2][1] - m[0][1] * m[2][2]
    c11 = m[0][0] * m[2][2] - m[0][2] * m[2][0]
    c12 = m[0][1] * m[2][0] - m[0][0] * m[2][1]
    c20 = m[0][1] * m[1][2] - m[0][2] * m[1][1]
    c21 = m[0][2] * m[1][0] - m[0][0] * m[1][2]
    c22 = m[0][0] * m[1][1] - m[0][1] * m[1][0]
    return [[c00 * inv_det, c10 * inv_det, c20 * inv_det],
            [c01 * inv_det, c11 * inv_det, c21 * inv_det],
            [c02 * inv_det, c12 * inv_det, c22 * inv_det]]


def _mlp3(x, w1, b1, w2, b2, w3):
    # HNN-style MLP: W3 @ tanh(W2 @ tanh(W1 @ x + b1) + b2) ; x is (in, bs)
    h1 = jnp.tanh(jnp.dot(w1, x, preferred_element_type=jnp.float32) + b1)
    h2 = jnp.tanh(jnp.dot(w2, h1, preferred_element_type=jnp.float32) + b2)
    return jnp.dot(w3, h2, preferred_element_type=jnp.float32)


def _diag_col(vals):
    # (n,1) f32 column constant built from iota+where (Mosaic-friendly).
    n = len(vals)
    idx = jax.lax.broadcasted_iota(jnp.int32, (n, 1), 0)
    col = jnp.full((n, 1), float(vals[-1]), jnp.float32)
    for k in range(n - 1):
        col = jnp.where(idx == k, jnp.float32(vals[k]), col)
    return col


# ----------------------------- the rollout kernel ---------------------------
def rollout_kernel(x0_ref, ctrl_ref,
                   wd1_ref, bd1_ref, wd2_ref, bd2_ref, wd3_ref,
                   wf1_ref, bf1_ref, wf2_ref, bf2_ref, wf3_ref,
                   out_ref, carry_ref):
    s = pl.program_id(1)

    # initialize the carried state at the first rollout step of this batch tile
    @pl.when(s == 0)
    def _():
        carry_ref[...] = x0_ref[...]

    x = carry_ref[...]                                   # (SPAD, bs)

    # packed slabs
    qx = x[0:3, :]                                       # (3, bs)
    vk = x[12:15, :]                                     # (3, bs)
    om = x[15:18, :]                                     # (3, bs)
    # rows for the 3x3 rotation algebra
    R = [[x[3 + 3 * i + j:4 + 3 * i + j, :] for j in range(3)] for i in range(3)]

    J_col = _diag_col(J_DIAG)
    M_col = _diag_col(M_DIAG)
    Jinv_col = _diag_col([1.0 / j for j in J_DIAG])
    Minv_col = _diag_col([1.0 / m for m in M_DIAG])

    # ---------- external force network ----------
    v_sum = jnp.sqrt(vk[0:1, :] ** 2 + vk[1:2, :] ** 2 + vk[2:3, :] ** 2)   # (1, bs)
    v_rpm = x[22:26, :] * (CIRC / 60.0)                                     # (4, bs)
    v_gap = v_sum - v_rpm                                                   # (4, bs)
    f_in = jnp.concatenate([x[12:18, :], x[26:29, :], v_gap], axis=0)       # (13, bs)
    forces = _mlp3(f_in, wf1_ref[...], bf1_ref[...],
                   wf2_ref[...], bf2_ref[...], wf3_ref[...])                # (6, bs)
    f_minus = (C * H) * forces                                              # (6, bs)
    f_plus = ((1.0 - C) * H) * forces                                       # (6, bs)
    fR_m, fx_m = f_minus[0:3, :], f_minus[3:6, :]
    fR_p, fx_p = f_plus[0:3, :], f_plus[3:6, :]
    fRm_r = [fR_m[i:i + 1, :] for i in range(3)]
    fxm_r = [fx_m[i:i + 1, :] for i in range(3)]
    fxp_r = [fx_p[i:i + 1, :] for i in range(3)]

    # momenta (packed)
    pR = J_col * om                                                         # (3, bs)
    px = M_col * vk                                                         # (3, bs)
    pR_r = [pR[i:i + 1, :] for i in range(3)]

    # ---------- potential gradient at qk ----------
    dV = _mlp3(x[0:12, :], wd1_ref[...], bd1_ref[...],
               wd2_ref[...], bd2_ref[...], wd3_ref[...])                    # (12, bs)
    dVx = dV[0:3, :]
    dVR = [[dV[3 + 3 * i + j:4 + 3 * i + j, :] for j in range(3)] for i in range(3)]

    SM = _mat_sub(_matTmat(dVR, R), _matTmat(R, dVR))
    Mk = [SM[2][1], SM[0][2], SM[1][0]]

    # ---------- implicit Newton solve ----------
    a = [H * pR_r[i] + (1.0 - ALPHA) * H * H * Mk[i] + H * fRm_r[i] for i in range(3)]
    v = [jnp.zeros_like(a[0]) for _ in range(3)]
    for _ in range(IMPLICIT_STEPS):
        aTv = a[0] * v[0] + a[1] * v[1] + a[2] * v[2]
        cr = [a[1] * v[2] - a[2] * v[1],
              a[2] * v[0] - a[0] * v[2],
              a[0] * v[1] - a[1] * v[0]]
        phi = [a[i] + cr[i] + v[i] * aTv - 2.0 * J_DIAG[i] * v[i] for i in range(3)]
        hat_a = _hat(a)
        dphi = []
        for i in range(3):
            drow = []
            for j in range(3):
                val = hat_a[i][j] + v[i] * a[j]
                if i == j:
                    val = val + aTv - 2.0 * J_DIAG[i]
                drow.append(val)
            dphi.append(drow)
        inv = _inv3(dphi)
        dv = [inv[i][0] * phi[0] + inv[i][1] * phi[1] + inv[i][2] * phi[2]
              for i in range(3)]
        v = [v[i] - dv[i] for i in range(3)]

    # ---------- Cayley-like rotation increment Fk ----------
    Sv = _hat(v)
    u2 = 1.0 + v[0] ** 2 + v[1] ** 2 + v[2] ** 2
    inv_u2 = pl.reciprocal(u2, approx=True)        # EUP slot; VALU has slack demand
    SvSv = _matmul3(Sv, Sv)
    Fk = []
    for i in range(3):
        frow = []
        for j in range(3):
            val = 2.0 * Sv[i][j] + 2.0 * SvSv[i][j]
            if i == j:
                val = val + u2
            frow.append(val * inv_u2)
        Fk.append(frow)
    R_next = _matmul3(R, Fk)

    # ---------- position update ----------
    Rfxm = jnp.concatenate(
        [R[i][0] * fxm_r[0] + R[i][1] * fxm_r[1] + R[i][2] * fxm_r[2]
         for i in range(3)], axis=0)                                        # (3, bs)
    qx_next = (qx + H * Minv_col * px + H * Minv_col * Rfxm
               - (1.0 - ALPHA) * H * H * Minv_col * dVx)                    # (3, bs)

    # assemble qk_next directly in the carried state (grouped slab stores)
    carry_ref[0:3, :] = qx_next
    for i in range(3):
        carry_ref[3 + 3 * i:6 + 3 * i, :] = jnp.concatenate(
            [R_next[i][0], R_next[i][1], R_next[i][2]], axis=0)
    qk_next = carry_ref[0:12, :]                                            # (12, bs)

    # ---------- potential gradient at qk_next ----------
    dV_n = _mlp3(qk_next, wd1_ref[...], bd1_ref[...],
                 wd2_ref[...], bd2_ref[...], wd3_ref[...])
    dVx_n = dV_n[0:3, :]
    dVR_n = [[dV_n[3 + 3 * i + j:4 + 3 * i + j, :] for j in range(3)] for i in range(3)]
    SM_n = _mat_sub(_matTmat(dVR_n, R_next), _matTmat(R_next, dVR_n))
    Mk_n = [SM_n[2][1], SM_n[0][2], SM_n[1][0]]

    # ---------- momentum updates ----------
    FkT = [[Fk[j][i] for j in range(3)] for i in range(3)]
    pR_next_rows = []
    for i in range(3):
        t1 = FkT[i][0] * pR_r[0] + FkT[i][1] * pR_r[1] + FkT[i][2] * pR_r[2]
        t2 = FkT[i][0] * Mk[0] + FkT[i][1] * Mk[1] + FkT[i][2] * Mk[2]
        t3 = FkT[i][0] * fRm_r[0] + FkT[i][1] * fRm_r[1] + FkT[i][2] * fRm_r[2]
        pR_next_rows.append(t1 + (1.0 - ALPHA) * H * t2 + ALPHA * H * Mk_n[i]
                            + t3 + fR_p[i:i + 1, :])
    pR_next = jnp.concatenate(pR_next_rows, axis=0)                         # (3, bs)

    Rnfxp = jnp.concatenate(
        [R_next[i][0] * fxp_r[0] + R_next[i][1] * fxp_r[1] + R_next[i][2] * fxp_r[2]
         for i in range(3)], axis=0)                                        # (3, bs)
    px_next = -(1.0 - ALPHA) * H * dVx - ALPHA * H * dVx_n + Rfxm + Rnfxp   # (3, bs)

    om_next = Jinv_col * pR_next                                            # (3, bs)
    vk_next = Minv_col * px_next + vk                                       # (3, bs)

    # grouped slab stores; rows 18:26 (sk, rpm) pass through untouched,
    # rows 29:32 stay zero padding.
    carry_ref[12:15, :] = vk_next
    carry_ref[15:18, :] = om_next
    # in-kernel control override:  curx[:, -3:] = traj[i + 1, :, -3:]
    carry_ref[26:29, :] = ctrl_ref[0]

    # one full, lane-dense (32, TILE_B) store per step
    out_ref[0] = carry_ref[...]


# ----------------------------- wrappers --------------------------------------
@jax.jit
def physord_forward(traj, params):
    """PhysORD.forward: traj (step_num+1, bs, 29) -> xseq (step_num+1, bs, 29)."""
    step_num = traj.shape[0] - 1
    bs = traj.shape[1]
    tile_b = TILE_B
    bs_pad = ((bs + tile_b - 1) // tile_b) * tile_b

    # one transpose + pad for the whole rollout: (S+1, 32, bs_pad)
    trajT = jnp.transpose(traj, (0, 2, 1)).astype(jnp.float32)
    trajT = jnp.pad(trajT, ((0, 0), (0, SPAD - STATEDIM), (0, 0)))
    trajT = jnp.pad(trajT, ((0, 0), (0, 0), (0, bs_pad - bs)), mode="edge")

    x0 = trajT[0]                          # (32, bs_pad)
    ctrl = trajT[1:, 26:29, :]             # (step_num, 3, bs_pad)
    nb = bs_pad // tile_b

    weight_specs = [pl.BlockSpec(p.shape, lambda b, s: (0, 0)) for p in params]

    outT = pl.pallas_call(
        rollout_kernel,
        out_shape=jax.ShapeDtypeStruct((step_num, SPAD, bs_pad), jnp.float32),
        grid=(nb, step_num),
        in_specs=[
            pl.BlockSpec((SPAD, tile_b), lambda b, s: (0, b)),        # x0 (fetched once per tile)
            pl.BlockSpec((1, 3, tile_b), lambda b, s: (s, 0, b)),     # control rows for step s+1
        ] + weight_specs,
        out_specs=pl.BlockSpec((1, SPAD, tile_b), lambda b, s: (s, 0, b)),
        scratch_shapes=[pltpu.VMEM((SPAD, tile_b), jnp.float32)],     # carried state
        compiler_params=pltpu.CompilerParams(
            dimension_semantics=("parallel", "arbitrary")),
    )(x0, ctrl, *params)

    out = jnp.transpose(outT[:, :STATEDIM, :bs], (0, 2, 1))           # (step_num, bs, 29)
    return jnp.concatenate([traj[0:1].astype(jnp.float32), out], axis=0)


def init_params(key):
    ks = jax.random.split(key, 10)

    def lin_w(k, o, i):
        bound = 1.0 / float(i) ** 0.5
        return jax.random.uniform(k, (o, i), jnp.float32, -bound, bound)

    def lin_b(k, o, i):
        bound = 1.0 / float(i) ** 0.5
        return jax.random.uniform(k, (o, 1), jnp.float32, -bound, bound)

    # dV_net = MLP(12, 10, 12)
    wd1, bd1 = lin_w(ks[0], 10, 12), lin_b(ks[1], 10, 12)
    wd2, bd2 = lin_w(ks[2], 10, 10), lin_b(ks[3], 10, 10)
    wd3 = lin_w(ks[4], 12, 10)
    # force_mlp = ForceMLP(13, 64, 6)
    wf1, bf1 = lin_w(ks[5], 64, 13), lin_b(ks[6], 64, 13)
    wf2, bf2 = lin_w(ks[7], 64, 64), lin_b(ks[8], 64, 64)
    wf3 = lin_w(ks[9], 6, 64)
    return (wd1, bd1, wd2, bd2, wd3, wf1, bf1, wf2, bf2, wf3)


if __name__ == "__main__":
    key = jax.random.PRNGKey(0)
    k_traj, k_p = jax.random.split(key)

    bs = 2
    step_num = 4
    traj = jax.random.normal(k_traj, (step_num + 1, bs, STATEDIM), jnp.float32) * 0.1
    # set the rotation block of the initial state to the identity rotation
    eye9 = jnp.tile(jnp.eye(3, dtype=jnp.float32).reshape(1, 9), (bs, 1))
    traj = traj.at[0, :, 3:12].set(eye9)

    params = init_params(k_p)

    out = physord_forward(traj, params)
    out = jax.block_until_ready(out)

    assert out.shape == (step_num + 1, bs, STATEDIM)
    assert bool(jnp.all(jnp.isfinite(out)))
    print("KERNEL_OK")
</pallas_src>

<mosaic_0001>
module attributes {stable_mosaic.version = 11 : i64} {
  func.func @rollout_kernel(%arg0: i32, %arg1: i32, %arg2: memref<32x128xf32, #tpu.memory_space<vmem>>, %arg3: memref<1x3x128xf32, #tpu.memory_space<vmem>>, %arg4: memref<10x12xf32, #tpu.memory_space<vmem>>, %arg5: memref<10x1xf32, #tpu.memory_space<vmem>>, %arg6: memref<10x10xf32, #tpu.memory_space<vmem>>, %arg7: memref<10x1xf32, #tpu.memory_space<vmem>>, %arg8: memref<12x10xf32, #tpu.memory_space<vmem>>, %arg9: memref<64x13xf32, #tpu.memory_space<vmem>>, %arg10: memref<64x1xf32, #tpu.memory_space<vmem>>, %arg11: memref<64x64xf32, #tpu.memory_space<vmem>>, %arg12: memref<64x1xf32, #tpu.memory_space<vmem>>, %arg13: memref<6x64xf32, #tpu.memory_space<vmem>>, %arg14: memref<1x32x128xf32, #tpu.memory_space<vmem>>, %arg15: memref<32x128xf32, #tpu.memory_space<vmem>>) attributes {dimension_semantics = [#tpu.dimension_semantics<parallel>, #tpu.dimension_semantics<arbitrary>], iteration_bounds = array<i64: 1, 4>, scalar_prefetch = 0 : i64, scratch_operands = 1 : i64, tpu.core_type = #tpu.core_type<tc>, window_params = [{transform_indices = @transform_0, window_bounds = array<i64: 32, 128>}, {transform_indices = @transform_1, window_bounds = array<i64: 1, 3, 128>}, {pipeline_mode = #tpu.pipeline_mode<synchronous>, transform_indices = @transform_2, window_bounds = array<i64: 10, 12>}, {pipeline_mode = #tpu.pipeline_mode<synchronous>, transform_indices = @transform_3, window_bounds = array<i64: 10, 1>}, {pipeline_mode = #tpu.pipeline_mode<synchronous>, transform_indices = @transform_4, window_bounds = array<i64: 10, 10>}, {pipeline_mode = #tpu.pipeline_mode<synchronous>, transform_indices = @transform_5, window_bounds = array<i64: 10, 1>}, {pipeline_mode = #tpu.pipeline_mode<synchronous>, transform_indices = @transform_6, window_bounds = array<i64: 12, 10>}, {pipeline_mode = #tpu.pipeline_mode<synchronous>, transform_indices = @transform_7, window_bounds = array<i64: 64, 13>}, {pipeline_mode = #tpu.pipeline_mode<synchronous>, transform_indices = @transform_8, window_bounds = array<i64: 64, 1>}, {pipeline_mode = #tpu.pipeline_mode<synchronous>, transform_indices = @transform_9, window_bounds = array<i64: 64, 64>}, {pipeline_mode = #tpu.pipeline_mode<synchronous>, transform_indices = @transform_10, window_bounds = array<i64: 64, 1>}, {pipeline_mode = #tpu.pipeline_mode<synchronous>, transform_indices = @transform_11, window_bounds = array<i64: 6, 64>}, {transform_indices = @transform_12, window_bounds = array<i64: 1, 32, 128>}]} {
    %c0_i32 = arith.constant 0 : i32
    %0 = arith.cmpi eq, %arg1, %c0_i32 : i32
    %1 = arith.extui %0 : i1 to i32
    %c0_i32_0 = arith.constant 0 : i32
    %2 = arith.cmpi ne, %1, %c0_i32_0 : i32
    scf.if %2 {
      %c0_159 = arith.constant 0 : index
      %c0_160 = arith.constant 0 : index
      %945 = vector.load %arg2[%c0_159, %c0_160] : memref<32x128xf32, #tpu.memory_space<vmem>>, vector<32x128xf32>
      %c0_161 = arith.constant 0 : index
      %c0_162 = arith.constant 0 : index
      %946 = vector.load %arg15[%c0_161, %c0_162] : memref<32x128xf32, #tpu.memory_space<vmem>>, vector<32x128xf32>
      tpu.vector_store %arg15[%c0_161, %c0_162], %945 {strides = array<i32>} : memref<32x128xf32, #tpu.memory_space<vmem>>, vector<32x128xf32>,
    } else {
    }
    %c0 = arith.constant 0 : index
    %c0_1 = arith.constant 0 : index
    %3 = vector.load %arg15[%c0, %c0_1] : memref<32x128xf32, #tpu.memory_space<vmem>>, vector<32x128xf32>
    %4 = vector.extract_strided_slice %3 {offsets = [0, 0], sizes = [3, 128], strides = [1, 1]} : vector<32x128xf32> to vector<3x128xf32>
    %5 = vector.extract_strided_slice %3 {offsets = [12, 0], sizes = [3, 128], strides = [1, 1]} : vector<32x128xf32> to vector<3x128xf32>
    %6 = vector.extract_strided_slice %3 {offsets = [15, 0], sizes = [3, 128], strides = [1, 1]} : vector<32x128xf32> to vector<3x128xf32>
    %7 = vector.extract_strided_slice %3 {offsets = [3, 0], sizes = [1, 128], strides = [1, 1]} : vector<32x128xf32> to vector<1x128xf32>
    %8 = vector.extract_strided_slice %3 {offsets = [4, 0], sizes = [1, 128], strides = [1, 1]} : vector<32x128xf32> to vector<1x128xf32>
    %9 = vector.extract_strided_slice %3 {offsets = [5, 0], sizes = [1, 128], strides = [1, 1]} : vector<32x128xf32> to vector<1x128xf32>
    %10 = vector.extract_strided_slice %3 {offsets = [6, 0], sizes = [1, 128], strides = [1, 1]} : vector<32x128xf32> to vector<1x128xf32>
    %11 = vector.extract_strided_slice %3 {offsets = [7, 0], sizes = [1, 128], strides = [1, 1]} : vector<32x128xf32> to vector<1x128xf32>
    %12 = vector.extract_strided_slice %3 {offsets = [8, 0], sizes = [1, 128], strides = [1, 1]} : vector<32x128xf32> to vector<1x128xf32>
    %13 = vector.extract_strided_slice %3 {offsets = [9, 0], sizes = [1, 128], strides = [1, 1]} : vector<32x128xf32> to vector<1x128xf32>
    %14 = vector.extract_strided_slice %3 {offsets = [10, 0], sizes = [1, 128], strides = [1, 1]} : vector<32x128xf32> to vector<1x128xf32>
    %15 = vector.extract_strided_slice %3 {offsets = [11, 0], sizes = [1, 128], strides = [1, 1]} : vector<32x128xf32> to vector<1x128xf32>
    %16 = tpu.iota {dimensions = array<i32: 0>} : vector<3x1xi32>
    %cst = arith.constant 1.000000e+03 : f32
    %17 = vector.broadcast %cst : f32 to vector<3x1xf32>
    %c0_i32_2 = arith.constant 0 : i32
    %18 = vector.broadcast %c0_i32_2 : i32 to vector<3x1xi32>
    %19 = arith.cmpi eq, %16, %18 : vector<3x1xi32>
    %cst_3 = arith.constant 4.000000e+02 : f32
    %20 = vector.broadcast %cst_3 : f32 to vector<3x1xf32>
    %21 = arith.select %19, %20, %17 : vector<3x1xi1>, vector<3x1xf32>
    %c1_i32 = arith.constant 1 : i32
    %22 = vector.broadcast %c1_i32 : i32 to vector<3x1xi32>
    %23 = arith.cmpi eq, %16, %22 : vector<3x1xi32>
    %cst_4 = arith.constant 4.000000e+02 : f32
    %24 = vector.broadcast %cst_4 : f32 to vector<3x1xf32>
    %25 = arith.select %23, %24, %21 : vector<3x1xi1>, vector<3x1xf32>
    %26 = tpu.iota {dimensions = array<i32: 0>} : vector<3x1xi32>
    %cst_5 = arith.constant 9.000000e+02 : f32
    %27 = vector.broadcast %cst_5 : f32 to vector<3x1xf32>
    %c0_i32_6 = arith.constant 0 : i32
    %28 = vector.broadcast %c0_i32_6 : i32 to vector<3x1xi32>
    %29 = arith.cmpi eq, %26, %28 : vector<3x1xi32>
    %cst_7 = arith.constant 9.000000e+02 : f32
    %30 = vector.broadcast %cst_7 : f32 to vector<3x1xf32>
    %31 = arith.select %29, %30, %27 : vector<3x1xi1>, vector<3x1xf32>
    %c1_i32_8 = arith.constant 1 : i32
    %32 = vector.broadcast %c1_i32_8 : i32 to vector<3x1xi32>
    %33 = arith.cmpi eq, %26, %32 : vector<3x1xi32>
    %cst_9 = arith.constant 9.000000e+02 : f32
    %34 = vector.broadcast %cst_9 : f32 to vector<3x1xf32>
    %35 = arith.select %33, %34, %31 : vector<3x1xi1>, vector<3x1xf32>
    %36 = tpu.iota {dimensions = array<i32: 0>} : vector<3x1xi32>
    %cst_10 = arith.constant 1.000000e-03 : f32
    %37 = vector.broadcast %cst_10 : f32 to vector<3x1xf32>
    %c0_i32_11 = arith.constant 0 : i32
    %38 = vector.broadcast %c0_i32_11 : i32 to vector<3x1xi32>
    %39 = arith.cmpi eq, %36, %38 : vector<3x1xi32>
    %cst_12 = arith.constant 2.500000e-03 : f32
    %40 = vector.broadcast %cst_12 : f32 to vector<3x1xf32>
    %41 = arith.select %39, %40, %37 : vector<3x1xi1>, vector<3x1xf32>
    %c1_i32_13 = arith.constant 1 : i32
    %42 = vector.broadcast %c1_i32_13 : i32 to vector<3x1xi32>
    %43 = arith.cmpi eq, %36, %42 : vector<3x1xi32>
    %cst_14 = arith.constant 2.500000e-03 : f32
    %44 = vector.broadcast %cst_14 : f32 to vector<3x1xf32>
    %45 = arith.select %43, %44, %41 : vector<3x1xi1>, vector<3x1xf32>
    %46 = tpu.iota {dimensions = array<i32: 0>} : vector<3x1xi32>
    %cst_15 = arith.constant 0.00111111114 : f32
    %47 = vector.broadcast %cst_15 : f32 to vector<3x1xf32>
    %c0_i32_16 = arith.constant 0 : i32
    %48 = vector.broadcast %c0_i32_16 : i32 to vector<3x1xi32>
    %49 = arith.cmpi eq, %46, %48 : vector<3x1xi32>
    %cst_17 = arith.constant 0.00111111114 : f32
    %50 = vector.broadcast %cst_17 : f32 to vector<3x1xf32>
    %51 = arith.select %49, %50, %47 : vector<3x1xi1>, vector<3x1xf32>
    %c1_i32_18 = arith.constant 1 : i32
    %52 = vector.broadcast %c1_i32_18 : i32 to vector<3x1xi32>
    %53 = arith.cmpi eq, %46, %52 : vector<3x1xi32>
    %cst_19 = arith.constant 0.00111111114 : f32
    %54 = vector.broadcast %cst_19 : f32 to vector<3x1xf32>
    %55 = arith.select %53, %54, %51 : vector<3x1xi1>, vector<3x1xf32>
    %56 = vector.extract_strided_slice %5 {offsets = [0, 0], sizes = [1, 128], strides = [1, 1]} : vector<3x128xf32> to vector<1x128xf32>
    %57 = arith.mulf %56, %56 : vector<1x128xf32>
    %58 = vector.extract_strided_slice %5 {offsets = [1, 0], sizes = [1, 128], strides = [1, 1]} : vector<3x128xf32> to vector<1x128xf32>
    %59 = arith.mulf %58, %58 : vector<1x128xf32>
    %60 = arith.addf %57, %59 : vector<1x128xf32>
    %61 = vector.extract_strided_slice %5 {offsets = [2, 0], sizes = [1, 128], strides = [1, 1]} : vector<3x128xf32> to vector<1x128xf32>
    %62 = arith.mulf %61, %61 : vector<1x128xf32>
    %63 = arith.addf %60, %62 : vector<1x128xf32>
    %64 = math.sqrt %63 : vector<1x128xf32>
    %65 = vector.extract_strided_slice %3 {offsets = [22, 0], sizes = [4, 128], strides = [1, 1]} : vector<32x128xf32> to vector<4x128xf32>
    %cst_20 = arith.constant 0.0333333351 : f32
    %66 = vector.broadcast %cst_20 : f32 to vector<4x128xf32>
    %67 = arith.mulf %65, %66 : vector<4x128xf32>
    %68 = vector.broadcast %64 : vector<1x128xf32> to vector<4x128xf32>
    %69 = arith.subf %68, %67 : vector<4x128xf32>
    %70 = vector.extract_strided_slice %3 {offsets = [12, 0], sizes = [6, 128], strides = [1, 1]} : vector<32x128xf32> to vector<6x128xf32>
    %71 = vector.extract_strided_slice %3 {offsets = [26, 0], sizes = [3, 128], strides = [1, 1]} : vector<32x128xf32> to vector<3x128xf32>
    %72 = tpu.concatenate %70, %71, %69 in 0 : vector<6x128xf32>, vector<3x128xf32>, vector<4x128xf32> -> vector<13x128xf32>
    %c0_21 = arith.constant 0 : index
    %c0_22 = arith.constant 0 : index
    %73 = vector.load %arg9[%c0_21, %c0_22] : memref<64x13xf32, #tpu.memory_space<vmem>>, vector<64x13xf32>
    %c0_23 = arith.constant 0 : index
    %c0_24 = arith.constant 0 : index
    %74 = vector.load %arg10[%c0_23, %c0_24] : memref<64x1xf32, #tpu.memory_space<vmem>>, vector<64x1xf32>
    %c0_25 = arith.constant 0 : index
    %c0_26 = arith.constant 0 : index
    %75 = vector.load %arg11[%c0_25, %c0_26] : memref<64x64xf32, #tpu.memory_space<vmem>>, vector<64x64xf32>
    %c0_27 = arith.constant 0 : index
    %c0_28 = arith.constant 0 : index
    %76 = vector.load %arg12[%c0_27, %c0_28] : memref<64x1xf32, #tpu.memory_space<vmem>>, vector<64x1xf32>
    %c0_29 = arith.constant 0 : index
    %c0_30 = arith.constant 0 : index
    %77 = vector.load %arg13[%c0_29, %c0_30] : memref<6x64xf32, #tpu.memory_space<vmem>>, vector<6x64xf32>
    %cst_31 = arith.constant dense<0.000000e+00> : vector<64x128xf32>
    %78 = tpu.matmul %73, %72, %cst_31 {dimension_numbers = #tpu.dot_dimension_numbers<[1], [0], [0], [1], [0, 0, 1, 1], [], []>} : vector<64x13xf32>, vector<13x128xf32>, vector<64x128xf32> -> vector<64x128xf32>
    %79 = vector.broadcast %74 : vector<64x1xf32> to vector<64x128xf32>
    %80 = arith.addf %78, %79 : vector<64x128xf32>
    %81 = math.tanh %80 : vector<64x128xf32>
    %cst_32 = arith.constant dense<0.000000e+00> : vector<64x128xf32>
    %82 = tpu.matmul %75, %81, %cst_32 {dimension_numbers = #tpu.dot_dimension_numbers<[1], [0], [0], [1], [0, 0, 1, 1], [], []>} : vector<64x64xf32>, vector<64x128xf32>, vector<64x128xf32> -> vector<64x128xf32>
    %83 = vector.broadcast %76 : vector<64x1xf32> to vector<64x128xf32>
    %84 = arith.addf %82, %83 : vector<64x128xf32>
    %85 = math.tanh %84 : vector<64x128xf32>
    %cst_33 = arith.constant dense<0.000000e+00> : vector<6x128xf32>
    %86 = tpu.matmul %77, %85, %cst_33 {dimension_numbers = #tpu.dot_dimension_numbers<[1], [0], [0], [1], [0, 0, 1, 1], [], []>} : vector<6x64xf32>, vector<64x128xf32>, vector<6x128xf32> -> vector<6x128xf32>
    %cst_34 = arith.constant 5.000000e-02 : f32
    %87 = vector.broadcast %cst_34 : f32 to vector<6x128xf32>
    %88 = arith.mulf %87, %86 : vector<6x128xf32>
    %cst_35 = arith.constant 5.000000e-02 : f32
    %89 = vector.broadcast %cst_35 : f32 to vector<6x128xf32>
    %90 = arith.mulf %89, %86 : vector<6x128xf32>
    %91 = vector.extract_strided_slice %88 {offsets = [0, 0], sizes = [3, 128], strides = [1, 1]} : vector<6x128xf32> to vector<3x128xf32>
    %92 = vector.extract_strided_slice %88 {offsets = [3, 0], sizes = [3, 128], strides = [1, 1]} : vector<6x128xf32> to vector<3x128xf32>
    %93 = vector.extract_strided_slice %90 {offsets = [0, 0], sizes = [3, 128], strides = [1, 1]} : vector<6x128xf32> to vector<3x128xf32>
    %94 = vector.extract_strided_slice %90 {offsets = [3, 0], sizes = [3, 128], strides = [1, 1]} : vector<6x128xf32> to vector<3x128xf32>
    %95 = vector.extract_strided_slice %91 {offsets = [0, 0], sizes = [1, 128], strides = [1, 1]} : vector<3x128xf32> to vector<1x128xf32>
    %96 = vector.extract_strided_slice %91 {offsets = [1, 0], sizes = [1, 128], strides = [1, 1]} : vector<3x128xf32> to vector<1x128xf32>
    %97 = vector.extract_strided_slice %91 {offsets = [2, 0], sizes = [1, 128], strides = [1, 1]} : vector<3x128xf32> to vector<1x128xf32>
    %98 = vector.extract_strided_slice %92 {offsets = [0, 0], sizes = [1, 128], strides = [1, 1]} : vector<3x128xf32> to vector<1x128xf32>
    %99 = vector.extract_strided_slice %92 {offsets = [1, 0], sizes = [1, 128], strides = [1, 1]} : vector<3x128xf32> to vector<1x128xf32>
    %100 = vector.extract_strided_slice %92 {offsets = [2, 0], sizes = [1, 128], strides = [1, 1]} : vector<3x128xf32> to vector<1x128xf32>
    %101 = vector.extract_strided_slice %94 {offsets = [0, 0], sizes = [1, 128], strides = [1, 1]} : vector<3x128xf32> to vector<1x128xf32>
    %102 = vector.extract_strided_slice %94 {offsets = [1, 0], sizes = [1, 128], strides = [1, 1]} : vector<3x128xf32> to vector<1x128xf32>
    %103 = vector.extract_strided_slice %94 {offsets = [2, 0], sizes = [1, 128], strides = [1, 1]} : vector<3x128xf32> to vector<1x128xf32>
    %104 = vector.broadcast %25 : vector<3x1xf32> to vector<3x128xf32>
    %105 = arith.mulf %104, %6 : vector<3x128xf32>
    %106 = vector.broadcast %35 : vector<3x1xf32> to vector<3x128xf32>
    %107 = arith.mulf %106, %5 : vector<3x128xf32>
    %108 = vector.extract_strided_slice %105 {offsets = [0, 0], sizes = [1, 128], strides = [1, 1]} : vector<3x128xf32> to vector<1x128xf32>
    %109 = vector.extract_strided_slice %105 {offsets = [1, 0], sizes = [1, 128], strides = [1, 1]} : vector<3x128xf32> to vector<1x128xf32>
    %110 = vector.extract_strided_slice %105 {offsets = [2, 0], sizes = [1, 128], strides = [1, 1]} : vector<3x128xf32> to vector<1x128xf32>
    %111 = vector.extract_strided_slice %3 {offsets = [0, 0], sizes = [12, 128], strides = [1, 1]} : vector<32x128xf32> to vector<12x128xf32>
    %c0_36 = arith.constant 0 : index
    %c0_37 = arith.constant 0 : index
    %112 = vector.load %arg4[%c0_36, %c0_37] : memref<10x12xf32, #tpu.memory_space<vmem>>, vector<10x12xf32>
    %c0_38 = arith.constant 0 : index
    %c0_39 = arith.constant 0 : index
    %113 = vector.load %arg5[%c0_38, %c0_39] : memref<10x1xf32, #tpu.memory_space<vmem>>, vector<10x1xf32>
    %c0_40 = arith.constant 0 : index
    %c0_41 = arith.constant 0 : index
    %114 = vector.load %arg6[%c0_40, %c0_41] : memref<10x10xf32, #tpu.memory_space<vmem>>, vector<10x10xf32>
    %c0_42 = arith.constant 0 : index
    %c0_43 = arith.constant 0 : index
    %115 = vector.load %arg7[%c0_42, %c0_43] : memref<10x1xf32, #tpu.memory_space<vmem>>, vector<10x1xf32>
    %c0_44 = arith.constant 0 : index
    %c0_45 = arith.constant 0 : index
    %116 = vector.load %arg8[%c0_44, %c0_45] : memref<12x10xf32, #tpu.memory_space<vmem>>, vector<12x10xf32>
    %cst_46 = arith.constant dense<0.000000e+00> : vector<10x128xf32>
    %117 = tpu.matmul %112, %111, %cst_46 {dimension_numbers = #tpu.dot_dimension_numbers<[1], [0], [0], [1], [0, 0, 1, 1], [], []>} : vector<10x12xf32>, vector<12x128xf32>, vector<10x128xf32> -> vector<10x128xf32>
    %118 = vector.broadcast %113 : vector<10x1xf32> to vector<10x128xf32>
    %119 = arith.addf %117, %118 : vector<10x128xf32>
    %120 = math.tanh %119 : vector<10x128xf32>
    %cst_47 = arith.constant dense<0.000000e+00> : vector<10x128xf32>
    %121 = tpu.matmul %114, %120, %cst_47 {dimension_numbers = #tpu.dot_dimension_numbers<[1], [0], [0], [1], [0, 0, 1, 1], [], []>} : vector<10x10xf32>, vector<10x128xf32>, vector<10x128xf32> -> vector<10x128xf32>
    %122 = vector.broadcast %115 : vector<10x1xf32> to vector<10x128xf32>
    %123 = arith.addf %121, %122 : vector<10x128xf32>
    %124 = math.tanh %123 : vector<10x128xf32>
    %cst_48 = arith.constant dense<0.000000e+00> : vector<12x128xf32>
    %125 = tpu.matmul %116, %124, %cst_48 {dimension_numbers = #tpu.dot_dimension_numbers<[1], [0], [0], [1], [0, 0, 1, 1], [], []>} : vector<12x10xf32>, vector<10x128xf32>, vector<12x128xf32> -> vector<12x128xf32>
    %126 = vector.extract_strided_slice %125 {offsets = [0, 0], sizes = [3, 128], strides = [1, 1]} : vector<12x128xf32> to vector<3x128xf32>
    %127 = vector.extract_strided_slice %125 {offsets = [3, 0], sizes = [1, 128], strides = [1, 1]} : vector<12x128xf32> to vector<1x128xf32>
    %128 = vector.extract_strided_slice %125 {offsets = [4, 0], sizes = [1, 128], strides = [1, 1]} : vector<12x128xf32> to vector<1x128xf32>
    %129 = vector.extract_strided_slice %125 {offsets = [5, 0], sizes = [1, 128], strides = [1, 1]} : vector<12x128xf32> to vector<1x128xf32>
    %130 = vector.extract_strided_slice %125 {offsets = [6, 0], sizes = [1, 128], strides = [1, 1]} : vector<12x128xf32> to vector<1x128xf32>
    %131 = vector.extract_strided_slice %125 {offsets = [7, 0], sizes = [1, 128], strides = [1, 1]} : vector<12x128xf32> to vector<1x128xf32>
    %132 = vector.extract_strided_slice %125 {offsets = [8, 0], sizes = [1, 128], strides = [1, 1]} : vector<12x128xf32> to vector<1x128xf32>
    %133 = vector.extract_strided_slice %125 {offsets = [9, 0], sizes = [1, 128], strides = [1, 1]} : vector<12x128xf32> to vector<1x128xf32>
    %134 = vector.extract_strided_slice %125 {offsets = [10, 0], sizes = [1, 128], strides = [1, 1]} : vector<12x128xf32> to vector<1x128xf32>
    %135 = vector.extract_strided_slice %125 {offsets = [11, 0], sizes = [1, 128], strides = [1, 1]} : vector<12x128xf32> to vector<1x128xf32>
    %136 = arith.mulf %127, %9 : vector<1x128xf32>
    %137 = arith.mulf %130, %12 : vector<1x128xf32>
    %138 = arith.addf %136, %137 : vector<1x128xf32>
    %139 = arith.mulf %133, %15 : vector<1x128xf32>
    %140 = arith.addf %138, %139 : vector<1x128xf32>
    %141 = arith.mulf %128, %7 : vector<1x128xf32>
    %142 = arith.mulf %131, %10 : vector<1x128xf32>
    %143 = arith.addf %141, %142 : vector<1x128xf32>
    %144 = arith.mulf %134, %13 : vector<1x128xf32>
    %145 = arith.addf %143, %144 : vector<1x128xf32>
    %146 = arith.mulf %129, %8 : vector<1x128xf32>
    %147 = arith.mulf %132, %11 : vector<1x128xf32>
    %148 = arith.addf %146, %147 : vector<1x128xf32>
    %149 = arith.mulf %135, %14 : vector<1x128xf32>
    %150 = arith.addf %148, %149 : vector<1x128xf32>
    %151 = arith.mulf %7, %129 : vector<1x128xf32>
    %152 = arith.mulf %10, %132 : vector<1x128xf32>
    %153 = arith.addf %151, %152 : vector<1x128xf32>
    %154 = arith.mulf %13, %135 : vector<1x128xf32>
    %155 = arith.addf %153, %154 : vector<1x128xf32>
    %156 = arith.mulf %8, %127 : vector<1x128xf32>
    %157 = arith.mulf %11, %130 : vector<1x128xf32>
    %158 = arith.addf %156, %157 : vector<1x128xf32>
    %159 = arith.mulf %14, %133 : vector<1x128xf32>
    %160 = arith.addf %158, %159 : vector<1x128xf32>
    %161 = arith.mulf %9, %128 : vector<1x128xf32>
    %162 = arith.mulf %12, %131 : vector<1x128xf32>
    %163 = arith.addf %161, %162 : vector<1x128xf32>
    %164 = arith.mulf %15, %134 : vector<1x128xf32>
    %165 = arith.addf %163, %164 : vector<1x128xf32>
    %166 = arith.subf %140, %155 : vector<1x128xf32>
    %167 = arith.subf %145, %160 : vector<1x128xf32>
    %168 = arith.subf %150, %165 : vector<1x128xf32>
    %cst_49 = arith.constant 1.000000e-01 : f32
    %169 = vector.broadcast %cst_49 : f32 to vector<1x128xf32>
    %170 = arith.mulf %169, %108 : vector<1x128xf32>
    %cst_50 = arith.constant 5.000000e-03 : f32
    %171 = vector.broadcast %cst_50 : f32 to vector<1x128xf32>
    %172 = arith.mulf %171, %168 : vector<1x128xf32>
    %173 = arith.addf %170, %172 : vector<1x128xf32>
    %cst_51 = arith.constant 1.000000e-01 : f32
    %174 = vector.broadcast %cst_51 : f32 to vector<1x128xf32>
    %175 = arith.mulf %174, %95 : vector<1x128xf32>
    %176 = arith.addf %173, %175 : vector<1x128xf32>
    %cst_52 = arith.constant 1.000000e-01 : f32
    %177 = vector.broadcast %cst_52 : f32 to vector<1x128xf32>
    %178 = arith.mulf %177, %109 : vector<1x128xf32>
    %cst_53 = arith.constant 5.000000e-03 : f32
    %179 = vector.broadcast %cst_53 : f32 to vector<1x128xf32>
    %180 = arith.mulf %179, %166 : vector<1x128xf32>
    %181 = arith.addf %178, %180 : vector<1x128xf32>
    %cst_54 = arith.constant 1.000000e-01 : f32
    %182 = vector.broadcast %cst_54 : f32 to vector<1x128xf32>
    %183 = arith.mulf %182, %96 : vector<1x128xf32>
    %184 = arith.addf %181, %183 : vector<1x128xf32>
    %cst_55 = arith.constant 1.000000e-01 : f32
    %185 = vector.broadcast %cst_55 : f32 to vector<1x128xf32>
    %186 = arith.mulf %185, %110 : vector<1x128xf32>
    %cst_56 = arith.constant 5.000000e-03 : f32
    %187 = vector.broadcast %cst_56 : f32 to vector<1x128xf32>
    %188 = arith.mulf %187, %167 : vector<1x128xf32>
    %189 = arith.addf %186, %188 : vector<1x128xf32>
    %cst_57 = arith.constant 1.000000e-01 : f32
    %190 = vector.broadcast %cst_57 : f32 to vector<1x128xf32>
    %191 = arith.mulf %190, %97 : vector<1x128xf32>
    %192 = arith.addf %189, %191 : vector<1x128xf32>
    %cst_58 = arith.constant 0.000000e+00 : f32
    %193 = vector.broadcast %cst_58 : f32 to vector<1x128xf32>
    %cst_59 = arith.constant 0.000000e+00 : f32
    %194 = vector.broadcast %cst_59 : f32 to vector<1x128xf32>
    %cst_60 = arith.constant 0.000000e+00 : f32
    %195 = vector.broadcast %cst_60 : f32 to vector<1x128xf32>
    %196 = arith.mulf %176, %193 : vector<1x128xf32>
    %197 = arith.mulf %184, %194 : vector<1x128xf32>
    %198 = arith.addf %196, %197 : vector<1x128xf32>
    %199 = arith.mulf %192, %195 : vector<1x128xf32>
    %200 = arith.addf %198, %199 : vector<1x128xf32>
    %201 = arith.mulf %184, %195 : vector<1x128xf32>
    %202 = arith.mulf %192, %194 : vector<1x128xf32>
    %203 = arith.subf %201, %202 : vector<1x128xf32>
    %204 = arith.mulf %192, %193 : vector<1x128xf32>
    %205 = arith.mulf %176, %195 : vector<1x128xf32>
    %206 = arith.subf %204, %205 : vector<1x128xf32>
    %207 = arith.mulf %176, %194 : vector<1x128xf32>
    %208 = arith.mulf %184, %193 : vector<1x128xf32>
    %209 = arith.subf %207, %208 : vector<1x128xf32>
    %210 = arith.addf %176, %203 : vector<1x128xf32>
    %211 = arith.mulf %193, %200 : vector<1x128xf32>
    %212 = arith.addf %210, %211 : vector<1x128xf32>
    %cst_61 = arith.constant 8.000000e+02 : f32
    %213 = vector.broadcast %cst_61 : f32 to vector<1x128xf32>
    %214 = arith.mulf %213, %193 : vector<1x128xf32>
    %215 = arith.subf %212, %214 : vector<1x128xf32>
    %216 = arith.addf %184, %206 : vector<1x128xf32>
    %217 = arith.mulf %194, %200 : vector<1x128xf32>
    %218 = arith.addf %216, %217 : vector<1x128xf32>
    %cst_62 = arith.constant 8.000000e+02 : f32
    %219 = vector.broadcast %cst_62 : f32 to vector<1x128xf32>
    %220 = arith.mulf %219, %194 : vector<1x128xf32>
    %221 = arith.subf %218, %220 : vector<1x128xf32>
    %222 = arith.addf %192, %209 : vector<1x128xf32>
    %223 = arith.mulf %195, %200 : vector<1x128xf32>
    %224 = arith.addf %222, %223 : vector<1x128xf32>
    %cst_63 = arith.constant 2.000000e+03 : f32
    %225 = vector.broadcast %cst_63 : f32 to vector<1x128xf32>
    %226 = arith.mulf %225, %195 : vector<1x128xf32>
    %227 = arith.subf %224, %226 : vector<1x128xf32>
    %cst_64 = arith.constant 0.000000e+00 : f32
    %228 = vector.broadcast %cst_64 : f32 to vector<1x128xf32>
    %cst_65 = arith.constant 0.000000e+00 : f32
    %229 = vector.broadcast %cst_65 : f32 to vector<1x128xf32>
    %230 = arith.subf %229, %192 : vector<1x128xf32>
    %cst_66 = arith.constant 0.000000e+00 : f32
    %231 = vector.broadcast %cst_66 : f32 to vector<1x128xf32>
    %232 = arith.subf %231, %176 : vector<1x128xf32>
    %cst_67 = arith.constant 0.000000e+00 : f32
    %233 = vector.broadcast %cst_67 : f32 to vector<1x128xf32>
    %234 = arith.subf %233, %184 : vector<1x128xf32>
    %235 = arith.mulf %193, %176 : vector<1x128xf32>
    %236 = arith.addf %228, %235 : vector<1x128xf32>
    %237 = arith.addf %236, %200 : vector<1x128xf32>
    %cst_68 = arith.constant 8.000000e+02 : f32
    %238 = vector.broadcast %cst_68 : f32 to vector<1x128xf32>
    %239 = arith.subf %237, %238 : vector<1x128xf32>
    %240 = arith.mulf %193, %184 : vector<1x128xf32>
    %241 = arith.addf %230, %240 : vector<1x128xf32>
    %242 = arith.mulf %193, %192 : vector<1x128xf32>
    %243 = arith.addf %184, %242 : vector<1x128xf32>
    %244 = arith.mulf %194, %176 : vector<1x128xf32>
    %245 = arith.addf %192, %244 : vector<1x128xf32>
    %246 = arith.mulf %194, %184 : vector<1x128xf32>
    %247 = arith.addf %228, %246 : vector<1x128xf32>
    %248 = arith.addf %247, %200 : vector<1x128xf32>
    %cst_69 = arith.constant 8.000000e+02 : f32
    %249 = vector.broadcast %cst_69 : f32 to vector<1x128xf32>
    %250 = arith.subf %248, %249 : vector<1x128xf32>
    %251 = arith.mulf %194, %192 : vector<1x128xf32>
    %252 = arith.addf %232, %251 : vector<1x128xf32>
    %253 = arith.mulf %195, %176 : vector<1x128xf32>
    %254 = arith.addf %234, %253 : vector<1x128xf32>
    %255 = arith.mulf %195, %184 : vector<1x128xf32>
    %256 = arith.addf %176, %255 : vector<1x128xf32>
    %257 = arith.mulf %195, %192 : vector<1x128xf32>
    %258 = arith.addf %228, %257 : vector<1x128xf32>
    %259 = arith.addf %258, %200 : vector<1x128xf32>
    %cst_70 = arith.constant 2.000000e+03 : f32
    %260 = vector.broadcast %cst_70 : f32 to vector<1x128xf32>
    %261 = arith.subf %259, %260 : vector<1x128xf32>
    %262 = arith.mulf %250, %261 : vector<1x128xf32>
    %263 = arith.mulf %252, %256 : vector<1x128xf32>
    %264 = arith.subf %262, %263 : vector<1x128xf32>
    %265 = arith.mulf %252, %254 : vector<1x128xf32>
    %266 = arith.mulf %245, %261 : vector<1x128xf32>
    %267 = arith.subf %265, %266 : vector<1x128xf32>
    %268 = arith.mulf %245, %256 : vector<1x128xf32>
    %269 = arith.mulf %250, %254 : vector<1x128xf32>
    %270 = arith.subf %268, %269 : vector<1x128xf32>
    %271 = arith.mulf %239, %264 : vector<1x128xf32>
    %272 = arith.mulf %241, %267 : vector<1x128xf32>
    %273 = arith.addf %271, %272 : vector<1x128xf32>
    %274 = arith.mulf %243, %270 : vector<1x128xf32>
    %275 = arith.addf %273, %274 : vector<1x128xf32>
    %cst_71 = arith.constant 1.000000e+00 : f32
    %276 = vector.broadcast %cst_71 : f32 to vector<1x128xf32>
    %277 = arith.divf %276, %275 : vector<1x128xf32>
    %278 = arith.mulf %243, %256 : vector<1x128xf32>
    %279 = arith.mulf %241, %261 : vector<1x128xf32>
    %280 = arith.subf %278, %279 : vector<1x128xf32>
    %281 = arith.mulf %239, %261 : vector<1x128xf32>
    %282 = arith.mulf %243, %254 : vector<1x128xf32>
    %283 = arith.subf %281, %282 : vector<1x128xf32>
    %284 = arith.mulf %241, %254 : vector<1x128xf32>
    %285 = arith.mulf %239, %256 : vector<1x128xf32>
    %286 = arith.subf %284, %285 : vector<1x128xf32>
    %287 = arith.mulf %241, %252 : vector<1x128xf32>
    %288 = arith.mulf %243, %250 : vector<1x128xf32>
    %289 = arith.subf %287, %288 : vector<1x128xf32>
    %290 = arith.mulf %243, %245 : vector<1x128xf32>
    %291 = arith.mulf %239, %252 : vector<1x128xf32>
    %292 = arith.subf %290, %291 : vector<1x128xf32>
    %293 = arith.mulf %239, %250 : vector<1x128xf32>
    %294 = arith.mulf %241, %245 : vector<1x128xf32>
    %295 = arith.subf %293, %294 : vector<1x128xf32>
    %296 = arith.mulf %264, %277 : vector<1x128xf32>
    %297 = arith.mulf %280, %277 : vector<1x128xf32>
    %298 = arith.mulf %289, %277 : vector<1x128xf32>
    %299 = arith.mulf %267, %277 : vector<1x128xf32>
    %300 = arith.mulf %283, %277 : vector<1x128xf32>
    %301 = arith.mulf %292, %277 : vector<1x128xf32>
    %302 = arith.mulf %270, %277 : vector<1x128xf32>
    %303 = arith.mulf %286, %277 : vector<1x128xf32>
    %304 = arith.mulf %295, %277 : vector<1x128xf32>
    %305 = arith.mulf %296, %215 : vector<1x128xf32>
    %306 = arith.mulf %297, %221 : vector<1x128xf32>
    %307 = arith.addf %305, %306 : vector<1x128xf32>
    %308 = arith.mulf %298, %227 : vector<1x128xf32>
    %309 = arith.addf %307, %308 : vector<1x128xf32>
    %310 = arith.mulf %299, %215 : vector<1x128xf32>
    %311 = arith.mulf %300, %221 : vector<1x128xf32>
    %312 = arith.addf %310, %311 : vector<1x128xf32>
    %313 = arith.mulf %301, %227 : vector<1x128xf32>
    %314 = arith.addf %312, %313 : vector<1x128xf32>
    %315 = arith.mulf %302, %215 : vector<1x128xf32>
    %316 = arith.mulf %303, %221 : vector<1x128xf32>
    %317 = arith.addf %315, %316 : vector<1x128xf32>
    %318 = arith.mulf %304, %227 : vector<1x128xf32>
    %319 = arith.addf %317, %318 : vector<1x128xf32>
    %320 = arith.subf %193, %309 : vector<1x128xf32>
    %321 = arith.subf %194, %314 : vector<1x128xf32>
    %322 = arith.subf %195, %319 : vector<1x128xf32>
    %323 = arith.mulf %176, %320 : vector<1x128xf32>
    %324 = arith.mulf %184, %321 : vector<1x128xf32>
    %325 = arith.addf %323, %324 : vector<1x128xf32>
    %326 = arith.mulf %192, %322 : vector<1x128xf32>
    %327 = arith.addf %325, %326 : vector<1x128xf32>
    %328 = arith.mulf %184, %322 : vector<1x128xf32>
    %329 = arith.mulf %192, %321 : vector<1x128xf32>
    %330 = arith.subf %328, %329 : vector<1x128xf32>
    %331 = arith.mulf %192, %320 : vector<1x128xf32>
    %332 = arith.mulf %176, %322 : vector<1x128xf32>
    %333 = arith.subf %331, %332 : vector<1x128xf32>
    %334 = arith.mulf %176, %321 : vector<1x128xf32>
    %335 = arith.mulf %184, %320 : vector<1x128xf32>
    %336 = arith.subf %334, %335 : vector<1x128xf32>
    %337 = arith.addf %176, %330 : vector<1x128xf32>
    %338 = arith.mulf %320, %327 : vector<1x128xf32>
    %339 = arith.addf %337, %338 : vector<1x128xf32>
    %cst_72 = arith.constant 8.000000e+02 : f32
    %340 = vector.broadcast %cst_72 : f32 to vector<1x128xf32>
    %341 = arith.mulf %340, %320 : vector<1x128xf32>
    %342 = arith.subf %339, %341 : vector<1x128xf32>
    %343 = arith.addf %184, %333 : vector<1x128xf32>
    %344 = arith.mulf %321, %327 : vector<1x128xf32>
    %345 = arith.addf %343, %344 : vector<1x128xf32>
    %cst_73 = arith.constant 8.000000e+02 : f32
    %346 = vector.broadcast %cst_73 : f32 to vector<1x128xf32>
    %347 = arith.mulf %346, %321 : vector<1x128xf32>
    %348 = arith.subf %345, %347 : vector<1x128xf32>
    %349 = arith.addf %192, %336 : vector<1x128xf32>
    %350 = arith.mulf %322, %327 : vector<1x128xf32>
    %351 = arith.addf %349, %350 : vector<1x128xf32>
    %cst_74 = arith.constant 2.000000e+03 : f32
    %352 = vector.broadcast %cst_74 : f32 to vector<1x128xf32>
    %353 = arith.mulf %352, %322 : vector<1x128xf32>
    %354 = arith.subf %351, %353 : vector<1x128xf32>
    %cst_75 = arith.constant 0.000000e+00 : f32
    %355 = vector.broadcast %cst_75 : f32 to vector<1x128xf32>
    %cst_76 = arith.constant 0.000000e+00 : f32
    %356 = vector.broadcast %cst_76 : f32 to vector<1x128xf32>
    %357 = arith.subf %356, %192 : vector<1x128xf32>
    %cst_77 = arith.constant 0.000000e+00 : f32
    %358 = vector.broadcast %cst_77 : f32 to vector<1x128xf32>
    %359 = arith.subf %358, %176 : vector<1x128xf32>
    %cst_78 = arith.constant 0.000000e+00 : f32
    %360 = vector.broadcast %cst_78 : f32 to vector<1x128xf32>
    %361 = arith.subf %360, %184 : vector<1x128xf32>
    %362 = arith.mulf %320, %176 : vector<1x128xf32>
    %363 = arith.addf %355, %362 : vector<1x128xf32>
    %364 = arith.addf %363, %327 : vector<1x128xf32>
    %cst_79 = arith.constant 8.000000e+02 : f32
    %365 = vector.broadcast %cst_79 : f32 to vector<1x128xf32>
    %366 = arith.subf %364, %365 : vector<1x128xf32>
    %367 = arith.mulf %320, %184 : vector<1x128xf32>
    %368 = arith.addf %357, %367 : vector<1x128xf32>
    %369 = arith.mulf %320, %192 : vector<1x128xf32>
    %370 = arith.addf %184, %369 : vector<1x128xf32>
    %371 = arith.mulf %321, %176 : vector<1x128xf32>
    %372 = arith.addf %192, %371 : vector<1x128xf32>
    %373 = arith.mulf %321, %184 : vector<1x128xf32>
    %374 = arith.addf %355, %373 : vector<1x128xf32>
    %375 = arith.addf %374, %327 : vector<1x128xf32>
    %cst_80 = arith.constant 8.000000e+02 : f32
    %376 = vector.broadcast %cst_80 : f32 to vector<1x128xf32>
    %377 = arith.subf %375, %376 : vector<1x128xf32>
    %378 = arith.mulf %321, %192 : vector<1x128xf32>
    %379 = arith.addf %359, %378 : vector<1x128xf32>
    %380 = arith.mulf %322, %176 : vector<1x128xf32>
    %381 = arith.addf %361, %380 : vector<1x128xf32>
    %382 = arith.mulf %322, %184 : vector<1x128xf32>
    %383 = arith.addf %176, %382 : vector<1x128xf32>
    %384 = arith.mulf %322, %192 : vector<1x128xf32>
    %385 = arith.addf %355, %384 : vector<1x128xf32>
    %386 = arith.addf %385, %327 : vector<1x128xf32>
    %cst_81 = arith.constant 2.000000e+03 : f32
    %387 = vector.broadcast %cst_81 : f32 to vector<1x128xf32>
    %388 = arith.subf %386, %387 : vector<1x128xf32>
    %389 = arith.mulf %377, %388 : vector<1x128xf32>
    %390 = arith.mulf %379, %383 : vector<1x128xf32>
    %391 = arith.subf %389, %390 : vector<1x128xf32>
    %392 = arith.mulf %379, %381 : vector<1x128xf32>
    %393 = arith.mulf %372, %388 : vector<1x128xf32>
    %394 = arith.subf %392, %393 : vector<1x128xf32>
    %395 = arith.mulf %372, %383 : vector<1x128xf32>
    %396 = arith.mulf %377, %381 : vector<1x128xf32>
    %397 = arith.subf %395, %396 : vector<1x128xf32>
    %398 = arith.mulf %366, %391 : vector<1x128xf32>
    %399 = arith.mulf %368, %394 : vector<1x128xf32>
    %400 = arith.addf %398, %399 : vector<1x128xf32>
    %401 = arith.mulf %370, %397 : vector<1x128xf32>
    %402 = arith.addf %400, %401 : vector<1x128xf32>
    %cst_82 = arith.constant 1.000000e+00 : f32
    %403 = vector.broadcast %cst_82 : f32 to vector<1x128xf32>
    %404 = arith.divf %403, %402 : vector<1x128xf32>
    %405 = arith.mulf %370, %383 : vector<1x128xf32>
    %406 = arith.mulf %368, %388 : vector<1x128xf32>
    %407 = arith.subf %405, %406 : vector<1x128xf32>
    %408 = arith.mulf %366, %388 : vector<1x128xf32>
    %409 = arith.mulf %370, %381 : vector<1x128xf32>
    %410 = arith.subf %408, %409 : vector<1x128xf32>
    %411 = arith.mulf %368, %381 : vector<1x128xf32>
    %412 = arith.mulf %366, %383 : vector<1x128xf32>
    %413 = arith.subf %411, %412 : vector<1x128xf32>
    %414 = arith.mulf %368, %379 : vector<1x128xf32>
    %415 = arith.mulf %370, %377 : vector<1x128xf32>
    %416 = arith.subf %414, %415 : vector<1x128xf32>
    %417 = arith.mulf %370, %372 : vector<1x128xf32>
    %418 = arith.mulf %366, %379 : vector<1x128xf32>
    %419 = arith.subf %417, %418 : vector<1x128xf32>
    %420 = arith.mulf %366, %377 : vector<1x128xf32>
    %421 = arith.mulf %368, %372 : vector<1x128xf32>
    %422 = arith.subf %420, %421 : vector<1x128xf32>
    %423 = arith.mulf %391, %404 : vector<1x128xf32>
    %424 = arith.mulf %407, %404 : vector<1x128xf32>
    %425 = arith.mulf %416, %404 : vector<1x128xf32>
    %426 = arith.mulf %394, %404 : vector<1x128xf32>
    %427 = arith.mulf %410, %404 : vector<1x128xf32>
    %428 = arith.mulf %419, %404 : vector<1x128xf32>
    %429 = arith.mulf %397, %404 : vector<1x128xf32>
    %430 = arith.mulf %413, %404 : vector<1x128xf32>
    %431 = arith.mulf %422, %404 : vector<1x128xf32>
    %432 = arith.mulf %423, %342 : vector<1x128xf32>
    %433 = arith.mulf %424, %348 : vector<1x128xf32>
    %434 = arith.addf %432, %433 : vector<1x128xf32>
    %435 = arith.mulf %425, %354 : vector<1x128xf32>
    %436 = arith.addf %434, %435 : vector<1x128xf32>
    %437 = arith.mulf %426, %342 : vector<1x128xf32>
    %438 = arith.mulf %427, %348 : vector<1x128xf32>
    %439 = arith.addf %437, %438 : vector<1x128xf32>
    %440 = arith.mulf %428, %354 : vector<1x128xf32>
    %441 = arith.addf %439, %440 : vector<1x128xf32>
    %442 = arith.mulf %429, %342 : vector<1x128xf32>
    %443 = arith.mulf %430, %348 : vector<1x128xf32>
    %444 = arith.addf %442, %443 : vector<1x128xf32>
    %445 = arith.mulf %431, %354 : vector<1x128xf32>
    %446 = arith.addf %444, %445 : vector<1x128xf32>
    %447 = arith.subf %320, %436 : vector<1x128xf32>
    %448 = arith.subf %321, %441 : vector<1x128xf32>
    %449 = arith.subf %322, %446 : vector<1x128xf32>
    %450 = arith.mulf %176, %447 : vector<1x128xf32>
    %451 = arith.mulf %184, %448 : vector<1x128xf32>
    %452 = arith.addf %450, %451 : vector<1x128xf32>
    %453 = arith.mulf %192, %449 : vector<1x128xf32>
    %454 = arith.addf %452, %453 : vector<1x128xf32>
    %455 = arith.mulf %184, %449 : vector<1x128xf32>
    %456 = arith.mulf %192, %448 : vector<1x128xf32>
    %457 = arith.subf %455, %456 : vector<1x128xf32>
    %458 = arith.mulf %192, %447 : vector<1x128xf32>
    %459 = arith.mulf %176, %449 : vector<1x128xf32>
    %460 = arith.subf %458, %459 : vector<1x128xf32>
    %461 = arith.mulf %176, %448 : vector<1x128xf32>
    %462 = arith.mulf %184, %447 : vector<1x128xf32>
    %463 = arith.subf %461, %462 : vector<1x128xf32>
    %464 = arith.addf %176, %457 : vector<1x128xf32>
    %465 = arith.mulf %447, %454 : vector<1x128xf32>
    %466 = arith.addf %464, %465 : vector<1x128xf32>
    %cst_83 = arith.constant 8.000000e+02 : f32
    %467 = vector.broadcast %cst_83 : f32 to vector<1x128xf32>
    %468 = arith.mulf %467, %447 : vector<1x128xf32>
    %469 = arith.subf %466, %468 : vector<1x128xf32>
    %470 = arith.addf %184, %460 : vector<1x128xf32>
    %471 = arith.mulf %448, %454 : vector<1x128xf32>
    %472 = arith.addf %470, %471 : vector<1x128xf32>
    %cst_84 = arith.constant 8.000000e+02 : f32
    %473 = vector.broadcast %cst_84 : f32 to vector<1x128xf32>
    %474 = arith.mulf %473, %448 : vector<1x128xf32>
    %475 = arith.subf %472, %474 : vector<1x128xf32>
    %476 = arith.addf %192, %463 : vector<1x128xf32>
    %477 = arith.mulf %449, %454 : vector<1x128xf32>
    %478 = arith.addf %476, %477 : vector<1x128xf32>
    %cst_85 = arith.constant 2.000000e+03 : f32
    %479 = vector.broadcast %cst_85 : f32 to vector<1x128xf32>
    %480 = arith.mulf %479, %449 : vector<1x128xf32>
    %481 = arith.subf %478, %480 : vector<1x128xf32>
    %cst_86 = arith.constant 0.000000e+00 : f32
    %482 = vector.broadcast %cst_86 : f32 to vector<1x128xf32>
    %cst_87 = arith.constant 0.000000e+00 : f32
    %483 = vector.broadcast %cst_87 : f32 to vector<1x128xf32>
    %484 = arith.subf %483, %192 : vector<1x128xf32>
    %cst_88 = arith.constant 0.000000e+00 : f32
    %485 = vector.broadcast %cst_88 : f32 to vector<1x128xf32>
    %486 = arith.subf %485, %176 : vector<1x128xf32>
    %cst_89 = arith.constant 0.000000e+00 : f32
    %487 = vector.broadcast %cst_89 : f32 to vector<1x128xf32>
    %488 = arith.subf %487, %184 : vector<1x128xf32>
    %489 = arith.mulf %447, %176 : vector<1x128xf32>
    %490 = arith.addf %482, %489 : vector<1x128xf32>
    %491 = arith.addf %490, %454 : vector<1x128xf32>
    %cst_90 = arith.constant 8.000000e+02 : f32
    %492 = vector.broadcast %cst_90 : f32 to vector<1x128xf32>
    %493 = arith.subf %491, %492 : vector<1x128xf32>
    %494 = arith.mulf %447, %184 : vector<1x128xf32>
    %495 = arith.addf %484, %494 : vector<1x128xf32>
    %496 = arith.mulf %447, %192 : vector<1x128xf32>
    %497 = arith.addf %184, %496 : vector<1x128xf32>
    %498 = arith.mulf %448, %176 : vector<1x128xf32>
    %499 = arith.addf %192, %498 : vector<1x128xf32>
    %500 = arith.mulf %448, %184 : vector<1x128xf32>
    %501 = arith.addf %482, %500 : vector<1x128xf32>
    %502 = arith.addf %501, %454 : vector<1x128xf32>
    %cst_91 = arith.constant 8.000000e+02 : f32
    %503 = vector.broadcast %cst_91 : f32 to vector<1x128xf32>
    %504 = arith.subf %502, %503 : vector<1x128xf32>
    %505 = arith.mulf %448, %192 : vector<1x128xf32>
    %506 = arith.addf %486, %505 : vector<1x128xf32>
    %507 = arith.mulf %449, %176 : vector<1x128xf32>
    %508 = arith.addf %488, %507 : vector<1x128xf32>
    %509 = arith.mulf %449, %184 : vector<1x128xf32>
    %510 = arith.addf %176, %509 : vector<1x128xf32>
    %511 = arith.mulf %449, %192 : vector<1x128xf32>
    %512 = arith.addf %482, %511 : vector<1x128xf32>
    %513 = arith.addf %512, %454 : vector<1x128xf32>
    %cst_92 = arith.constant 2.000000e+03 : f32
    %514 = vector.broadcast %cst_92 : f32 to vector<1x128xf32>
    %515 = arith.subf %513, %514 : vector<1x128xf32>
    %516 = arith.mulf %504, %515 : vector<1x128xf32>
    %517 = arith.mulf %506, %510 : vector<1x128xf32>
    %518 = arith.subf %516, %517 : vector<1x128xf32>
    %519 = arith.mulf %506, %508 : vector<1x128xf32>
    %520 = arith.mulf %499, %515 : vector<1x128xf32>
    %521 = arith.subf %519, %520 : vector<1x128xf32>
    %522 = arith.mulf %499, %510 : vector<1x128xf32>
    %523 = arith.mulf %504, %508 : vector<1x128xf32>
    %524 = arith.subf %522, %523 : vector<1x128xf32>
    %525 = arith.mulf %493, %518 : vector<1x128xf32>
    %526 = arith.mulf %495, %521 : vector<1x128xf32>
    %527 = arith.addf %525, %526 : vector<1x128xf32>
    %528 = arith.mulf %497, %524 : vector<1x128xf32>
    %529 = arith.addf %527, %528 : vector<1x128xf32>
    %cst_93 = arith.constant 1.000000e+00 : f32
    %530 = vector.broadcast %cst_93 : f32 to vector<1x128xf32>
    %531 = arith.divf %530, %529 : vector<1x128xf32>
    %532 = arith.mulf %497, %510 : vector<1x128xf32>
    %533 = arith.mulf %495, %515 : vector<1x128xf32>
    %534 = arith.subf %532, %533 : vector<1x128xf32>
    %535 = arith.mulf %493, %515 : vector<1x128xf32>
    %536 = arith.mulf %497, %508 : vector<1x128xf32>
    %537 = arith.subf %535, %536 : vector<1x128xf32>
    %538 = arith.mulf %495, %508 : vector<1x128xf32>
    %539 = arith.mulf %493, %510 : vector<1x128xf32>
    %540 = arith.subf %538, %539 : vector<1x128xf32>
    %541 = arith.mulf %495, %506 : vector<1x128xf32>
    %542 = arith.mulf %497, %504 : vector<1x128xf32>
    %543 = arith.subf %541, %542 : vector<1x128xf32>
    %544 = arith.mulf %497, %499 : vector<1x128xf32>
    %545 = arith.mulf %493, %506 : vector<1x128xf32>
    %546 = arith.subf %544, %545 : vector<1x128xf32>
    %547 = arith.mulf %493, %504 : vector<1x128xf32>
    %548 = arith.mulf %495, %499 : vector<1x128xf32>
    %549 = arith.subf %547, %548 : vector<1x128xf32>
    %550 = arith.mulf %518, %531 : vector<1x128xf32>
    %551 = arith.mulf %534, %531 : vector<1x128xf32>
    %552 = arith.mulf %543, %531 : vector<1x128xf32>
    %553 = arith.mulf %521, %531 : vector<1x128xf32>
    %554 = arith.mulf %537, %531 : vector<1x128xf32>
    %555 = arith.mulf %546, %531 : vector<1x128xf32>
    %556 = arith.mulf %524, %531 : vector<1x128xf32>
    %557 = arith.mulf %540, %531 : vector<1x128xf32>
    %558 = arith.mulf %549, %531 : vector<1x128xf32>
    %559 = arith.mulf %550, %469 : vector<1x128xf32>
    %560 = arith.mulf %551, %475 : vector<1x128xf32>
    %561 = arith.addf %559, %560 : vector<1x128xf32>
    %562 = arith.mulf %552, %481 : vector<1x128xf32>
    %563 = arith.addf %561, %562 : vector<1x128xf32>
    %564 = arith.mulf %553, %469 : vector<1x128xf32>
    %565 = arith.mulf %554, %475 : vector<1x128xf32>
    %566 = arith.addf %564, %565 : vector<1x128xf32>
    %567 = arith.mulf %555, %481 : vector<1x128xf32>
    %568 = arith.addf %566, %567 : vector<1x128xf32>
    %569 = arith.mulf %556, %469 : vector<1x128xf32>
    %570 = arith.mulf %557, %475 : vector<1x128xf32>
    %571 = arith.addf %569, %570 : vector<1x128xf32>
    %572 = arith.mulf %558, %481 : vector<1x128xf32>
    %573 = arith.addf %571, %572 : vector<1x128xf32>
    %574 = arith.subf %447, %563 : vector<1x128xf32>
    %575 = arith.subf %448, %568 : vector<1x128xf32>
    %576 = arith.subf %449, %573 : vector<1x128xf32>
    %cst_94 = arith.constant 0.000000e+00 : f32
    %577 = vector.broadcast %cst_94 : f32 to vector<1x128xf32>
    %cst_95 = arith.constant 0.000000e+00 : f32
    %578 = vector.broadcast %cst_95 : f32 to vector<1x128xf32>
    %579 = arith.subf %578, %576 : vector<1x128xf32>
    %cst_96 = arith.constant 0.000000e+00 : f32
    %580 = vector.broadcast %cst_96 : f32 to vector<1x128xf32>
    %581 = arith.subf %580, %574 : vector<1x128xf32>
    %cst_97 = arith.constant 0.000000e+00 : f32
    %582 = vector.broadcast %cst_97 : f32 to vector<1x128xf32>
    %583 = arith.subf %582, %575 : vector<1x128xf32>
    %584 = arith.mulf %574, %574 : vector<1x128xf32>
    %cst_98 = arith.constant 1.000000e+00 : f32
    %585 = vector.broadcast %cst_98 : f32 to vector<1x128xf32>
    %586 = arith.addf %585, %584 : vector<1x128xf32>
    %587 = arith.mulf %575, %575 : vector<1x128xf32>
    %588 = arith.addf %586, %587 : vector<1x128xf32>
    %589 = arith.mulf %576, %576 : vector<1x128xf32>
    %590 = arith.addf %588, %589 : vector<1x128xf32>
    %591 = tpu.reciprocal %590 {approx = true} : vector<1x128xf32> -> vector<1x128xf32>
    %592 = arith.mulf %577, %577 : vector<1x128xf32>
    %593 = arith.mulf %579, %576 : vector<1x128xf32>
    %594 = arith.addf %592, %593 : vector<1x128xf32>
    %595 = arith.mulf %575, %583 : vector<1x128xf32>
    %596 = arith.addf %594, %595 : vector<1x128xf32>
    %597 = arith.mulf %577, %579 : vector<1x128xf32>
    %598 = arith.mulf %579, %577 : vector<1x128xf32>
    %599 = arith.addf %597, %598 : vector<1x128xf32>
    %600 = arith.mulf %575, %574 : vector<1x128xf32>
    %601 = arith.addf %599, %600 : vector<1x128xf32>
    %602 = arith.mulf %577, %575 : vector<1x128xf32>
    %603 = arith.mulf %579, %581 : vector<1x128xf32>
    %604 = arith.addf %602, %603 : vector<1x128xf32>
    %605 = arith.mulf %575, %577 : vector<1x128xf32>
    %606 = arith.addf %604, %605 : vector<1x128xf32>
    %607 = arith.mulf %576, %577 : vector<1x128xf32>
    %608 = arith.mulf %577, %576 : vector<1x128xf32>
    %609 = arith.addf %607, %608 : vector<1x128xf32>
    %610 = arith.mulf %581, %583 : vector<1x128xf32>
    %611 = arith.addf %609, %610 : vector<1x128xf32>
    %612 = arith.mulf %576, %579 : vector<1x128xf32>
    %613 = arith.mulf %577, %577 : vector<1x128xf32>
    %614 = arith.addf %612, %613 : vector<1x128xf32>
    %615 = arith.mulf %581, %574 : vector<1x128xf32>
    %616 = arith.addf %614, %615 : vector<1x128xf32>
    %617 = arith.mulf %576, %575 : vector<1x128xf32>
    %618 = arith.mulf %577, %581 : vector<1x128xf32>
    %619 = arith.addf %617, %618 : vector<1x128xf32>
    %620 = arith.mulf %581, %577 : vector<1x128xf32>
    %621 = arith.addf %619, %620 : vector<1x128xf32>
    %622 = arith.mulf %583, %577 : vector<1x128xf32>
    %623 = arith.mulf %574, %576 : vector<1x128xf32>
    %624 = arith.addf %622, %623 : vector<1x128xf32>
    %625 = arith.mulf %577, %583 : vector<1x128xf32>
    %626 = arith.addf %624, %625 : vector<1x128xf32>
    %627 = arith.mulf %583, %579 : vector<1x128xf32>
    %628 = arith.mulf %574, %577 : vector<1x128xf32>
    %629 = arith.addf %627, %628 : vector<1x128xf32>
    %630 = arith.mulf %577, %574 : vector<1x128xf32>
    %631 = arith.addf %629, %630 : vector<1x128xf32>
    %632 = arith.mulf %583, %575 : vector<1x128xf32>
    %633 = arith.mulf %574, %581 : vector<1x128xf32>
    %634 = arith.addf %632, %633 : vector<1x128xf32>
    %635 = arith.mulf %577, %577 : vector<1x128xf32>
    %636 = arith.addf %634, %635 : vector<1x128xf32>
    %cst_99 = arith.constant 2.000000e+00 : f32
    %637 = vector.broadcast %cst_99 : f32 to vector<1x128xf32>
    %638 = arith.mulf %637, %577 : vector<1x128xf32>
    %cst_100 = arith.constant 2.000000e+00 : f32
    %639 = vector.broadcast %cst_100 : f32 to vector<1x128xf32>
    %640 = arith.mulf %639, %596 : vector<1x128xf32>
    %641 = arith.addf %638, %640 : vector<1x128xf32>
    %642 = arith.addf %641, %590 : vector<1x128xf32>
    %643 = arith.mulf %642, %591 : vector<1x128xf32>
    %cst_101 = arith.constant 2.000000e+00 : f32
    %644 = vector.broadcast %cst_101 : f32 to vector<1x128xf32>
    %645 = arith.mulf %644, %579 : vector<1x128xf32>
    %cst_102 = arith.constant 2.000000e+00 : f32
    %646 = vector.broadcast %cst_102 : f32 to vector<1x128xf32>
    %647 = arith.mulf %646, %601 : vector<1x128xf32>
    %648 = arith.addf %645, %647 : vector<1x128xf32>
    %649 = arith.mulf %648, %591 : vector<1x128xf32>
    %cst_103 = arith.constant 2.000000e+00 : f32
    %650 = vector.broadcast %cst_103 : f32 to vector<1x128xf32>
    %651 = arith.mulf %650, %575 : vector<1x128xf32>
    %cst_104 = arith.constant 2.000000e+00 : f32
    %652 = vector.broadcast %cst_104 : f32 to vector<1x128xf32>
    %653 = arith.mulf %652, %606 : vector<1x128xf32>
    %654 = arith.addf %651, %653 : vector<1x128xf32>
    %655 = arith.mulf %654, %591 : vector<1x128xf32>
    %cst_105 = arith.constant 2.000000e+00 : f32
    %656 = vector.broadcast %cst_105 : f32 to vector<1x128xf32>
    %657 = arith.mulf %656, %576 : vector<1x128xf32>
    %cst_106 = arith.constant 2.000000e+00 : f32
    %658 = vector.broadcast %cst_106 : f32 to vector<1x128xf32>
    %659 = arith.mulf %658, %611 : vector<1x128xf32>
    %660 = arith.addf %657, %659 : vector<1x128xf32>
    %661 = arith.mulf %660, %591 : vector<1x128xf32>
    %cst_107 = arith.constant 2.000000e+00 : f32
    %662 = vector.broadcast %cst_107 : f32 to vector<1x128xf32>
    %663 = arith.mulf %662, %577 : vector<1x128xf32>
    %cst_108 = arith.constant 2.000000e+00 : f32
    %664 = vector.broadcast %cst_108 : f32 to vector<1x128xf32>
    %665 = arith.mulf %664, %616 : vector<1x128xf32>
    %666 = arith.addf %663, %665 : vector<1x128xf32>
    %667 = arith.addf %666, %590 : vector<1x128xf32>
    %668 = arith.mulf %667, %591 : vector<1x128xf32>
    %cst_109 = arith.constant 2.000000e+00 : f32
    %669 = vector.broadcast %cst_109 : f32 to vector<1x128xf32>
    %670 = arith.mulf %669, %581 : vector<1x128xf32>
    %cst_110 = arith.constant 2.000000e+00 : f32
    %671 = vector.broadcast %cst_110 : f32 to vector<1x128xf32>
    %672 = arith.mulf %671, %621 : vector<1x128xf32>
    %673 = arith.addf %670, %672 : vector<1x128xf32>
    %674 = arith.mulf %673, %591 : vector<1x128xf32>
    %cst_111 = arith.constant 2.000000e+00 : f32
    %675 = vector.broadcast %cst_111 : f32 to vector<1x128xf32>
    %676 = arith.mulf %675, %583 : vector<1x128xf32>
    %cst_112 = arith.constant 2.000000e+00 : f32
    %677 = vector.broadcast %cst_112 : f32 to vector<1x128xf32>
    %678 = arith.mulf %677, %626 : vector<1x128xf32>
    %679 = arith.addf %676, %678 : vector<1x128xf32>
    %680 = arith.mulf %679, %591 : vector<1x128xf32>
    %cst_113 = arith.constant 2.000000e+00 : f32
    %681 = vector.broadcast %cst_113 : f32 to vector<1x128xf32>
    %682 = arith.mulf %681, %574 : vector<1x128xf32>
    %cst_114 = arith.constant 2.000000e+00 : f32
    %683 = vector.broadcast %cst_114 : f32 to vector<1x128xf32>
    %684 = arith.mulf %683, %631 : vector<1x128xf32>
    %685 = arith.addf %682, %684 : vector<1x128xf32>
    %686 = arith.mulf %685, %591 : vector<1x128xf32>
    %cst_115 = arith.constant 2.000000e+00 : f32
    %687 = vector.broadcast %cst_115 : f32 to vector<1x128xf32>
    %688 = arith.mulf %687, %577 : vector<1x128xf32>
    %cst_116 = arith.constant 2.000000e+00 : f32
    %689 = vector.broadcast %cst_116 : f32 to vector<1x128xf32>
    %690 = arith.mulf %689, %636 : vector<1x128xf32>
    %691 = arith.addf %688, %690 : vector<1x128xf32>
    %692 = arith.addf %691, %590 : vector<1x128xf32>
    %693 = arith.mulf %692, %591 : vector<1x128xf32>
    %694 = arith.mulf %7, %643 : vector<1x128xf32>
    %695 = arith.mulf %8, %661 : vector<1x128xf32>
    %696 = arith.addf %694, %695 : vector<1x128xf32>
    %697 = arith.mulf %9, %680 : vector<1x128xf32>
    %698 = arith.addf %696, %697 : vector<1x128xf32>
    %699 = arith.mulf %7, %649 : vector<1x128xf32>
    %700 = arith.mulf %8, %668 : vector<1x128xf32>
    %701 = arith.addf %699, %700 : vector<1x128xf32>
    %702 = arith.mulf %9, %686 : vector<1x128xf32>
    %703 = arith.addf %701, %702 : vector<1x128xf32>
    %704 = arith.mulf %7, %655 : vector<1x128xf32>
    %705 = arith.mulf %8, %674 : vector<1x128xf32>
    %706 = arith.addf %704, %705 : vector<1x128xf32>
    %707 = arith.mulf %9, %693 : vector<1x128xf32>
    %708 = arith.addf %706, %707 : vector<1x128xf32>
    %709 = arith.mulf %10, %643 : vector<1x128xf32>
    %710 = arith.mulf %11, %661 : vector<1x128xf32>
    %711 = arith.addf %709, %710 : vector<1x128xf32>
    %712 = arith.mulf %12, %680 : vector<1x128xf32>
    %713 = arith.addf %711, %712 : vector<1x128xf32>
    %714 = arith.mulf %10, %649 : vector<1x128xf32>
    %715 = arith.mulf %11, %668 : vector<1x128xf32>
    %716 = arith.addf %714, %715 : vector<1x128xf32>
    %717 = arith.mulf %12, %686 : vector<1x128xf32>
    %718 = arith.addf %716, %717 : vector<1x128xf32>
    %719 = arith.mulf %10, %655 : vector<1x128xf32>
    %720 = arith.mulf %11, %674 : vector<1x128xf32>
    %721 = arith.addf %719, %720 : vector<1x128xf32>
    %722 = arith.mulf %12, %693 : vector<1x128xf32>
    %723 = arith.addf %721, %722 : vector<1x128xf32>
    %724 = arith.mulf %13, %643 : vector<1x128xf32>
    %725 = arith.mulf %14, %661 : vector<1x128xf32>
    %726 = arith.addf %724, %725 : vector<1x128xf32>
    %727 = arith.mulf %15, %680 : vector<1x128xf32>
    %728 = arith.addf %726, %727 : vector<1x128xf32>
    %729 = arith.mulf %13, %649 : vector<1x128xf32>
    %730 = arith.mulf %14, %668 : vector<1x128xf32>
    %731 = arith.addf %729, %730 : vector<1x128xf32>
    %732 = arith.mulf %15, %686 : vector<1x128xf32>
    %733 = arith.addf %731, %732 : vector<1x128xf32>
    %734 = arith.mulf %13, %655 : vector<1x128xf32>
    %735 = arith.mulf %14, %674 : vector<1x128xf32>
    %736 = arith.addf %734, %735 : vector<1x128xf32>
    %737 = arith.mulf %15, %693 : vector<1x128xf32>
    %738 = arith.addf %736, %737 : vector<1x128xf32>
    %739 = arith.mulf %7, %98 : vector<1x128xf32>
    %740 = arith.mulf %8, %99 : vector<1x128xf32>
    %741 = arith.addf %739, %740 : vector<1x128xf32>
    %742 = arith.mulf %9, %100 : vector<1x128xf32>
    %743 = arith.addf %741, %742 : vector<1x128xf32>
    %744 = arith.mulf %10, %98 : vector<1x128xf32>
    %745 = arith.mulf %11, %99 : vector<1x128xf32>
    %746 = arith.addf %744, %745 : vector<1x128xf32>
    %747 = arith.mulf %12, %100 : vector<1x128xf32>
    %748 = arith.addf %746, %747 : vector<1x128xf32>
    %749 = arith.mulf %13, %98 : vector<1x128xf32>
    %750 = arith.mulf %14, %99 : vector<1x128xf32>
    %751 = arith.addf %749, %750 : vector<1x128xf32>
    %752 = arith.mulf %15, %100 : vector<1x128xf32>
    %753 = arith.addf %751, %752 : vector<1x128xf32>
    %754 = tpu.concatenate %743, %748, %753 in 0 : vector<1x128xf32>, vector<1x128xf32>, vector<1x128xf32> -> vector<3x128xf32>
    %cst_117 = arith.constant 1.000000e-01 : f32
    %755 = vector.broadcast %cst_117 : f32 to vector<3x1xf32>
    %756 = arith.mulf %755, %55 : vector<3x1xf32>
    %757 = vector.broadcast %756 : vector<3x1xf32> to vector<3x128xf32>
    %758 = arith.mulf %757, %107 : vector<3x128xf32>
    %759 = arith.addf %4, %758 : vector<3x128xf32>
    %cst_118 = arith.constant 1.000000e-01 : f32
    %760 = vector.broadcast %cst_118 : f32 to vector<3x1xf32>
    %761 = arith.mulf %760, %55 : vector<3x1xf32>
    %762 = vector.broadcast %761 : vector<3x1xf32> to vector<3x128xf32>
    %763 = arith.mulf %762, %754 : vector<3x128xf32>
    %764 = arith.addf %759, %763 : vector<3x128xf32>
    %cst_119 = arith.constant 5.000000e-03 : f32
    %765 = vector.broadcast %cst_119 : f32 to vector<3x1xf32>
    %766 = arith.mulf %765, %55 : vector<3x1xf32>
    %767 = vector.broadcast %766 : vector<3x1xf32> to vector<3x128xf32>
    %768 = arith.mulf %767, %126 : vector<3x128xf32>
    %769 = arith.subf %764, %768 : vector<3x128xf32>
    %c0_120 = arith.constant 0 : index
    %c0_121 = arith.constant 0 : index
    %770 = vector.load %arg15[%c0_120, %c0_121] : memref<32x128xf32, #tpu.memory_space<vmem>>, vector<3x128xf32>
    tpu.vector_store %arg15[%c0_120, %c0_121], %769 {strides = array<i32>} : memref<32x128xf32, #tpu.memory_space<vmem>>, vector<3x128xf32>,
    %771 = tpu.concatenate %698, %703, %708 in 0 : vector<1x128xf32>, vector<1x128xf32>, vector<1x128xf32> -> vector<3x128xf32>
    %c3 = arith.constant 3 : index
    %c0_122 = arith.constant 0 : index
    %772 = vector.load %arg15[%c3, %c0_122] : memref<32x128xf32, #tpu.memory_space<vmem>>, vector<3x128xf32>
    tpu.vector_store %arg15[%c3, %c0_122], %771 {strides = array<i32>} : memref<32x128xf32, #tpu.memory_space<vmem>>, vector<3x128xf32>,
    %773 = tpu.concatenate %713, %718, %723 in 0 : vector<1x128xf32>, vector<1x128xf32>, vector<1x128xf32> -> vector<3x128xf32>
    %c6 = arith.constant 6 : index
    %c0_123 = arith.constant 0 : index
    %774 = vector.load %arg15[%c6, %c0_123] : memref<32x128xf32, #tpu.memory_space<vmem>>, vector<3x128xf32>
    tpu.vector_store %arg15[%c6, %c0_123], %773 {strides = array<i32>} : memref<32x128xf32, #tpu.memory_space<vmem>>, vector<3x128xf32>,
    %775 = tpu.concatenate %728, %733, %738 in 0 : vector<1x128xf32>, vector<1x128xf32>, vector<1x128xf32> -> vector<3x128xf32>
    %c9 = arith.constant 9 : index
    %c0_124 = arith.constant 0 : index
    %776 = vector.load %arg15[%c9, %c0_124] : memref<32x128xf32, #tpu.memory_space<vmem>>, vector<3x128xf32>
    tpu.vector_store %arg15[%c9, %c0_124], %775 {strides = array<i32>} : memref<32x128xf32, #tpu.memory_space<vmem>>, vector<3x128xf32>,
    %c0_125 = arith.constant 0 : index
    %c0_126 = arith.constant 0 : index
    %777 = vector.load %arg15[%c0_125, %c0_126] : memref<32x128xf32, #tpu.memory_space<vmem>>, vector<12x128xf32>
    %c0_127 = arith.constant 0 : index
    %c0_128 = arith.constant 0 : index
    %778 = vector.load %arg4[%c0_127, %c0_128] : memref<10x12xf32, #tpu.memory_space<vmem>>, vector<10x12xf32>
    %c0_129 = arith.constant 0 : index
    %c0_130 = arith.constant 0 : index
    %779 = vector.load %arg5[%c0_129, %c0_130] : memref<10x1xf32, #tpu.memory_space<vmem>>, vector<10x1xf32>
    %c0_131 = arith.constant 0 : index
    %c0_132 = arith.constant 0 : index
    %780 = vector.load %arg6[%c0_131, %c0_132] : memref<10x10xf32, #tpu.memory_space<vmem>>, vector<10x10xf32>
    %c0_133 = arith.constant 0 : index
    %c0_134 = arith.constant 0 : index
    %781 = vector.load %arg7[%c0_133, %c0_134] : memref<10x1xf32, #tpu.memory_space<vmem>>, vector<10x1xf32>
    %c0_135 = arith.constant 0 : index
    %c0_136 = arith.constant 0 : index
    %782 = vector.load %arg8[%c0_135, %c0_136] : memref<12x10xf32, #tpu.memory_space<vmem>>, vector<12x10xf32>
    %cst_137 = arith.constant dense<0.000000e+00> : vector<10x128xf32>
    %783 = tpu.matmul %778, %777, %cst_137 {dimension_numbers = #tpu.dot_dimension_numbers<[1], [0], [0], [1], [0, 0, 1, 1], [], []>} : vector<10x12xf32>, vector<12x128xf32>, vector<10x128xf32> -> vector<10x128xf32>
    %784 = vector.broadcast %779 : vector<10x1xf32> to vector<10x128xf32>
    %785 = arith.addf %783, %784 : vector<10x128xf32>
    %786 = math.tanh %785 : vector<10x128xf32>
    %cst_138 = arith.constant dense<0.000000e+00> : vector<10x128xf32>
    %787 = tpu.matmul %780, %786, %cst_138 {dimension_numbers = #tpu.dot_dimension_numbers<[1], [0], [0], [1], [0, 0, 1, 1], [], []>} : vector<10x10xf32>, vector<10x128xf32>, vector<10x128xf32> -> vector<10x128xf32>
    %788 = vector.broadcast %781 : vector<10x1xf32> to vector<10x128xf32>
    %789 = arith.addf %787, %788 : vector<10x128xf32>
    %790 = math.tanh %789 : vector<10x128xf32>
    %cst_139 = arith.constant dense<0.000000e+00> : vector<12x128xf32>
    %791 = tpu.matmul %782, %790, %cst_139 {dimension_numbers = #tpu.dot_dimension_numbers<[1], [0], [0], [1], [0, 0, 1, 1], [], []>} : vector<12x10xf32>, vector<10x128xf32>, vector<12x128xf32> -> vector<12x128xf32>
    %792 = vector.extract_strided_slice %791 {offsets = [0, 0], sizes = [3, 128], strides = [1, 1]} : vector<12x128xf32> to vector<3x128xf32>
    %793 = vector.extract_strided_slice %791 {offsets = [3, 0], sizes = [1, 128], strides = [1, 1]} : vector<12x128xf32> to vector<1x128xf32>
    %794 = vector.extract_strided_slice %791 {offsets = [4, 0], sizes = [1, 128], strides = [1, 1]} : vector<12x128xf32> to vector<1x128xf32>
    %795 = vector.extract_strided_slice %791 {offsets = [5, 0], sizes = [1, 128], strides = [1, 1]} : vector<12x128xf32> to vector<1x128xf32>
    %796 = vector.extract_strided_slice %791 {offsets = [6, 0], sizes = [1, 128], strides = [1, 1]} : vector<12x128xf32> to vector<1x128xf32>
    %797 = vector.extract_strided_slice %791 {offsets = [7, 0], sizes = [1, 128], strides = [1, 1]} : vector<12x128xf32> to vector<1x128xf32>
    %798 = vector.extract_strided_slice %791 {offsets = [8, 0], sizes = [1, 128], strides = [1, 1]} : vector<12x128xf32> to vector<1x128xf32>
    %799 = vector.extract_strided_slice %791 {offsets = [9, 0], sizes = [1, 128], strides = [1, 1]} : vector<12x128xf32> to vector<1x128xf32>
    %800 = vector.extract_strided_slice %791 {offsets = [10, 0], sizes = [1, 128], strides = [1, 1]} : vector<12x128xf32> to vector<1x128xf32>
    %801 = vector.extract_strided_slice %791 {offsets = [11, 0], sizes = [1, 128], strides = [1, 1]} : vector<12x128xf32> to vector<1x128xf32>
    %802 = arith.mulf %793, %708 : vector<1x128xf32>
    %803 = arith.mulf %796, %723 : vector<1x128xf32>
    %804 = arith.addf %802, %803 : vector<1x128xf32>
    %805 = arith.mulf %799, %738 : vector<1x128xf32>
    %806 = arith.addf %804, %805 : vector<1x128xf32>
    %807 = arith.mulf %794, %698 : vector<1x128xf32>
    %808 = arith.mulf %797, %713 : vector<1x128xf32>
    %809 = arith.addf %807, %808 : vector<1x128xf32>
    %810 = arith.mulf %800, %728 : vector<1x128xf32>
    %811 = arith.addf %809, %810 : vector<1x128xf32>
    %812 = arith.mulf %795, %703 : vector<1x128xf32>
    %813 = arith.mulf %798, %718 : vector<1x128xf32>
    %814 = arith.addf %812, %813 : vector<1x128xf32>
    %815 = arith.mulf %801, %733 : vector<1x128xf32>
    %816 = arith.addf %814, %815 : vector<1x128xf32>
    %817 = arith.mulf %698, %795 : vector<1x128xf32>
    %818 = arith.mulf %713, %798 : vector<1x128xf32>
    %819 = arith.addf %817, %818 : vector<1x128xf32>
    %820 = arith.mulf %728, %801 : vector<1x128xf32>
    %821 = arith.addf %819, %820 : vector<1x128xf32>
    %822 = arith.mulf %703, %793 : vector<1x128xf32>
    %823 = arith.mulf %718, %796 : vector<1x128xf32>
    %824 = arith.addf %822, %823 : vector<1x128xf32>
    %825 = arith.mulf %733, %799 : vector<1x128xf32>
    %826 = arith.addf %824, %825 : vector<1x128xf32>
    %827 = arith.mulf %708, %794 : vector<1x128xf32>
    %828 = arith.mulf %723, %797 : vector<1x128xf32>
    %829 = arith.addf %827, %828 : vector<1x128xf32>
    %830 = arith.mulf %738, %800 : vector<1x128xf32>
    %831 = arith.addf %829, %830 : vector<1x128xf32>
    %832 = arith.subf %806, %821 : vector<1x128xf32>
    %833 = arith.subf %811, %826 : vector<1x128xf32>
    %834 = arith.subf %816, %831 : vector<1x128xf32>
    %835 = arith.mulf %643, %108 : vector<1x128xf32>
    %836 = arith.mulf %661, %109 : vector<1x128xf32>
    %837 = arith.addf %835, %836 : vector<1x128xf32>
    %838 = arith.mulf %680, %110 : vector<1x128xf32>
    %839 = arith.addf %837, %838 : vector<1x128xf32>
    %840 = arith.mulf %643, %168 : vector<1x128xf32>
    %841 = arith.mulf %661, %166 : vector<1x128xf32>
    %842 = arith.addf %840, %841 : vector<1x128xf32>
    %843 = arith.mulf %680, %167 : vector<1x128xf32>
    %844 = arith.addf %842, %843 : vector<1x128xf32>
    %845 = arith.mulf %643, %95 : vector<1x128xf32>
    %846 = arith.mulf %661, %96 : vector<1x128xf32>
    %847 = arith.addf %845, %846 : vector<1x128xf32>
    %848 = arith.mulf %680, %97 : vector<1x128xf32>
    %849 = arith.addf %847, %848 : vector<1x128xf32>
    %cst_140 = arith.constant 5.000000e-02 : f32
    %850 = vector.broadcast %cst_140 : f32 to vector<1x128xf32>
    %851 = arith.mulf %850, %844 : vector<1x128xf32>
    %852 = arith.addf %839, %851 : vector<1x128xf32>
    %cst_141 = arith.constant 5.000000e-02 : f32
    %853 = vector.broadcast %cst_141 : f32 to vector<1x128xf32>
    %854 = arith.mulf %853, %834 : vector<1x128xf32>
    %855 = arith.addf %852, %854 : vector<1x128xf32>
    %856 = arith.addf %855, %849 : vector<1x128xf32>
    %857 = vector.extract_strided_slice %93 {offsets = [0, 0], sizes = [1, 128], strides = [1, 1]} : vector<3x128xf32> to vector<1x128xf32>
    %858 = arith.addf %856, %857 : vector<1x128xf32>
    %859 = arith.mulf %649, %108 : vector<1x128xf32>
    %860 = arith.mulf %668, %109 : vector<1x128xf32>
    %861 = arith.addf %859, %860 : vector<1x128xf32>
    %862 = arith.mulf %686, %110 : vector<1x128xf32>
    %863 = arith.addf %861, %862 : vector<1x128xf32>
    %864 = arith.mulf %649, %168 : vector<1x128xf32>
    %865 = arith.mulf %668, %166 : vector<1x128xf32>
    %866 = arith.addf %864, %865 : vector<1x128xf32>
    %867 = arith.mulf %686, %167 : vector<1x128xf32>
    %868 = arith.addf %866, %867 : vector<1x128xf32>
    %869 = arith.mulf %649, %95 : vector<1x128xf32>
    %870 = arith.mulf %668, %96 : vector<1x128xf32>
    %871 = arith.addf %869, %870 : vector<1x128xf32>
    %872 = arith.mulf %686, %97 : vector<1x128xf32>
    %873 = arith.addf %871, %872 : vector<1x128xf32>
    %cst_142 = arith.constant 5.000000e-02 : f32
    %874 = vector.broadcast %cst_142 : f32 to vector<1x128xf32>
    %875 = arith.mulf %874, %868 : vector<1x128xf32>
    %876 = arith.addf %863, %875 : vector<1x128xf32>
    %cst_143 = arith.constant 5.000000e-02 : f32
    %877 = vector.broadcast %cst_143 : f32 to vector<1x128xf32>
    %878 = arith.mulf %877, %832 : vector<1x128xf32>
    %879 = arith.addf %876, %878 : vector<1x128xf32>
    %880 = arith.addf %879, %873 : vector<1x128xf32>
    %881 = vector.extract_strided_slice %93 {offsets = [1, 0], sizes = [1, 128], strides = [1, 1]} : vector<3x128xf32> to vector<1x128xf32>
    %882 = arith.addf %880, %881 : vector<1x128xf32>
    %883 = arith.mulf %655, %108 : vector<1x128xf32>
    %884 = arith.mulf %674, %109 : vector<1x128xf32>
    %885 = arith.addf %883, %884 : vector<1x128xf32>
    %886 = arith.mulf %693, %110 : vector<1x128xf32>
    %887 = arith.addf %885, %886 : vector<1x128xf32>
    %888 = arith.mulf %655, %168 : vector<1x128xf32>
    %889 = arith.mulf %674, %166 : vector<1x128xf32>
    %890 = arith.addf %888, %889 : vector<1x128xf32>
    %891 = arith.mulf %693, %167 : vector<1x128xf32>
    %892 = arith.addf %890, %891 : vector<1x128xf32>
    %893 = arith.mulf %655, %95 : vector<1x128xf32>
    %894 = arith.mulf %674, %96 : vector<1x128xf32>
    %895 = arith.addf %893, %894 : vector<1x128xf32>
    %896 = arith.mulf %693, %97 : vector<1x128xf32>
    %897 = arith.addf %895, %896 : vector<1x128xf32>
    %cst_144 = arith.constant 5.000000e-02 : f32
    %898 = vector.broadcast %cst_144 : f32 to vector<1x128xf32>
    %899 = arith.mulf %898, %892 : vector<1x128xf32>
    %900 = arith.addf %887, %899 : vector<1x128xf32>
    %cst_145 = arith.constant 5.000000e-02 : f32
    %901 = vector.broadcast %cst_145 : f32 to vector<1x128xf32>
    %902 = arith.mulf %901, %833 : vector<1x128xf32>
    %903 = arith.addf %900, %902 : vector<1x128xf32>
    %904 = arith.addf %903, %897 : vector<1x128xf32>
    %905 = vector.extract_strided_slice %93 {offsets = [2, 0], sizes = [1, 128], strides = [1, 1]} : vector<3x128xf32> to vector<1x128xf32>
    %906 = arith.addf %904, %905 : vector<1x128xf32>
    %907 = tpu.concatenate %858, %882, %906 in 0 : vector<1x128xf32>, vector<1x128xf32>, vector<1x128xf32> -> vector<3x128xf32>
    %908 = arith.mulf %698, %101 : vector<1x128xf32>
    %909 = arith.mulf %703, %102 : vector<1x128xf32>
    %910 = arith.addf %908, %909 : vector<1x128xf32>
    %911 = arith.mulf %708, %103 : vector<1x128xf32>
    %912 = arith.addf %910, %911 : vector<1x128xf32>
    %913 = arith.mulf %713, %101 : vector<1x128xf32>
    %914 = arith.mulf %718, %102 : vector<1x128xf32>
    %915 = arith.addf %913, %914 : vector<1x128xf32>
    %916 = arith.mulf %723, %103 : vector<1x128xf32>
    %917 = arith.addf %915, %916 : vector<1x128xf32>
    %918 = arith.mulf %728, %101 : vector<1x128xf32>
    %919 = arith.mulf %733, %102 : vector<1x128xf32>
    %920 = arith.addf %918, %919 : vector<1x128xf32>
    %921 = arith.mulf %738, %103 : vector<1x128xf32>
    %922 = arith.addf %920, %921 : vector<1x128xf32>
    %923 = tpu.concatenate %912, %917, %922 in 0 : vector<1x128xf32>, vector<1x128xf32>, vector<1x128xf32> -> vector<3x128xf32>
    %cst_146 = arith.constant -5.000000e-02 : f32
    %924 = vector.broadcast %cst_146 : f32 to vector<3x128xf32>
    %925 = arith.mulf %924, %126 : vector<3x128xf32>
    %cst_147 = arith.constant 5.000000e-02 : f32
    %926 = vector.broadcast %cst_147 : f32 to vector<3x128xf32>
    %927 = arith.mulf %926, %792 : vector<3x128xf32>
    %928 = arith.subf %925, %927 : vector<3x128xf32>
    %929 = arith.addf %928, %754 : vector<3x128xf32>
    %930 = arith.addf %929, %923 : vector<3x128xf32>
    %931 = vector.broadcast %45 : vector<3x1xf32> to vector<3x128xf32>
    %932 = arith.mulf %931, %907 : vector<3x128xf32>
    %933 = vector.broadcast %55 : vector<3x1xf32> to vector<3x128xf32>
    %934 = arith.mulf %933, %930 : vector<3x128xf32>
    %935 = arith.addf %934, %5 : vector<3x128xf32>
    %c12 = arith.constant 12 : index
    %c0_148 = arith.constant 0 : index
    %936 = vector.load %arg15[%c12, %c0_148] : memref<32x128xf32, #tpu.memory_space<vmem>>, vector<3x128xf32>
    tpu.vector_store %arg15[%c12, %c0_148], %935 {strides = array<i32>} : memref<32x128xf32, #tpu.memory_space<vmem>>, vector<3x128xf32>,
    %c15 = arith.constant 15 : index
    %c0_149 = arith.constant 0 : index
    %937 = vector.load %arg15[%c15, %c0_149] : memref<32x128xf32, #tpu.memory_space<vmem>>, vector<3x128xf32>
    tpu.vector_store %arg15[%c15, %c0_149], %932 {strides = array<i32>} : memref<32x128xf32, #tpu.memory_space<vmem>>, vector<3x128xf32>,
    %c0_150 = arith.constant 0 : index
    %c0_151 = arith.constant 0 : index
    %c0_152 = arith.constant 0 : index
    %938 = vector.load %arg3[%c0_150, %c0_151, %c0_152] : memref<1x3x128xf32, #tpu.memory_space<vmem>>, vector<1x3x128xf32>
    %939 = vector.shape_cast %938 : vector<1x3x128xf32> to vector<3x128xf32>
    %c26 = arith.constant 26 : index
    %c0_153 = arith.constant 0 : index
    %940 = vector.load %arg15[%c26, %c0_153] : memref<32x128xf32, #tpu.memory_space<vmem>>, vector<3x128xf32>
    tpu.vector_store %arg15[%c26, %c0_153], %939 {strides = array<i32>} : memref<32x128xf32, #tpu.memory_space<vmem>>, vector<3x128xf32>,
    %c0_154 = arith.constant 0 : index
    %c0_155 = arith.constant 0 : index
    %941 = vector.load %arg15[%c0_154, %c0_155] : memref<32x128xf32, #tpu.memory_space<vmem>>, vector<32x128xf32>
    %c0_156 = arith.constant 0 : index
    %c0_157 = arith.constant 0 : index
    %c0_158 = arith.constant 0 : index
    %942 = vector.load %arg14[%c0_156, %c0_157, %c0_158] : memref<1x32x128xf32, #tpu.memory_space<vmem>>, vector<1x32x128xf32>
    %943 = vector.shape_cast %942 : vector<1x32x128xf32> to vector<32x128xf32>
    %944 = vector.shape_cast %941 : vector<32x128xf32> to vector<1x32x128xf32>
    tpu.vector_store %arg14[%c0_156, %c0_157, %c0_158], %944 {strides = array<i32>} : memref<1x32x128xf32, #tpu.memory_space<vmem>>, vector<1x32x128xf32>,
    return
  }
  func.func @transform_0(%arg0: i32, %arg1: i32) -> (i32, i32) {
    %c0_i32 = arith.constant 0 : i32
    %c0_i32_0 = arith.constant 0 : i32
    return %c0_i32, %arg0 : i32, i32
  }
  func.func @transform_1(%arg0: i32, %arg1: i32) -> (i32, i32, i32) {
    %c0_i32 = arith.constant 0 : i32
    %c0_i32_0 = arith.constant 0 : i32
    return %arg1, %c0_i32, %arg0 : i32, i32, i32
  }
  func.func @transform_2(%arg0: i32, %arg1: i32) -> (i32, i32) {
    %c0_i32 = arith.constant 0 : i32
    %c0_i32_0 = arith.constant 0 : i32
    %c0_i32_1 = arith.constant 0 : i32
    return %c0_i32, %c0_i32_0 : i32, i32
  }
  func.func @transform_3(%arg0: i32, %arg1: i32) -> (i32, i32) {
    %c0_i32 = arith.constant 0 : i32
    %c0_i32_0 = arith.constant 0 : i32
    %c0_i32_1 = arith.constant 0 : i32
    return %c0_i32, %c0_i32_0 : i32, i32
  }
  func.func @transform_4(%arg0: i32, %arg1: i32) -> (i32, i32) {
    %c0_i32 = arith.constant 0 : i32
    %c0_i32_0 = arith.constant 0 : i32
    %c0_i32_1 = arith.constant 0 : i32
    return %c0_i32, %c0_i32_0 : i32, i32
  }
  func.func @transform_5(%arg0: i32, %arg1: i32) -> (i32, i32) {
    %c0_i32 = arith.constant 0 : i32
    %c0_i32_0 = arith.constant 0 : i32
    %c0_i32_1 = arith.constant 0 : i32
    return %c0_i32, %c0_i32_0 : i32, i32
  }
  func.func @transform_6(%arg0: i32, %arg1: i32) -> (i32, i32) {
    %c0_i32 = arith.constant 0 : i32
    %c0_i32_0 = arith.constant 0 : i32
    %c0_i32_1 = arith.constant 0 : i32
    return %c0_i32, %c0_i32_0 : i32, i32
  }
  func.func @transform_7(%arg0: i32, %arg1: i32) -> (i32, i32) {
    %c0_i32 = arith.constant 0 : i32
    %c0_i32_0 = arith.constant 0 : i32
    %c0_i32_1 = arith.constant 0 : i32
    return %c0_i32, %c0_i32_0 : i32, i32
  }
  func.func @transform_8(%arg0: i32, %arg1: i32) -> (i32, i32) {
    %c0_i32 = arith.constant 0 : i32
    %c0_i32_0 = arith.constant 0 : i32
    %c0_i32_1 = arith.constant 0 : i32
    return %c0_i32, %c0_i32_0 : i32, i32
  }
  func.func @transform_9(%arg0: i32, %arg1: i32) -> (i32, i32) {
    %c0_i32 = arith.constant 0 : i32
    %c0_i32_0 = arith.constant 0 : i32
    %c0_i32_1 = arith.constant 0 : i32
    return %c0_i32, %c0_i32_0 : i32, i32
  }
  func.func @transform_10(%arg0: i32, %arg1: i32) -> (i32, i32) {
    %c0_i32 = arith.constant 0 : i32
    %c0_i32_0 = arith.constant 0 : i32
    %c0_i32_1 = arith.constant 0 : i32
    return %c0_i32, %c0_i32_0 : i32, i32
  }
  func.func @transform_11(%arg0: i32, %arg1: i32) -> (i32, i32) {
    %c0_i32 = arith.constant 0 : i32
    %c0_i32_0 = arith.constant 0 : i32
    %c0_i32_1 = arith.constant 0 : i32
    return %c0_i32, %c0_i32_0 : i32, i32
  }
  func.func @transform_12(%arg0: i32, %arg1: i32) -> (i32, i32, i32) {
    %c0_i32 = arith.constant 0 : i32
    %c0_i32_0 = arith.constant 0 : i32
    return %arg1, %c0_i32, %arg0 : i32, i32, i32
  }
}

</mosaic_0001>

<bundles_post_ra>
// kernel: physord_forward.1
= control target key start
LH: loop header
LB: loop body
LE: loop exit
PB: predicated region body
PF: predicated region fallthrough
CT: control target
= control target key end

     0   :  { %s2994_s21 = smov 0   ;;  %s2996_s22 = smov 0   ;;  %s3937_s0 = inlined_call_operand.vmem [shape: f32[32,128], index: 0, kind: input, shape index: {}]   ;;  %s3938_s1 = inlined_call_operand.vmem [shape: f32[4,3,128], index: 1, kind: input, shape index: {}]   ;;  %s3939_s2 = inlined_call_operand.vmem [shape: f32[10,12], index: 2, kind: input, shape index: {}]   ;;  %s3940_s3 = inlined_call_operand.vmem [shape: f32[10,1], index: 3, kind: input, shape index: {}]   ;;  %s3941_s4 = inlined_call_operand.vmem [shape: f32[10,10], index: 4, kind: input, shape index: {}]   ;;  %s3942_s5 = inlined_call_operand.vmem [shape: f32[10,1], index: 5, kind: input, shape index: {}]   ;;  %s3943_s6 = inlined_call_operand.vmem [shape: f32[12,10], index: 6, kind: input, shape index: {}]   ;;  %s3944_s7 = inlined_call_operand.vmem [shape: f32[64,13], index: 7, kind: input, shape index: {}]   ;;  %s3945_s8 = inlined_call_operand.vmem [shape: f32[64,1], index: 8, kind: input, shape index: {}]   ;;  %s3946_s9 = inlined_call_operand.vmem [shape: f32[64,64], index: 9, kind: input, shape index: {}]   ;;  %s3947_s10 = inlined_call_operand.vmem [shape: f32[64,1], index: 10, kind: input, shape index: {}]   ;;  %s3948_s11 = inlined_call_operand.vmem [shape: f32[6,64], index: 11, kind: input, shape index: {}]   ;;  %s3949_s12 = inlined_call_operand.vmem [shape: f32[4,32,128], index: 12, kind: output, shape index: {}]  }
   0x1   :  { %s2998_s23 = smov 0  }
   0x2 LB: > { %s31_s24 = sadd.s32 1, %s2920_s22  ;;  %p2760_p0 = scmp.ge.s32.totalorder %s2924_s23, 1  ;;  %s2924_s23 = sphi %s2998_s23, %s22_s23   ;;  %s2920_s22 = sphi %s2996_s22, %s3951_s22   ;;  %s2916_s21 = sphi %s2994_s21, %s3950_s21  }
   0x3   : > { %p32_p1 = scmp.ge.s32.totalorder %s31_s24, 4  ;;  %p389_p2 = scmp.lt.s32.totalorder %s2924_s23, 5 }
   0x5   : > { %s3953_s24 = smov (%p32_p1, %s31_s24), 0  ;;  %p390_p3 = pnand %p2760_p0, %p389_p2 }
   0x6   : > { %p444_p4 = scmp.lt.s32.totalorder (!%p390_p3), %s2916_s21, 3  ;;  %p2764_p5 = scmp.ne.s32.totalorder (!%p390_p3), %s2916_s21, 0 }
   0x7   : > { %393 = sbr.rel (%p390_p3) target bundleno = 1383 (0x567), region = 68 }
   0xc   : > { %s445_s25 = scalar_select %p444_p4, %s2916_s21, 3 }
   0xd   : > { %462 = sbr.rel (%p2764_p5) target bundleno = 23 (0x17), region = 72 }
   0xe   : > { %s2761_s26 = sshll.u32 %s445_s25, 2  ;;  %s2812_s27 = sshll.u32 %s445_s25, 5 }
   0xf   : > { %s3015_s30 = scalar_lea.vmem %s3938_s1, %s2761_s26  ;;  %s3020_s15 = scalar_lea.vmem %s3949_s12, %s2812_s27 }
  0x12   : > { %v463_v0 = vld [vmem:[%s3937_s0] sm:$0xff]  ;;  %v464_v1 = vld [vmem:[%s3937_s0 + $0x8] sm:$0xff]  ;;  %v465_v2 = vld [vmem:[%s3937_s0 + $0x10] sm:$0xff] }
  0x13   : > { %467 = vst [vmem:[#allocation2] sm:$0xff] %v463_v0  ;;  %v466_v3 = vld [vmem:[%s3937_s0 + $0x18] sm:$0xff] }
  0x14   : > { %468 = vst [vmem:[#allocation2 + $0x8] sm:$0xff] %v464_v1 }
  0x15   : > { %469 = vst [vmem:[#allocation2 + $0x10] sm:$0xff] %v465_v2 }
  0x16   : > { %470 = vst [vmem:[#allocation2 + $0x18] sm:$0xff] %v466_v3 }
  0x17 PF: > { %vm510_vm0 = vcmask 1043456   ;;  %v824_v6 = vld [vmem:[%s3939_s2] sm:$0xff]  ;;  %vm844_vm1 = vcmask 97280   ;;  %v2926_v7 = vmov 0   ;;  %v544_v8 = vld [vmem:[%s3945_s8 + $0x38] sm:$0xff]  ;;  %v542_v10 = vld [vmem:[%s3945_s8 + $0x28] sm:$0xff] }
  0x18   : > { %2840 = vset.pattern.permute.xlu0 %v2926_v7  ;;  %2841 = vset.pattern.permute.xlu1 %v2926_v7  ;;  %v540_v11 = vld [vmem:[%s3945_s8 + $0x18] sm:$0xff]  ;;  %v2649_v16 = vld [vmem:[%s3015_s30] sm:$0x7]  ;;  %v543_v17 = vld [vmem:[%s3945_s8 + $0x30] sm:$0xff]  ;;  %vm520_vm4 = vcmask 1042432   ;;  %vm527_vm5 = vcmask 1040384  }
  0x19   : > { %599 = vperm.xlu0 %2840, %v544_v8   ;;  %2842 = vset.pattern.permute.xlu2 %v2926_v7  ;;  %v825_v19 = vld [vmem:[%s3939_s2 + $0x8] sm:$0x3]  ;;  %v541_v20 = vld [vmem:[%s3945_s8 + $0x20] sm:$0xff]  ;;  %v539_v21 = vld [vmem:[%s3945_s8 + $0x10] sm:$0xff]  ;;  %vm525_vm6 = vcmask 1045504   ;;  %vm627_vm7 = vcmask 1044480  }
  0x1a   : > { %v3036_v5 = vld [vmem:[#allocation2] sm:$0xff]  ;;  %589 = vperm.xlu1 %2841, %v542_v10   ;;  %579 = vperm.xlu2 %2842, %v540_v11   ;;  %v538_v24 = vld [vmem:[%s3945_s8 + $0x8] sm:$0xff]  ;;  %vm602_vm8 = vcmask 105472   ;;  %v560_v53 = vld [vmem:[%s3947_s10 + $0x38] sm:$0xff]  ;;  %vm895_vm9 = vcmask 1041408   ;;  %vm888_vm10 = vcmask 80896  }
  0x1b   : > { %v3034_v4 = vld [vmem:[#allocation2 + $0x8] sm:$0xff]  ;;  %v537_v26 = vld [vmem:[%s3945_s8] sm:$0xff]  ;;  %v555_v57 = vld [vmem:[%s3947_s10 + $0x10] sm:$0xff]  ;;  %vm720_vm11 = vcmask 523264  }
  0x1c   : > { %2783 = vmatpush.msk.msra.mxu3 %vm510_vm0, %v3034_v4  ;;  %v483_v9 = vmul.f32 %v3034_v4, %v3034_v4  ;;  %v827_v28 = vld [vmem:[%s3940_s3 + $0x8] sm:$0x3]  ;;  %v826_v31 = vld [vmem:[%s3940_s3] sm:$0xff]  ;;  %v3083_v33 = vld [vmem:[#allocation2 + $0x10] sm:$0xff]  ;;  %v511_v41 = vrot.slane %v3034_v4, 4 }
  0x1d   : > { %v474_v15 = vld [vmem:[#allocation2 + $0x18] sm:$0xff]  ;;  %v503_v37 = vmul.f32 0.033333335, %v3083_v33  ;;  %v512_v42 = vrot.slane %v3083_v33, 4  ;;  %v529_v52 = vld [vmem:[%s3944_s7] sm:$0xff]  ;;  %v558_v54 = vld [vmem:[%s3947_s10 + $0x28] sm:$0xff] }
  0x1e   : > { %868 = vmatpush.msra.mxu3 %v3036_v5  ;;  %v485_v12 = vrot.slane %v483_v9, 1  ;;  %v488_v13 = vrot.slane %v483_v9, 2  ;;  %2650 = vst [vmem:[#allocation2 + $0x1a] sm:$0x7] %v2649_v16  ;;  %v504_v38 = vmul.f32 0.033333335, %v474_v15 }
  0x1f   : > { %2784 = vmatmul.msk.f32.vlgmr.msra.gmra.mxu3 %vm844_vm1, %v824_v6  ;;  %v516_v45 = vrot.slane %v474_v15, 4  ;;  %v513_v48 = vsel %vm510_vm0, %v511_v41, %v512_v42  ;;  %v530_v55 = vld [vmem:[%s3944_s7 + $0x8] sm:$0xff]  ;;  %v557_v56 = vld [vmem:[%s3947_s10 + $0x20] sm:$0xff]  ;;  %v531_v58 = vld [vmem:[%s3944_s7 + $0x10] sm:$0xff] }
  0x20   : > { %v487_v14 = vadd.f32 %v485_v12, %v483_v9  ;;  %v554_v59 = vld [vmem:[%s3947_s10 + $0x8] sm:$0xff]  ;;  %v532_v61 = vld [vmem:[%s3944_s7 + $0x18] sm:$0xff]  ;;  %v830_v62 = vld [vmem:[%s3942_s5] sm:$0xff] }
  0x21   : > { %594 = vperm.xlu0 %2840, %v543_v17   ;;  %v526_v51 = vsel %vm525_vm6, %v513_v48, %v516_v45  ;;  %v831_v60 = vld [vmem:[%s3942_s5 + $0x8] sm:$0x3]  ;;  %v559_v63 = vld [vmem:[%s3947_s10 + $0x30] sm:$0xff]  ;;  %v533_v0 = vld [vmem:[%s3944_s7 + $0x20] sm:$0xff] }
  0x22   : > { %v490_v18 = vadd.f32 %v488_v13, %v487_v14  ;;  %584 = vperm.xlu1 %2841, %v541_v20   ;;  %574 = vperm.xlu2 %2842, %v539_v21   ;;  %v2247_v1 = vld [vmem:[%s3942_s5 + $0x8] sm:$0x3]  ;;  %v556_v2 = vld [vmem:[%s3947_s10 + $0x18] sm:$0xff]  ;;  %v553_v6 = vld [vmem:[%s3947_s10] sm:$0xff] }
  0x23   : > { %v534_v3 = vld [vmem:[%s3944_s7 + $0x28] sm:$0xff]  ;;  %v535_v7 = vld [vmem:[%s3944_s7 + $0x30] sm:$0xff]  ;;  %v536_v9 = vld [vmem:[%s3944_s7 + $0x38] sm:$0xff] }
  0x24   : > { %2843 = vrsqrt.f32 %v490_v18  ;;  %vm498_vm2 = vcmp.eq.f32.partialorder %v490_v18, inf  ;;  %v501_v34 = vand.u32 2147483648, %v490_v18  ;;  %vm500_vm3 = vcmp.eq.f32.partialorder %v490_v18, 0.0  ;;  %v2243_v8 = vld [vmem:[%s3940_s3 + $0x8] sm:$0x3] }
  0x25   : > { %v2654_v22 = vld [vmem:[#allocation2 + $0x18] sm:$0xff] }
  0x26   : > { %2658 = vst [vmem:[%s3020_s15 + $0x18] sm:$0xff] %v2654_v22 }
  0x27   : > { %2785 = vmatmul.msk.f32.gmra.mxu3 %vm844_vm1, %v825_v19 }
  0x29   : > { %569 = vperm.xlu0 %2840, %v538_v24   ;;  %v829_v24 = vld [vmem:[%s3941_s4 + $0x8] sm:$0x3] }
  0x2a   : > { %v2844_v23 = vpop.eup %2843  ;;  %564 = vperm.xlu1 %2841, %v537_v26   ;;  %841 = vperm.xlu2 %2842, %v827_v28  }
  0x2b   : > { %v492_v25 = vmul.f32 %v2844_v23, %v490_v18 }
  0x2d   : > { %v493_v27 = vmul.f32 %v2844_v23, %v492_v25 }
  0x2f   : > { %v494_v29 = vmul.f32 0.5, %v493_v27 }
  0x31   : > { %v495_v30 = vsub.f32 1.5, %v494_v29  ;;  %836 = vperm.xlu0 %2840, %v826_v31  }
  0x32   : > { %717 = vperm.xlu1 %2841, %v560_v53   ;;  %712 = vperm.xlu2 %2842, %v559_v63   ;;  %v545_v53 = vld [vmem:[%s3946_s9] sm:$0xff] }
  0x33   : > { %v496_v32 = vmul.f32 %v2844_v23, %v495_v30  ;;  %v828_v23 = vld [vmem:[%s3941_s4] sm:$0xff] }
  0x35   : > { %v497_v35 = vmul.f32 %v496_v32, %v490_v18 }
  0x37   : > { %v499_v36 = vsel %vm498_vm2, %v490_v18, %v497_v35 }
  0x38   : > { %v502_v39 = vsel %vm500_vm3, %v501_v34, %v499_v36 }
  0x39   : > { %v505_v40 = vperm.slane %v502_v39, 4  ;;  %707 = vperm.xlu0 %2840, %v558_v54  }
  0x3a   : > { %702 = vperm.xlu1 %2841, %v557_v56   ;;  %697 = vperm.xlu2 %2842, %v556_v2   ;;  %v547_v56 = vld [vmem:[%s3946_s9 + $0x10] sm:$0xff] }
  0x3b   : > { %v506_v43 = vsub.f32 %v505_v40, %v503_v37  ;;  %v507_v44 = vsub.f32 %v505_v40, %v504_v38 }
  0x3d   : > { %v521_v46 = vrot.slane %v506_v43, 5  ;;  %v522_v47 = vrot.slane %v507_v44, 5 }
  0x3f   : > { %v523_v49 = vsel %vm520_vm4, %v521_v46, %v522_v47 }
  0x40   : > { %v528_v50 = vsel %vm527_vm5, %v516_v45, %v523_v49 }
  0x41   : > { %2765 = vmatpush.msk.msra.mxu0 %vm627_vm7, %v528_v50  ;;  %692 = vperm.xlu0 %2840, %v555_v57   ;;  %v548_v57 = vld [vmem:[%s3946_s9 + $0x18] sm:$0xff] }
  0x42   : > { %687 = vperm.xlu1 %2841, %v554_v59   ;;  %682 = vperm.xlu2 %2842, %v553_v6   ;;  %v550_v59 = vld [vmem:[%s3946_s9 + $0x28] sm:$0xff] }
  0x43   : > { %646 = vmatpush.msra.mxu0 %v526_v51 }
  0x44   : > { %2766 = vmatmul.msk.f32.vlgmr.msra.gmra.mxu0 %vm602_vm8, %v529_v52 }
  0x49   : > { %885 = vperm.xlu0 %2840, %v831_v60   ;;  %v551_v60 = vld [vmem:[%s3946_s9 + $0x30] sm:$0xff] }
  0x4a   : > { %880 = vperm.xlu1 %2841, %v830_v62   ;;  %2257 = vperm.xlu2 %2842, %v2243_v8  }
  0x4c   : > { %2767 = vmatmul.msk.f32.gmra.mxu0 %vm602_vm8, %v530_v55  ;;  %v546_v55 = vld [vmem:[%s3946_s9 + $0x8] sm:$0xff] }
  0x51   : > { %2252 = vperm.xlu0 %2840, %v826_v31  }
  0x52   : > { %2301 = vperm.xlu1 %2841, %v2247_v1   ;;  %2296 = vperm.xlu2 %2842, %v830_v62  }
  0x54   : > { %2768 = vmatmul.msk.f32.gmra.mxu0 %vm602_vm8, %v531_v58  ;;  %v549_v58 = vld [vmem:[%s3946_s9 + $0x20] sm:$0xff] }
  0x5c   : > { %2769 = vmatmul.msk.f32.gmra.mxu0 %vm602_vm8, %v532_v61  ;;  %v552_v61 = vld [vmem:[%s3946_s9 + $0x38] sm:$0xff] }
  0x64   : > { %2770 = vmatmul.msk.f32.gmra.mxu0 %vm602_vm8, %v533_v0 }
  0x6c   : > { %2771 = vmatmul.msk.f32.gmra.mxu0 %vm602_vm8, %v534_v3 }
  0x74   : > { %2772 = vmatmul.msk.f32.gmra.mxu0 %vm602_vm8, %v535_v7  ;;  %v580_v11 = vpop.permute.xlu2 %579 }
  0x7c   : > { %2773 = vmatmul.msk.f32.gmra.mxu0 %vm602_vm8, %v536_v9  ;;  %v575_v13 = vpop.permute.xlu2 %574 }
  0x84   : > { %v842_v17 = vpop.permute.xlu2 %841 }
  0x8b   : > { %v600_v10 = vpop.permute.xlu0 %599 }
  0x8c   : > { %v590_v31 = vpop.permute.xlu1 %589  ;;  %v713_v7 = vpop.permute.xlu2 %712 }
  0x93   : > { %v595_v12 = vpop.permute.xlu0 %594 }
  0x94   : > { %v585_v34 = vpop.permute.xlu1 %584 }
  0x9b   : > { %v570_v14 = vpop.permute.xlu0 %569 }
  0x9c   : > { %v565_v44 = vpop.permute.xlu1 %564 }
  0xa2   : > { %v870_v15 = vpop.f32.mrf.mxu3 }
  0xa3   : > { %v837_v16 = vpop.permute.xlu0 %836 }
  0xa4   : > { %v871_v18 = vadd.f32 %v870_v15, %v837_v16  ;;  %v718_v6 = vpop.permute.xlu1 %717 }
  0xa6   : > { %2845 = vtanh.f32 %v871_v18 }
  0xaa   : > { %v873_v19 = vpop.f32.mrf.mxu3 }
  0xab   : > { %v874_v20 = vadd.f32 %v873_v19, %v842_v17  ;;  %v708_v9 = vpop.permute.xlu0 %707 }
  0xac   : > { %v2846_v21 = vpop.eup %2845 }
  0xad   : > { %2847 = vtanh.f32 %v874_v20 }
  0xb3   : > { %v2848_v22 = vpop.eup %2847  ;;  %v693_v17 = vpop.permute.xlu0 %692 }
  0xb4   : > { %2786 = vmatpush.msk.msrb.mxu3 %vm895_vm9, %v2848_v22 }
  0xb6   : > { %914 = vmatpush.msrb.mxu3 %v2846_v21 }
  0xb7   : > { %2787 = vmatmul.msk.f32.vlgmr.msrb.gmra.mxu3 %vm888_vm10, %v828_v23 }
  0xbf   : > { %2788 = vmatmul.msk.f32.gmra.mxu3 %vm888_vm10, %v829_v24 }
  0xc1   : > { %v648_v25 = vpop.f32.mrf.mxu0 }
  0xc2   : > { %v649_v48 = vadd.f32 %v648_v25, %v565_v44  ;;  %v833_v44 = vld [vmem:[%s3943_s6 + $0x8] sm:$0xf] }
  0xc9   : > { %v651_v26 = vpop.f32.mrf.mxu0 }
  0xca   : > { %v652_v46 = vadd.f32 %v651_v26, %v570_v14  ;;  %v698_v14 = vpop.permute.xlu2 %697 }
  0xd1   : > { %v654_v27 = vpop.f32.mrf.mxu0 }
  0xd2   : > { %v655_v43 = vadd.f32 %v654_v27, %v575_v13  ;;  %v683_v25 = vpop.permute.xlu2 %682 }
  0xd9   : > { %v657_v28 = vpop.f32.mrf.mxu0 }
  0xda   : > { %v658_v40 = vadd.f32 %v657_v28, %v580_v11 }
  0xe1   : > { %v660_v29 = vpop.f32.mrf.mxu0 }
  0xe2   : > { %v661_v39 = vadd.f32 %v660_v29, %v585_v34  ;;  %v886_v29 = vpop.permute.xlu0 %885 }
  0xe9   : > { %v663_v30 = vpop.f32.mrf.mxu0 }
  0xea   : > { %v664_v38 = vadd.f32 %v663_v30, %v590_v31 }
  0xf1   : > { %v666_v32 = vpop.f32.mrf.mxu0 }
  0xf2   : > { %v667_v36 = vadd.f32 %v666_v32, %v595_v12 }
  0xf9   : > { %v669_v35 = vpop.f32.mrf.mxu0 }
  0xfa   : > { %v670_v37 = vadd.f32 %v669_v35, %v600_v10  ;;  %v703_v10 = vpop.permute.xlu1 %702 }
  0xfc   : > { %2849 = vtanh.f32 %v670_v37 }
  0xfd   : > { %2851 = vtanh.f32 %v667_v36 }
  0xfe   : > { %2853 = vtanh.f32 %v664_v38  ;;  %v561_v38 = vld [vmem:[%s3948_s11] sm:$0x3f] }
  0xff   : > { %2855 = vtanh.f32 %v661_v39 }
 0x100   : > { %2857 = vtanh.f32 %v658_v40 }
 0x101   : > { %2859 = vtanh.f32 %v655_v43  ;;  %v832_v43 = vld [vmem:[%s3943_s6] sm:$0xff] }
 0x102   : > { %v2850_v42 = vpop.eup %2849  ;;  %2861 = vtanh.f32 %v652_v46  ;;  %v688_v19 = vpop.permute.xlu1 %687 }
 0x103   : > { %753 = vmatpush.msra.mxu1 %v2850_v42  ;;  %v2852_v45 = vpop.eup %2851  ;;  %2863 = vtanh.f32 %v649_v48 }
 0x104   : > { %v2854_v47 = vpop.eup %2853 }
 0x105   : > { %754 = vmatpush.msra.mxu1 %v2852_v45  ;;  %v2856_v49 = vpop.eup %2855  ;;  %v475_v45 = vlaneseq }
 0x106   : > { %v2858_v50 = vpop.eup %2857 }
 0x107   : > { %755 = vmatpush.msra.mxu1 %v2854_v47  ;;  %v2860_v51 = vpop.eup %2859  ;;  %v476_v46 = vshrl.u32 %v475_v45, 7  ;;  %v2927_v47 = vmov 0.001  }
 0x108   : > { %v2862_v52 = vpop.eup %2861 }
 0x109   : > { %756 = vmatpush.msra.mxu1 %v2856_v49  ;;  %v2864_v54 = vpop.eup %2863  ;;  %vm477_vm12 = vcmp.eq.s32.totalorder %v476_v46, 0  ;;  %vm479_vm13 = vcmp.eq.s32.totalorder %v476_v46, 1 }
 0x10a   : > { %v881_v32 = vpop.permute.xlu1 %880  ;;  %v481_v48 = vsel %vm477_vm12, 0.0025, %v2927_v47 }
 0x10b   : > { %757 = vmatpush.msra.mxu1 %v2858_v50  ;;  %v3216_v49 = vsel %vm479_vm13, 0.0025, %v481_v48 }
 0x10d   : > { %758 = vmatpush.msra.mxu1 %v2860_v51 }
 0x10f   : > { %759 = vmatpush.msra.mxu1 %v2862_v52  ;;  %v823_v52 = vmul.f32 900.0, %v3034_v4 }
 0x111   : > { %760 = vmatpush.msra.mxu1 %v2864_v54 }
 0x112   : > { %2774 = vmatmul.msk.f32.vlgmr.msra.gmra.mxu1 %vm720_vm11, %v545_v53 }
 0x11a   : > { %2775 = vmatmul.msk.f32.gmra.mxu1 %vm720_vm11, %v546_v55 }
 0x122   : > { %2776 = vmatmul.msk.f32.gmra.mxu1 %vm720_vm11, %v547_v56 }
 0x12a   : > { %2777 = vmatmul.msk.f32.gmra.mxu1 %vm720_vm11, %v548_v57 }
 0x132   : > { %2778 = vmatmul.msk.f32.gmra.mxu1 %vm720_vm11, %v549_v58 }
 0x13a   : > { %2779 = vmatmul.msk.f32.gmra.mxu1 %vm720_vm11, %v550_v59  ;;  %v916_v15 = vpop.f32.mrf.mxu3 }
 0x13b   : > { %v917_v35 = vadd.f32 %v916_v15, %v881_v32  ;;  %v960_v15 = vrot.slane %v3034_v4, 2 }
 0x142   : > { %2780 = vmatmul.msk.f32.gmra.mxu1 %vm720_vm11, %v551_v60  ;;  %v919_v26 = vpop.f32.mrf.mxu3  ;;  %v2195_v60 = vmul.f32 0.00011111111, %v823_v52 }
 0x143   : > { %v920_v31 = vadd.f32 %v919_v26, %v886_v29 }
 0x14a   : > { %2781 = vmatmul.msk.f32.gmra.mxu1 %vm720_vm11, %v552_v61 }
 0x18f   : > { %v762_v62 = vpop.f32.mrf.mxu1 }
 0x190   : > { %v763_v28 = vadd.f32 %v762_v62, %v683_v25 }
 0x197   : > { %v765_v63 = vpop.f32.mrf.mxu1 }
 0x198   : > { %v766_v24 = vadd.f32 %v765_v63, %v688_v19 }
 0x19f   : > { %v768_v0 = vpop.f32.mrf.mxu1 }
 0x1a0   : > { %v769_v22 = vadd.f32 %v768_v0, %v693_v17 }
 0x1a7   : > { %v771_v1 = vpop.f32.mrf.mxu1 }
 0x1a8   : > { %v772_v20 = vadd.f32 %v771_v1, %v698_v14  ;;  %v957_v14 = vrot.slane %v3036_v5, 2 }
 0x1af   : > { %v774_v2 = vpop.f32.mrf.mxu1 }
 0x1b0   : > { %v775_v18 = vadd.f32 %v774_v2, %v703_v10  ;;  %v972_v2 = vrot.slane %v3036_v5, 7 }
 0x1b7   : > { %v777_v3 = vpop.f32.mrf.mxu1 }
 0x1b8   : > { %v778_v16 = vadd.f32 %v777_v3, %v708_v9  ;;  %v819_v9 = vrot.slane %v3083_v33, 7 }
 0x1bf   : > { %v780_v8 = vpop.f32.mrf.mxu1 }
 0x1c0   : > { %v781_v12 = vadd.f32 %v780_v8, %v713_v7 }
 0x1c7   : > { %v783_v11 = vpop.f32.mrf.mxu1 }
 0x1c8   : > { %v784_v13 = vadd.f32 %v783_v11, %v718_v6 }
 0x1ca   : > { %2865 = vtanh.f32 %v784_v13 }
 0x1cb   : > { %2867 = vtanh.f32 %v781_v12  ;;  %v2197_v12 = vrot.slane %v2195_v60, 4 }
 0x1cc   : > { %2869 = vtanh.f32 %v778_v16 }
 0x1cd   : > { %2871 = vtanh.f32 %v775_v18  ;;  %v2928_v18 = vmov 1000.0  }
 0x1ce   : > { %2873 = vtanh.f32 %v772_v20  ;;  %v478_v19 = vsel %vm477_vm12, 400.0, %v2928_v18  ;;  %v818_v20 = vrot.slane %v3034_v4, 7 }
 0x1cf   : > { %2875 = vtanh.f32 %v769_v22  ;;  %v480_v29 = vsel %vm479_vm13, 400.0, %v478_v19 }
 0x1d0   : > { %v2866_v21 = vpop.eup %2865  ;;  %2877 = vtanh.f32 %v766_v24  ;;  %v2199_v24 = vadd.f32 %v2197_v12, %v3036_v5  ;;  %v820_v25 = vsel %vm527_vm5, %v818_v20, %v819_v9 }
 0x1d1   : > { %805 = vmatpush.msra.mxu2 %v2866_v21  ;;  %v2868_v23 = vpop.eup %2867  ;;  %2879 = vtanh.f32 %v763_v28 }
 0x1d2   : > { %v2870_v27 = vpop.eup %2869  ;;  %2881 = vtanh.f32 %v920_v31 }
 0x1d3   : > { %806 = vmatpush.msra.mxu2 %v2868_v23  ;;  %v2872_v30 = vpop.eup %2871  ;;  %2883 = vtanh.f32 %v917_v35 }
 0x1d4   : > { %v2874_v34 = vpop.eup %2873 }
 0x1d5   : > { %807 = vmatpush.msra.mxu2 %v2870_v27  ;;  %v2876_v36 = vpop.eup %2875 }
 0x1d6   : > { %v2878_v37 = vpop.eup %2877 }
 0x1d7   : > { %808 = vmatpush.msra.mxu2 %v2872_v30  ;;  %v2880_v39 = vpop.eup %2879 }
 0x1d8   : > { %v2882_v40 = vpop.eup %2881 }
 0x1d9   : > { %809 = vmatpush.msra.mxu2 %v2874_v34  ;;  %v2884_v42 = vpop.eup %2883 }
 0x1db   : > { %810 = vmatpush.msra.mxu2 %v2876_v36 }
 0x1dd   : > { %811 = vmatpush.msra.mxu2 %v2878_v37 }
 0x1df   : > { %812 = vmatpush.msra.mxu2 %v2880_v39 }
 0x1e0   : > { %2782 = vmatmul.msk.f32.vlgmr.msra.gmra.mxu2 %vm720_vm11, %v561_v38 }
 0x1e1   : > { %2789 = vmatpush.msk.msrb.mxu2 %vm895_vm9, %v2882_v40 }
 0x1e3   : > { %948 = vmatpush.msrb.mxu2 %v2884_v42 }
 0x1e8   : > { %2790 = vmatmul.msk.f32.vlgmr.msrb.gmra.mxu2 %vm888_vm10, %v832_v43 }
 0x1f0   : > { %2791 = vmatmul.msk.f32.gmra.mxu2 %vm888_vm10, %v833_v44 }
 0x263   : > { %v814_v50 = vpop.f32.mrf.mxu2 }
 0x264   : > { %v3218_v51 = vmul.f32 0.05, %v814_v50 }
 0x266   : > { %v2153_v53 = vmul.f32 %v3218_v51, %v3036_v5  ;;  %v3224_v54 = vrot.slane %v3218_v51, 5  ;;  %v3227_v55 = vrot.slane %v3218_v51, 2 }
 0x268   : > { %v2155_v56 = vrot.slane %v2153_v53, 1  ;;  %v2164_v57 = vmul.f32 %v3224_v54, %v3036_v5  ;;  %v2169_v58 = vmul.f32 %v3224_v54, %v3034_v4  ;;  %v2176_v59 = vmul.f32 %v3227_v55, %v3034_v4 }
 0x269   : > { %v2158_v62 = vrot.slane %v2153_v53, 2 }
 0x26a   : > { %v2157_v61 = vadd.f32 %v2155_v56, %v2153_v53  ;;  %v2166_v63 = vrot.slane %v2164_v57, 1  ;;  %v2178_v1 = vrot.slane %v2176_v59, 1  ;;  %v2171_v8 = vrot.slane %v2169_v58, 2 }
 0x26b   : > { %v3235_v0 = vpop.f32.mrf.mxu2  ;;  %v2181_v11 = vrot.slane %v2176_v59, 2 }
 0x26c   : > { %v1008_v3 = vrot.slane %v3235_v0, 7  ;;  %v2160_v6 = vadd.f32 %v2158_v62, %v2157_v61  ;;  %v2168_v7 = vadd.f32 %v2166_v63, %v2164_v57  ;;  %v2180_v10 = vadd.f32 %v2178_v1, %v2176_v59 }
 0x26d   : > { %v974_v33 = vmul.f32 %v972_v2, %v3235_v0  ;;  %v992_v27 = vrot.slane %v3235_v0, 2  ;;  %v962_v30 = vmul.f32 %v960_v15, %v3235_v0  ;;  %v2202_v32 = vmul.f32 5.5555556e-06, %v3235_v0 }
 0x26e   : > { %v2173_v13 = vadd.f32 %v2171_v8, %v2168_v7  ;;  %v1010_v16 = vmul.f32 %v1008_v3, %v3036_v5  ;;  %v2183_v17 = vadd.f32 %v2181_v11, %v2180_v10  ;;  %v2185_v21 = vrot.slane %v2160_v6, 3 }
 0x26f   : > { %v1022_v26 = vmul.f32 %v1008_v3, %v3034_v4  ;;  %v959_v35 = vmul.f32 %v957_v14, %v3235_v0  ;;  %v976_v38 = vrot.slane %v974_v33, 3  ;;  %v964_v47 = vrot.slane %v962_v30, 3 }
 0x270   : > { %v2188_v22 = vrot.slane %v2173_v13, 5  ;;  %v2191_v23 = vrot.slane %v2183_v17, 7  ;;  %v1012_v36 = vrot.slane %v1010_v16, 3  ;;  %v994_v52 = vmul.f32 %v992_v27, %v3036_v5 }
 0x271   : > { %v1024_v45 = vrot.slane %v1022_v26, 3  ;;  %v978_v59 = vadd.f32 %v976_v38, %v974_v33  ;;  %v3263_v3 = vmul.f32 %v820_v25, %v480_v29  ;;  %v966_v6 = vadd.f32 %v964_v47, %v959_v35 }
 0x272   : > { %v2193_v28 = vsel %vm527_vm5, %v2185_v21, %v2188_v22  ;;  %v1014_v61 = vadd.f32 %v1012_v36, %v1010_v16 }
 0x273   : > { %v3254_v31 = vsel %vm895_vm9, %v2193_v28, %v2191_v23  ;;  %v953_v34 = vpop.f32.mrf.mxu2  ;;  %v1037_v23 = vmul.f32 0.1, %v3218_v51 }
 0x274   : > { %v2200_v37 = vmul.f32 0.00011111111, %v3254_v31  ;;  %v980_v39 = vmul.f32 %v953_v34, %v818_v20  ;;  %v985_v40 = vmul.f32 %v972_v2, %v953_v34  ;;  %v967_v42 = vmul.f32 %v960_v15, %v953_v34 }
 0x275   : > { %v996_v43 = vrot.slane %v953_v34, 2  ;;  %v1015_v44 = vrot.slane %v953_v34, 7  ;;  %v1026_v2 = vadd.f32 %v1024_v45, %v1010_v16  ;;  %v1031_v16 = vmul.f32 0.1, %v3263_v3 }
 0x276   : > { %v2201_v46 = vadd.f32 %v2200_v37, %v2199_v24  ;;  %v982_v48 = vrot.slane %v980_v39, 6  ;;  %v987_v50 = vrot.slane %v985_v40, 3  ;;  %v969_v62 = vrot.slane %v967_v42, 6 }
 0x277   : > { %v998_v53 = vmul.f32 %v996_v43, %v3036_v5  ;;  %v1003_v56 = vmul.f32 %v996_v43, %v3034_v4  ;;  %v1017_v57 = vmul.f32 %v1015_v44, %v3034_v4 }
 0x278   : > { %v2203_v58 = vsub.f32 %v2201_v46, %v2202_v32  ;;  %v989_v60 = vadd.f32 %v987_v50, %v974_v33  ;;  %v984_v7 = vadd.f32 %v982_v48, %v978_v59  ;;  %v971_v13 = vadd.f32 %v969_v62, %v966_v6 }
 0x279   : > { %v1000_v63 = vrot.slane %v998_v53, 3  ;;  %v1019_v1 = vrot.slane %v1017_v57, 6  ;;  %v1005_v10 = vrot.slane %v1003_v56, 6 }
 0x27a   : > { %2204 = vst [vmem:[#allocation2] sm:$0x7] %v2203_v58  ;;  %v990_v8 = vadd.f32 %v989_v60, %v982_v48 }
 0x27b   : > { %v1002_v9 = vadd.f32 %v1000_v63, %v994_v52  ;;  %v1021_v11 = vadd.f32 %v1019_v1, %v1014_v61  ;;  %v1027_v12 = vadd.f32 %v1026_v2, %v1019_v1 }
 0x27d   : > { %v1007_v14 = vadd.f32 %v1005_v10, %v1002_v9  ;;  %v3265_v15 = vsub.f32 %v984_v7, %v1021_v11  ;;  %v3267_v17 = vsub.f32 %v990_v8, %v1027_v12 }
 0x27f   : > { %v3269_v18 = vsub.f32 %v971_v13, %v1007_v14  ;;  %v1032_v19 = vmul.f32 0.005, %v3267_v17  ;;  %v1045_v20 = vmul.f32 0.005, %v3265_v15 }
 0x281   : > { %v1034_v21 = vrot.slane %v1032_v19, 5  ;;  %v1039_v22 = vmul.f32 0.005, %v3269_v18  ;;  %v1047_v33 = vrot.slane %v1045_v20, 2 }
 0x283   : > { %v1036_v24 = vadd.f32 %v1034_v21, %v1031_v16  ;;  %v1041_v25 = vrot.slane %v1039_v22, 2  ;;  %v1049_v26 = vadd.f32 %v1047_v33, %v1031_v16 }
 0x285   : > { %v3276_v27 = vadd.f32 %v1037_v23, %v1036_v24  ;;  %v1043_v28 = vadd.f32 %v1041_v25, %v1031_v16  ;;  %v3278_v29 = vadd.f32 %v1049_v26, %v1037_v23 }
 0x287   : > { %v3280_v30 = vadd.f32 %v1043_v28, %v1037_v23  ;;  %v1051_v32 = vmul.f32 0.0, %v3276_v27  ;;  %v1057_v35 = vmul.f32 0.0, %v3278_v29  ;;  %v3289_v43 = vsub.f32 0.0, %v3276_v27 }
 0x288   : > { %v3316_v13 = vsub.f32 0.0, %v3278_v29 }
 0x289   : > { %v1052_v34 = vmul.f32 0.0, %v3280_v30  ;;  %v1059_v38 = vrot.slane %v1057_v35, 2  ;;  %v3286_v39 = vsub.f32 0.0, %v3280_v30  ;;  %v1109_v40 = vrot.slane %v1051_v32, 7 }
 0x28a   : > { %v1066_v47 = vrot.slane %v1051_v32, 6  ;;  %v1062_v2 = vrot.slane %v1057_v35, 1 }
 0x28b   : > { %v1054_v36 = vrot.slane %v1052_v34, 1  ;;  %v3292_v45 = vadd.f32 %v1109_v40, %v3286_v39  ;;  %v3296_v50 = vadd.f32 %v3289_v43, %v1059_v38  ;;  %v1097_v6 = vrot.slane %v1052_v34, 7 }
 0x28c   : > { %v3301_v58 = vadd.f32 %v1066_v47, %v3278_v29  ;;  %v1100_v21 = vadd.f32 %v1062_v2, %v3280_v30  ;;  %v1064_v40 = vsub.f32 %v1052_v34, %v1062_v2 }
 0x28d   : > { %v1056_v37 = vadd.f32 %v1054_v36, %v1051_v32  ;;  %v1112_v46 = vadd.f32 %v1054_v36, %v3276_v27  ;;  %v1128_v57 = vrot.slane %v3292_v45, 1  ;;  %v1099_v22 = vadd.f32 %v1097_v6, %v3316_v13 }
 0x28e   : > { %v1191_v6 = vmul.f32 %v3292_v45, %v1100_v21 }
 0x28f   : > { %v1061_v42 = vadd.f32 %v1059_v38, %v1056_v37  ;;  %v1122_v56 = vmul.f32 %v1112_v46, %v3296_v50  ;;  %v1137_v61 = vrot.slane %v1112_v46, 6  ;;  %v1130_v8 = vmul.f32 %v1128_v57, %v3296_v50 }
 0x290   : > { %v1071_v57 = vrot.slane %v1064_v40, 1  ;;  %v1214_v40 = vrot.slane %v3301_v58, 1 }
 0x291   : > { %v1104_v44 = vrot.slane %v1061_v42, 7  ;;  %v1114_v48 = vrot.slane %v1061_v42, 6  ;;  %v1124_v7 = vrot.slane %v1122_v56, 7  ;;  %v1139_v11 = vmul.f32 %v1137_v61, %v3301_v58 }
 0x292   : > { %v1095_v14 = vadd.f32 %v1061_v42, %v1051_v32  ;;  %v1074_v61 = vmul.f32 0.0, %v1061_v42 }
 0x293   : > { %v1106_v52 = vadd.f32 %v1104_v44, %v1052_v34  ;;  %v1116_v53 = vadd.f32 %v1114_v48, %v1057_v35 }
 0x294   : > { %v2792_v25 = vadd.f32 -800.0, %v1095_v14 }
 0x295   : > { %v3303_v59 = vadd.f32 -800.0, %v1106_v52  ;;  %v3305_v60 = vadd.f32 -2000.0, %v1116_v53  ;;  %v1068_v52 = vsub.f32 %v1057_v35, %v1066_v47  ;;  %v1069_v53 = vsub.f32 %v1051_v32, %v1054_v36 }
 0x296   : > { %v1196_v32 = vrot.slane %v3292_v45, 7 }
 0x297   : > { %v1119_v62 = vrot.slane %v3305_v60, 1  ;;  %v1131_v63 = vmul.f32 %v3305_v60, %v3301_v58  ;;  %v1140_v1 = vmul.f32 %v3303_v59, %v3292_v45  ;;  %v1183_v35 = vmul.f32 %v3305_v60, %v1099_v22 }
 0x298   : > { %v1188_v2 = vrot.slane %v3305_v60, 2 }
 0x299   : > { %v1121_v9 = vmul.f32 %v3303_v59, %v1119_v62  ;;  %v1133_v10 = vrot.slane %v1131_v63, 2  ;;  %v1142_v12 = vrot.slane %v1140_v1, 7  ;;  %v1077_v62 = vrot.slane %v1068_v52, 1 }
 0x29a   : > { %v1085_v63 = vrot.slane %v1069_v53, 6  ;;  %v1180_v1 = vrot.slane %v1112_v46, 7  ;;  %v1190_v60 = vmul.f32 %v2792_v25, %v1188_v2  ;;  %v1226_v52 = vmul.f32 %v3301_v58, %v1099_v22 }
 0x29b   : > { %v3318_v16 = vsub.f32 %v1121_v9, %v1124_v7  ;;  %v3320_v19 = vsub.f32 %v1130_v8, %v1133_v10  ;;  %v3322_v20 = vsub.f32 %v1139_v11, %v1142_v12  ;;  %v1073_v7 = vadd.f32 %v1071_v57, %v3276_v27 }
 0x29c   : > { %v1081_v8 = vrot.slane %v1074_v61, 7  ;;  %v1199_v9 = vmul.f32 %v2792_v25, %v1112_v46  ;;  %v1079_v10 = vadd.f32 %v1077_v62, %v3280_v30  ;;  %v1087_v34 = vadd.f32 %v1085_v63, %v3278_v29 }
 0x29d   : > { %v1146_v33 = vrot.slane %v3318_v16, 1  ;;  %v1150_v23 = vrot.slane %v3320_v19, 6  ;;  %v1158_v24 = vrot.slane %v3322_v20, 1  ;;  %v3335_v42 = vadd.f32 %v1074_v61, %v1073_v7 }
 0x29e   : > { %v1182_v47 = vmul.f32 %v1180_v1, %v1100_v21  ;;  %v1208_v11 = vmul.f32 %v3303_v59, %v1100_v21  ;;  %v1088_v12 = vrot.slane %v1074_v61, 6  ;;  %v1217_v46 = vmul.f32 %v2792_v25, %v3296_v50 }
 0x29f   : > { %v1152_v26 = vmul.f32 %v1150_v23, %v1099_v22  ;;  %v1160_v28 = vmul.f32 %v1158_v24, %v1100_v21  ;;  %v1148_v37 = vmul.f32 %v2792_v25, %v1146_v33  ;;  %v1193_v33 = vrot.slane %v1191_v6, 1 }
 0x2a0   : > { %v1083_v23 = vadd.f32 %v1081_v8, %v1079_v10  ;;  %v1201_v24 = vrot.slane %v1199_v9, 6  ;;  %v1219_v61 = vrot.slane %v1217_v46, 7  ;;  %v1090_v62 = vadd.f32 %v1088_v12, %v1087_v34 }
 0x2a1   : > { %v1154_v38 = vrot.slane %v1152_v26, 2  ;;  %v1162_v48 = vrot.slane %v1160_v28, 1  ;;  %v1205_v26 = vrot.slane %v3296_v50, 6  ;;  %v1223_v28 = vrot.slane %v3303_v59, 1 }
 0x2a2   : > { %v1216_v7 = vmul.f32 %v1214_v40, %v1100_v21  ;;  %v1195_v9 = vsub.f32 %v1190_v60, %v1193_v33  ;;  %v1246_v2 = vrot.slane %v3335_v42, 7  ;;  %v1258_v34 = vrot.slane %v1083_v23, 1 }
 0x2a3   : > { %v1156_v44 = vadd.f32 %v1154_v38, %v1148_v37  ;;  %v1185_v37 = vrot.slane %v1183_v35, 1  ;;  %v1198_v38 = vmul.f32 %v1196_v32, %v1099_v22  ;;  %v1207_v1 = vmul.f32 %v1205_v26, %v1099_v22 }
 0x2a4   : > { %v1225_v50 = vmul.f32 %v2792_v25, %v1223_v28  ;;  %v1228_v35 = vrot.slane %v1226_v52, 2  ;;  %v1221_v58 = vsub.f32 %v1216_v7, %v1219_v61  ;;  %v1263_v12 = vrot.slane %v1090_v62, 1 }
 0x2a5   : > { %v1164_v56 = vadd.f32 %v1162_v48, %v1156_v44  ;;  %v1210_v48 = vrot.slane %v1208_v11, 7  ;;  %v1203_v63 = vsub.f32 %v1198_v38, %v1201_v24  ;;  %v1187_v59 = vsub.f32 %v1182_v47, %v1185_v37 }
 0x2a6   : > { %v1270_v46 = vrot.slane %v3335_v42, 6  ;;  %v1273_v33 = vrot.slane %v1083_v23, 7  ;;  %v1277_v24 = vrot.slane %v1090_v62, 2 }
 0x2a7   : > { %2885 = vrcp.f32 %v1164_v56  ;;  %v1176_v44 = vand.u32 2147483648, %v1164_v56  ;;  %v1174_v57 = vand.u32 2147483647, %v1164_v56  ;;  %vm1170_vm15 = vweird.f32 %v1164_v56 }
 0x2a8   : > { %v1212_v10 = vsub.f32 %v1207_v1, %v1210_v48 }
 0x2a9   : > { %v1177_v8 = vor.u32 1.1754944e-38, %v1176_v44  ;;  %vm1175_vm3 = vcmp.eq.f32.partialorder %v1174_v57, 8.507059e+37 }
 0x2ad   : > { %v2886_v36 = vpop.eup %2885 }
 0x2ae   : > { %v1166_v14 = vmul.f32 %v2886_v36, %v1164_v56  ;;  %vm1171_vm14 = vweird.f32 %v2886_v36 }
 0x2af   : > { %vm1172_vm2 = vmor %vm1170_vm15, %vm1171_vm14 }
 0x2b0   : > { %v1167_v45 = vsub.f32 1.0, %v1166_v14  ;;  %v1230_v14 = vsub.f32 %v1225_v50, %v1228_v35 }
 0x2b2   : > { %v1168_v53 = vmul.f32 %v2886_v36, %v1167_v45 }
 0x2b4   : > { %v1169_v6 = vadd.f32 %v2886_v36, %v1168_v53 }
 0x2b6   : > { %v1173_v32 = vsel %vm1172_vm2, %v2886_v36, %v1169_v6 }
 0x2b7   : > { %v1178_v11 = vsel %vm1175_vm3, %v1177_v8, %v1173_v32 }
 0x2b8   : > { %v1232_v22 = vrot.slane %v1178_v11, 7  ;;  %v1236_v25 = vrot.slane %v1178_v11, 6  ;;  %v1239_v56 = vmul.f32 %v1178_v11, %v3320_v19  ;;  %v1240_v47 = vmul.f32 %v1195_v9, %v1178_v11 }
 0x2b9   : > { %v1244_v21 = vmul.f32 %v1230_v14, %v1178_v11 }
 0x2ba   : > { %v1234_v36 = vmul.f32 %v1232_v22, %v3318_v16  ;;  %v1235_v26 = vmul.f32 %v1232_v22, %v1187_v59  ;;  %v1238_v28 = vmul.f32 %v1236_v25, %v1212_v10  ;;  %v1241_v45 = vmul.f32 %v1232_v22, %v1221_v58 }
 0x2bb   : > { %v1242_v37 = vmul.f32 %v1236_v25, %v3322_v20  ;;  %v1243_v38 = vmul.f32 %v1236_v25, %v1203_v63  ;;  %v1256_v40 = vmul.f32 %v1239_v56, %v3335_v42  ;;  %v1260_v44 = vmul.f32 %v1258_v34, %v1240_v47 }
 0x2bc   : > { %v1248_v60 = vmul.f32 %v1246_v2, %v1234_v36  ;;  %v1249_v48 = vmul.f32 %v1235_v26, %v1083_v23  ;;  %v1251_v19 = vmul.f32 %v1238_v28, %v1090_v62  ;;  %v1265_v52 = vmul.f32 %v1263_v12, %v1241_v45 }
 0x2bd   : > { %v1272_v53 = vmul.f32 %v1270_v46, %v1242_v37  ;;  %v1275_v57 = vmul.f32 %v1273_v33, %v1243_v38  ;;  %v1279_v61 = vmul.f32 %v1277_v24, %v1244_v21  ;;  %v1261_v6 = vadd.f32 %v1260_v44, %v1256_v40 }
 0x2be   : > { %v1250_v1 = vadd.f32 %v1249_v48, %v1248_v60  ;;  %v1253_v50 = vrot.slane %v1251_v19, 1  ;;  %v1267_v16 = vrot.slane %v1265_v52, 1 }
 0x2bf   : > { %v1276_v59 = vadd.f32 %v1275_v57, %v1272_v53  ;;  %v1281_v7 = vrot.slane %v1279_v61, 6 }
 0x2c0   : > { %v1255_v8 = vadd.f32 %v1253_v50, %v1250_v1  ;;  %v1269_v9 = vadd.f32 %v1267_v16, %v1261_v6 }
 0x2c1   : > { %v1283_v20 = vadd.f32 %v1281_v7, %v1276_v59 }
 0x2c2   : > { %v3350_v63 = vsub.f32 0.0, %v1255_v8  ;;  %v3352_v42 = vsub.f32 0.0, %v1269_v9 }
 0x2c3   : > { %v3354_v10 = vsub.f32 0.0, %v1283_v20 }
 0x2c4   : > { %v1288_v23 = vrot.slane %v3350_v63, 1  ;;  %v1292_v62 = vrot.slane %v3352_v42, 7  ;;  %v1308_v35 = vrot.slane %v3352_v42, 6  ;;  %v1325_v46 = vmul.f32 %v3352_v42, %v3276_v27 }
 0x2c5   : > { %v1318_v32 = vrot.slane %v3354_v10, 2  ;;  %v1299_v2 = vmul.f32 %v3354_v10, %v3278_v29  ;;  %v1305_v34 = vrot.slane %v3354_v10, 1  ;;  %v1315_v28 = vrot.slane %v3350_v63, 7 }
 0x2c6   : > { %v1294_v58 = vmul.f32 %v1292_v62, %v3280_v30  ;;  %v1290_v11 = vmul.f32 %v1288_v23, %v3276_v27  ;;  %v1310_v12 = vmul.f32 %v1308_v35, %v3278_v29  ;;  %v1383_v37 = vrot.slane %v1325_v46, 6 }
 0x2c7   : > { %v1320_v22 = vmul.f32 %v1318_v32, %v3276_v27  ;;  %v1301_v56 = vrot.slane %v1299_v2, 2  ;;  %v1307_v21 = vmul.f32 %v1305_v34, %v3280_v30  ;;  %v1317_v52 = vmul.f32 %v1315_v28, %v3278_v29 }
 0x2c8   : > { %v1296_v14 = vrot.slane %v1294_v58, 1  ;;  %v1389_v33 = vrot.slane %v1310_v12, 2  ;;  %v1326_v53 = vmul.f32 %v3350_v63, %v3280_v30  ;;  %v3393_v1 = vadd.f32 %v1383_v37, %v3278_v29 }
 0x2c9   : > { %v1392_v24 = vrot.slane %v1320_v22, 7  ;;  %v1396_v44 = vrot.slane %v1307_v21, 1  ;;  %v1379_v23 = vrot.slane %v1317_v52, 1  ;;  %v1312_v28 = vrot.slane %v1310_v12, 1 }
 0x2ca   : > { %v1298_v25 = vadd.f32 %v1296_v14, %v1290_v11  ;;  %v3376_v38 = vadd.f32 %v1389_v33, %v3289_v43  ;;  %v1375_v20 = vrot.slane %v1326_v53, 7  ;;  %v1322_v14 = vrot.slane %v1320_v22, 6 }
 0x2cb   : > { %v3379_v40 = vadd.f32 %v1392_v24, %v3286_v39  ;;  %v3384_v48 = vadd.f32 %v1396_v44, %v3276_v27  ;;  %v1328_v34 = vrot.slane %v1326_v53, 1  ;;  %v3418_v37 = vadd.f32 %v1379_v23, %v3280_v30 }
 0x2cc   : > { %v3367_v47 = vadd.f32 %v1301_v56, %v1298_v25 }
 0x2cd   : > { %v1412_v57 = vrot.slane %v3379_v40, 1  ;;  %v1406_v6 = vmul.f32 %v3384_v48, %v3376_v38  ;;  %v1421_v16 = vrot.slane %v3384_v48, 6  ;;  %v1330_v53 = vsub.f32 %v1325_v46, %v1328_v34 }
 0x2ce   : > { %v1336_v36 = vrot.slane %v3367_v47, 7  ;;  %v1366_v26 = vrot.slane %v3367_v47, 6  ;;  %v1373_v25 = vadd.f32 %v3367_v47, %v1290_v11  ;;  %v1352_v12 = vmul.f32 %v3367_v47, %v3352_v42 }
 0x2cf   : > { %v1423_v9 = vmul.f32 %v1421_v16, %v3393_v1  ;;  %v1414_v62 = vmul.f32 %v1412_v57, %v3376_v38  ;;  %v1408_v32 = vrot.slane %v1406_v6, 7  ;;  %v1314_v6 = vsub.f32 %v1307_v21, %v1312_v28 }
 0x2d0   : > { %v1387_v45 = vadd.f32 %v1336_v36, %v1294_v58  ;;  %v1400_v19 = vadd.f32 %v1366_v26, %v1299_v2  ;;  %v2795_v11 = vadd.f32 -800.0, %v1373_v25  ;;  %v1368_v46 = vmul.f32 %v1366_v26, %v3354_v10 }
 0x2d1   : > { %v1357_v21 = vmul.f32 800.0, %v3352_v42  ;;  %v1475_v28 = vmul.f32 %v3379_v40, %v3418_v37 }
 0x2d2   : > { %v3381_v60 = vadd.f32 -800.0, %v1387_v45  ;;  %v3395_v50 = vadd.f32 -2000.0, %v1400_v19  ;;  %v3415_v45 = vadd.f32 %v1375_v20, %v3316_v13  ;;  %v1324_v19 = vsub.f32 %v1317_v52, %v1322_v14 }
 0x2d3   : > { %v1354_v52 = vrot.slane %v1352_v12, 7  ;;  %v1359_v26 = vrot.slane %v1357_v21, 7 }
 0x2d4   : > { %v1424_v61 = vmul.f32 %v3381_v60, %v3379_v40  ;;  %v1403_v7 = vrot.slane %v3395_v50, 1  ;;  %v1415_v8 = vmul.f32 %v3395_v50, %v3393_v1 }
 0x2d6   : > { %v1426_v59 = vrot.slane %v1424_v61, 7  ;;  %v1405_v35 = vmul.f32 %v3381_v60, %v1403_v7  ;;  %v1417_v58 = vrot.slane %v1415_v8, 2  ;;  %v1338_v7 = vmul.f32 %v1336_v36, %v3350_v63 }
 0x2d7   : > { %v1349_v8 = vrot.slane %v1324_v19, 1  ;;  %v1343_v36 = vmul.f32 800.0, %v3350_v63 }
 0x2d8   : > { %v3406_v2 = vsub.f32 %v1423_v9, %v1426_v59  ;;  %v3409_v56 = vsub.f32 %v1405_v35, %v1408_v32  ;;  %v3411_v33 = vsub.f32 %v1414_v62, %v1417_v58  ;;  %v1363_v9 = vrot.slane %v1330_v53, 6 }
 0x2d9   : > { %v1332_v62 = vrot.slane %v1314_v6, 1  ;;  %v1340_v32 = vrot.slane %v1338_v7, 1  ;;  %v1351_v58 = vadd.f32 %v1349_v8, %v3280_v30  ;;  %v1345_v19 = vrot.slane %v1343_v36, 1 }
 0x2da   : > { %v1442_v24 = vrot.slane %v3406_v2, 1  ;;  %v1430_v44 = vrot.slane %v3409_v56, 1  ;;  %v1434_v22 = vrot.slane %v3411_v33, 6  ;;  %v1365_v47 = vadd.f32 %v1363_v9, %v3278_v29 }
 0x2db   : > { %v1334_v14 = vadd.f32 %v1332_v62, %v3276_v27  ;;  %v1356_v34 = vadd.f32 %v1354_v52, %v1351_v58  ;;  %v1464_v53 = vrot.slane %v3384_v48, 7  ;;  %v1477_v9 = vrot.slane %v1475_v28, 1 }
 0x2dc   : > { %v1436_v57 = vmul.f32 %v1434_v22, %v3415_v45  ;;  %v1444_v61 = vmul.f32 %v1442_v24, %v3418_v37  ;;  %v1432_v16 = vmul.f32 %v2795_v11, %v1430_v44  ;;  %v1369_v25 = vadd.f32 %v1368_v46, %v1365_v47 }
 0x2dd   : > { %v1342_v24 = vadd.f32 %v1340_v32, %v1334_v14  ;;  %v1370_v44 = vmul.f32 2000.0, %v3354_v10  ;;  %v1467_v22 = vmul.f32 %v3395_v50, %v3415_v45  ;;  %v3441_v12 = vsub.f32 %v1356_v34, %v1359_v26 }
 0x2de   : > { %v1438_v59 = vrot.slane %v1436_v57, 2  ;;  %v1446_v23 = vrot.slane %v1444_v61, 1  ;;  %v1472_v57 = vrot.slane %v3395_v50, 2  ;;  %v1483_v61 = vmul.f32 %v2795_v11, %v3384_v48 }
 0x2df   : > { %v1347_v7 = vsub.f32 %v1342_v24, %v1345_v19  ;;  %v1489_v62 = vrot.slane %v3376_v38, 6  ;;  %v1501_v50 = vmul.f32 %v2795_v11, %v3376_v38  ;;  %v1507_v48 = vrot.slane %v3381_v60, 1 }
 0x2e0   : > { %v1440_v20 = vadd.f32 %v1438_v59, %v1432_v16  ;;  %v3443_v16 = vsub.f32 %v1369_v25, %v1370_v44  ;;  %v1492_v59 = vmul.f32 %v3381_v60, %v3418_v37  ;;  %v1466_v46 = vmul.f32 %v1464_v53, %v3418_v37 }
 0x2e1   : > { %v1474_v32 = vmul.f32 %v2795_v11, %v1472_v57  ;;  %v1485_v58 = vrot.slane %v1483_v61, 6  ;;  %v1498_v14 = vrot.slane %v3393_v1, 1  ;;  %v1510_v36 = vmul.f32 %v3393_v1, %v3415_v45 }
 0x2e2   : > { %v1448_v35 = vadd.f32 %v1446_v23, %v1440_v20  ;;  %v1480_v20 = vrot.slane %v3379_v40, 7  ;;  %v1469_v23 = vrot.slane %v1467_v22, 1  ;;  %v1494_v47 = vrot.slane %v1492_v59, 7 }
 0x2e3   : > { %v1491_v60 = vmul.f32 %v1489_v62, %v3415_v45  ;;  %v1503_v24 = vrot.slane %v1501_v50, 7  ;;  %v1509_v28 = vmul.f32 %v2795_v11, %v1507_v48  ;;  %v1479_v44 = vsub.f32 %v1474_v32, %v1477_v9 }
 0x2e4   : > { %2887 = vrcp.f32 %v1448_v35  ;;  %v1460_v21 = vand.u32 2147483648, %v1448_v35  ;;  %v1458_v34 = vand.u32 2147483647, %v1448_v35  ;;  %v1482_v25 = vmul.f32 %v1480_v20, %v3415_v45 }
 0x2e5   : > { %v1471_v38 = vsub.f32 %v1466_v46, %v1469_v23  ;;  %vm1454_vm6 = vweird.f32 %v1448_v35  ;;  %v1496_v53 = vsub.f32 %v1491_v60, %v1494_v47  ;;  %v1500_v57 = vmul.f32 %v1498_v14, %v3418_v37 }
 0x2e6   : > { %v1487_v22 = vsub.f32 %v1482_v25, %v1485_v58  ;;  %v1461_v19 = vor.u32 1.1754944e-38, %v1460_v21  ;;  %v1512_v1 = vrot.slane %v1510_v36, 2  ;;  %vm1459_vm8 = vcmp.eq.f32.partialorder %v1458_v34, 8.507059e+37 }
 0x2e7   : > { %v1530_v59 = vrot.slane %v1347_v7, 7  ;;  %v1505_v23 = vsub.f32 %v1500_v57, %v1503_v24  ;;  %v1547_v11 = vrot.slane %v3443_v16, 1  ;;  %v1557_v37 = vrot.slane %v3441_v12, 7 }
 0x2e8   : > { %v1514_v45 = vsub.f32 %v1509_v28, %v1512_v1 }
 0x2ea   : > { %v2888_v6 = vpop.eup %2887 }
 0x2eb   : > { %v1450_v8 = vmul.f32 %v2888_v6, %v1448_v35  ;;  %vm1455_vm4 = vweird.f32 %v2888_v6 }
 0x2ec   : > { %vm1456_vm7 = vmor %vm1454_vm6, %vm1455_vm4 }
 0x2ed   : > { %v1451_v52 = vsub.f32 1.0, %v1450_v8  ;;  %v1542_v8 = vrot.slane %v3441_v12, 1 }
 0x2ef   : > { %v1452_v40 = vmul.f32 %v2888_v6, %v1451_v52  ;;  %v1554_v52 = vrot.slane %v1347_v7, 6 }
 0x2f1   : > { %v1453_v26 = vadd.f32 %v2888_v6, %v1452_v40 }
 0x2f3   : > { %v1457_v61 = vsel %vm1456_vm7, %v2888_v6, %v1453_v26  ;;  %v1561_v6 = vrot.slane %v3443_v16, 2 }
 0x2f4   : > { %v1462_v20 = vsel %vm1459_vm8, %v1461_v19, %v1457_v61 }
 0x2f5   : > { %v1516_v62 = vrot.slane %v1462_v20, 7  ;;  %v1520_v35 = vrot.slane %v1462_v20, 6  ;;  %v1523_v9 = vmul.f32 %v1462_v20, %v3411_v33  ;;  %v1524_v50 = vmul.f32 %v1479_v44, %v1462_v20 }
 0x2f6   : > { %v1528_v48 = vmul.f32 %v1514_v45, %v1462_v20 }
 0x2f7   : > { %v1518_v46 = vmul.f32 %v1516_v62, %v3409_v56  ;;  %v1519_v32 = vmul.f32 %v1516_v62, %v1471_v38  ;;  %v1522_v58 = vmul.f32 %v1520_v35, %v1496_v53  ;;  %v1525_v21 = vmul.f32 %v1516_v62, %v1505_v23 }
 0x2f8   : > { %v1526_v47 = vmul.f32 %v1520_v35, %v3406_v2  ;;  %v1527_v14 = vmul.f32 %v1520_v35, %v1487_v22  ;;  %v1540_v36 = vmul.f32 %v1523_v9, %v1347_v7  ;;  %v1544_v40 = vmul.f32 %v1542_v8, %v1524_v50 }
 0x2f9   : > { %v1532_v34 = vmul.f32 %v1530_v59, %v1518_v46  ;;  %v1533_v33 = vmul.f32 %v1519_v32, %v3441_v12  ;;  %v1535_v25 = vmul.f32 %v1522_v58, %v3443_v16  ;;  %v1549_v60 = vmul.f32 %v1547_v11, %v1525_v21 }
 0x2fa   : > { %v1556_v24 = vmul.f32 %v1554_v52, %v1526_v47  ;;  %v1559_v28 = vmul.f32 %v1557_v37, %v1527_v14  ;;  %v1563_v26 = vmul.f32 %v1561_v6, %v1528_v48  ;;  %v1545_v56 = vadd.f32 %v1544_v40, %v1540_v36 }
 0x2fb   : > { %v1534_v44 = vadd.f32 %v1533_v33, %v1532_v34  ;;  %v1537_v19 = vrot.slane %v1535_v25, 1  ;;  %v1551_v38 = vrot.slane %v1549_v60, 1 }
 0x2fc   : > { %v1560_v53 = vadd.f32 %v1559_v28, %v1556_v24  ;;  %v1565_v57 = vrot.slane %v1563_v26, 6 }
 0x2fd   : > { %v1539_v1 = vadd.f32 %v1537_v19, %v1534_v44  ;;  %v1553_v2 = vadd.f32 %v1551_v38, %v1545_v56 }
 0x2fe   : > { %v1567_v22 = vadd.f32 %v1565_v57, %v1560_v53 }
 0x2ff   : > { %v3468_v7 = vsub.f32 %v3350_v63, %v1539_v1  ;;  %v3471_v12 = vsub.f32 %v3352_v42, %v1553_v2 }
 0x300   : > { %v3474_v16 = vsub.f32 %v3354_v10, %v1567_v22 }
 0x301   : > { %v1572_v61 = vrot.slane %v3468_v7, 1  ;;  %v1576_v59 = vrot.slane %v3471_v12, 7  ;;  %v1592_v8 = vrot.slane %v3471_v12, 6  ;;  %v1609_v52 = vmul.f32 %v3471_v12, %v3276_v27 }
 0x302   : > { %v1602_v20 = vrot.slane %v3474_v16, 2  ;;  %v1583_v63 = vmul.f32 %v3474_v16, %v3278_v29  ;;  %v1589_v11 = vrot.slane %v3474_v16, 1  ;;  %v1599_v58 = vrot.slane %v3468_v7, 7 }
 0x303   : > { %v1578_v23 = vmul.f32 %v1576_v59, %v3280_v30  ;;  %v1574_v45 = vmul.f32 %v1572_v61, %v3276_v27  ;;  %v1594_v10 = vmul.f32 %v1592_v8, %v3278_v29  ;;  %v1667_v47 = vrot.slane %v1609_v52, 6 }
 0x304   : > { %v1604_v62 = vmul.f32 %v1602_v20, %v3276_v27  ;;  %v1585_v9 = vrot.slane %v1583_v63, 2  ;;  %v1591_v48 = vmul.f32 %v1589_v11, %v3280_v30  ;;  %v1601_v60 = vmul.f32 %v1599_v58, %v3278_v29 }
 0x305   : > { %v1580_v42 = vrot.slane %v1578_v23, 1  ;;  %v1673_v37 = vrot.slane %v1594_v10, 2  ;;  %v1610_v24 = vmul.f32 %v3468_v7, %v3280_v30 }
 0x306   : > { %v1676_v6 = vrot.slane %v1604_v62, 7  ;;  %v1680_v40 = vrot.slane %v1591_v48, 1  ;;  %v1663_v2 = vrot.slane %v1601_v60, 1 }
 0x307   : > { %v1582_v35 = vadd.f32 %v1580_v42, %v1574_v45  ;;  %v3496_v14 = vadd.f32 %v1673_v37, %v3289_v43  ;;  %v1659_v1 = vrot.slane %v1610_v24, 7  ;;  %v1596_v37 = vrot.slane %v1594_v10, 1 }
 0x308   : > { %v3499_v36 = vadd.f32 %v1676_v6, %v3286_v39  ;;  %v3504_v33 = vadd.f32 %v1680_v40, %v3276_v27  ;;  %v3513_v39 = vadd.f32 %v1667_v47, %v3278_v29  ;;  %v3538_v58 = vadd.f32 %v1663_v2, %v3280_v30 }
 0x309   : > { %v3487_v50 = vadd.f32 %v1585_v9, %v1582_v35  ;;  %v3535_v6 = vadd.f32 %v1659_v1, %v3316_v13 }
 0x30a   : > { %v1696_v28 = vrot.slane %v3499_v36, 1  ;;  %v1690_v44 = vmul.f32 %v3504_v33, %v3496_v14  ;;  %v1705_v19 = vrot.slane %v3504_v33, 6 }
 0x30b   : > { %v1620_v46 = vrot.slane %v3487_v50, 7  ;;  %v1650_v32 = vrot.slane %v3487_v50, 6  ;;  %v1657_v42 = vadd.f32 %v3487_v50, %v1574_v45  ;;  %v1636_v10 = vmul.f32 %v3487_v50, %v3471_v12 }
 0x30c   : > { %v1707_v57 = vmul.f32 %v1705_v19, %v3513_v39  ;;  %v1698_v22 = vmul.f32 %v1696_v28, %v3496_v14  ;;  %v1692_v59 = vrot.slane %v1690_v44, 7  ;;  %v1598_v28 = vsub.f32 %v1591_v48, %v1596_v37 }
 0x30d   : > { %v1671_v21 = vadd.f32 %v1620_v46, %v1578_v23  ;;  %v1684_v25 = vadd.f32 %v1650_v32, %v1583_v63  ;;  %v1606_v23 = vrot.slane %v1604_v62, 6  ;;  %v1612_v63 = vrot.slane %v1610_v24, 1 }
 0x30e   : > { %v2798_v45 = vadd.f32 -800.0, %v1657_v42  ;;  %v1622_v44 = vmul.f32 %v1620_v46, %v3468_v7  ;;  %v1641_v48 = vmul.f32 800.0, %v3471_v12  ;;  %v1627_v46 = vmul.f32 800.0, %v3468_v7 }
 0x30f   : > { %v3501_v34 = vadd.f32 -800.0, %v1671_v21  ;;  %v3515_v26 = vadd.f32 -2000.0, %v1684_v25  ;;  %v1608_v47 = vsub.f32 %v1601_v60, %v1606_v23  ;;  %v1614_v40 = vsub.f32 %v1609_v52, %v1612_v63 }
 0x310   : > { %v1638_v60 = vrot.slane %v1636_v10, 7  ;;  %v1652_v52 = vmul.f32 %v1650_v32, %v3474_v16  ;;  %v1624_v2 = vrot.slane %v1622_v44, 1  ;;  %v1759_v63 = vmul.f32 %v3499_v36, %v3538_v58 }
 0x311   : > { %v1708_v43 = vmul.f32 %v3501_v34, %v3499_v36  ;;  %v1687_v38 = vrot.slane %v3515_v26, 1  ;;  %v1699_v53 = vmul.f32 %v3515_v26, %v3513_v39  ;;  %v1633_v19 = vrot.slane %v1608_v47, 1 }
 0x312   : > { %v1643_v32 = vrot.slane %v1641_v48, 7  ;;  %v1654_v42 = vmul.f32 2000.0, %v3474_v16  ;;  %v1756_v37 = vrot.slane %v3515_v26, 2  ;;  %v1764_v10 = vrot.slane %v3499_v36, 7 }
 0x313   : > { %v1710_v56 = vrot.slane %v1708_v43, 7  ;;  %v1689_v61 = vmul.f32 %v3501_v34, %v1687_v38  ;;  %v1701_v8 = vrot.slane %v1699_v53, 2 }
 0x315   : > { %v3526_v20 = vsub.f32 %v1707_v57, %v1710_v56  ;;  %v3529_v11 = vsub.f32 %v1689_v61, %v1692_v59  ;;  %v3531_v35 = vsub.f32 %v1698_v22, %v1701_v8  ;;  %v1647_v56 = vrot.slane %v1614_v40, 6 }
 0x316   : > { %v1616_v57 = vrot.slane %v1598_v28, 1  ;;  %v1635_v22 = vadd.f32 %v1633_v19, %v3280_v30  ;;  %v1751_v30 = vmul.f32 %v3515_v26, %v3535_v6  ;;  %v1776_v40 = vmul.f32 %v3501_v34, %v3538_v58 }
 0x317   : > { %v1726_v9 = vrot.slane %v3526_v20, 1  ;;  %v1714_v21 = vrot.slane %v3529_v11, 1  ;;  %v1718_v62 = vrot.slane %v3531_v35, 6  ;;  %v1649_v50 = vadd.f32 %v1647_v56, %v3278_v29 }
 0x318   : > { %v1618_v61 = vadd.f32 %v1616_v57, %v3276_v27  ;;  %v1640_v59 = vadd.f32 %v1638_v60, %v1635_v22  ;;  %v1748_v29 = vrot.slane %v3504_v33, 7  ;;  %v1767_v27 = vmul.f32 %v2798_v45, %v3504_v33 }
 0x319   : > { %v1720_v25 = vmul.f32 %v1718_v62, %v3535_v6  ;;  %v1728_v24 = vmul.f32 %v1726_v9, %v3538_v58  ;;  %v1716_v13 = vmul.f32 %v2798_v45, %v1714_v21  ;;  %v1653_v8 = vadd.f32 %v1652_v52, %v1649_v50 }
 0x31a   : > { %v1626_v23 = vadd.f32 %v1624_v2, %v1618_v61  ;;  %v1629_v9 = vrot.slane %v1627_v46, 1  ;;  %v3561_v62 = vsub.f32 %v1640_v59, %v1643_v32  ;;  %v1761_v28 = vrot.slane %v1759_v63, 1 }
 0x31b   : > { %v1722_v43 = vrot.slane %v1720_v25, 2  ;;  %v1730_v53 = vrot.slane %v1728_v24, 1  ;;  %v3563_v47 = vsub.f32 %v1653_v8, %v1654_v42  ;;  %v1785_v26 = vmul.f32 %v2798_v45, %v3496_v14 }
 0x31c   : > { %v1631_v25 = vsub.f32 %v1626_v23, %v1629_v9  ;;  %v1791_v33 = vrot.slane %v3501_v34, 1  ;;  %v1750_v19 = vmul.f32 %v1748_v29, %v3538_v58  ;;  %v1758_v56 = vmul.f32 %v2798_v45, %v1756_v37 }
 0x31d   : > { %v1724_v38 = vadd.f32 %v1722_v43, %v1716_v13  ;;  %v1753_v13 = vrot.slane %v1751_v30, 1  ;;  %v1773_v43 = vrot.slane %v3496_v14, 6  ;;  %v1778_v57 = vrot.slane %v1776_v40, 7 }
 0x31e   : > { %v1782_v60 = vrot.slane %v3513_v39, 1  ;;  %v1794_v52 = vmul.f32 %v3513_v39, %v3535_v6  ;;  %v1766_v22 = vmul.f32 %v1764_v10, %v3535_v6  ;;  %v1787_v48 = vrot.slane %v1785_v26, 7 }
 0x31f   : > { %v1732_v1 = vadd.f32 %v1730_v53, %v1724_v38  ;;  %v1769_v38 = vrot.slane %v1767_v27, 6  ;;  %v1755_v14 = vsub.f32 %v1750_v19, %v1753_v13  ;;  %v1775_v34 = vmul.f32 %v1773_v43, %v3535_v6 }
 0x320   : > { %v1793_v50 = vmul.f32 %v2798_v45, %v1791_v33  ;;  %v1763_v46 = vsub.f32 %v1758_v56, %v1761_v28  ;;  %v1784_v63 = vmul.f32 %v1782_v60, %v3538_v58  ;;  %v1796_v39 = vrot.slane %v1794_v52, 2 }
 0x321   : > { %2889 = vrcp.f32 %v1732_v1  ;;  %v1744_v53 = vand.u32 2147483648, %v1732_v1  ;;  %v1742_v2 = vand.u32 2147483647, %v1732_v1  ;;  %vm1738_vm12 = vweird.f32 %v1732_v1 }
 0x322   : > { %v1771_v59 = vsub.f32 %v1766_v22, %v1769_v38  ;;  %v1780_v23 = vsub.f32 %v1775_v34, %v1778_v57  ;;  %v1814_v42 = vrot.slane %v1631_v25, 7  ;;  %v1826_v30 = vrot.slane %v3561_v62, 1 }
 0x323   : > { %v1745_v8 = vor.u32 1.1754944e-38, %v1744_v53  ;;  %vm1743_vm14 = vcmp.eq.f32.partialorder %v1742_v2, 8.507059e+37  ;;  %v1789_v29 = vsub.f32 %v1784_v63, %v1787_v48  ;;  %v1798_v6 = vsub.f32 %v1793_v50, %v1796_v39 }
 0x324   : > { %v1831_v45 = vrot.slane %v3563_v47, 1  ;;  %v1838_v28 = vrot.slane %v1631_v25, 6  ;;  %v1841_v58 = vrot.slane %v3561_v62, 7 }
 0x327   : > { %v2890_v21 = vpop.eup %2889 }
 0x328   : > { %v1734_v24 = vmul.f32 %v2890_v21, %v1732_v1  ;;  %vm1739_vm11 = vweird.f32 %v2890_v21 }
 0x329   : > { %vm1740_vm13 = vmor %vm1738_vm12, %vm1739_vm11 }
 0x32a   : > { %v1735_v44 = vsub.f32 1.0, %v1734_v24 }
 0x32c   : > { %v1736_v36 = vmul.f32 %v2890_v21, %v1735_v44 }
 0x32e   : > { %v1737_v61 = vadd.f32 %v2890_v21, %v1736_v36 }
 0x330   : > { %v1741_v32 = vsel %vm1740_vm13, %v2890_v21, %v1737_v61  ;;  %v1845_v21 = vrot.slane %v3563_v47, 2 }
 0x331   : > { %v1746_v9 = vsel %vm1743_vm14, %v1745_v8, %v1741_v32  ;;  %v2534_v8 = vrot.slane %v3265_v15, 3 }
 0x332   : > { %v1800_v37 = vrot.slane %v1746_v9, 7  ;;  %v1804_v1 = vrot.slane %v1746_v9, 6  ;;  %v1807_v27 = vmul.f32 %v1746_v9, %v3531_v35  ;;  %v1808_v40 = vmul.f32 %v1763_v46, %v1746_v9 }
 0x333   : > { %v1812_v24 = vmul.f32 %v1798_v6, %v1746_v9  ;;  %v2484_v46 = vrot.slane %v3267_v17, 3 }
 0x334   : > { %v1802_v10 = vmul.f32 %v1800_v37, %v3529_v11  ;;  %v1803_v13 = vmul.f32 %v1800_v37, %v1755_v14  ;;  %v1806_v43 = vmul.f32 %v1804_v1, %v1780_v23  ;;  %v1809_v26 = vmul.f32 %v1800_v37, %v1789_v29 }
 0x335   : > { %v1810_v33 = vmul.f32 %v1804_v1, %v3526_v20  ;;  %v1811_v44 = vmul.f32 %v1804_v1, %v1771_v59  ;;  %v1824_v19 = vmul.f32 %v1807_v27, %v1631_v25  ;;  %v1828_v56 = vmul.f32 %v1826_v30, %v1808_v40 }
 0x336   : > { %v1816_v38 = vmul.f32 %v1814_v42, %v1802_v10  ;;  %v1817_v35 = vmul.f32 %v1803_v13, %v3561_v62  ;;  %v1819_v53 = vmul.f32 %v1806_v43, %v3563_v47  ;;  %v1833_v57 = vmul.f32 %v1831_v45, %v1809_v26 }
 0x337   : > { %v1840_v60 = vmul.f32 %v1838_v28, %v1810_v33  ;;  %v1843_v52 = vmul.f32 %v1841_v58, %v1811_v44  ;;  %v1847_v36 = vmul.f32 %v1845_v21, %v1812_v24  ;;  %v1829_v11 = vadd.f32 %v1828_v56, %v1824_v19 }
 0x338   : > { %v1818_v2 = vadd.f32 %v1817_v35, %v1816_v38  ;;  %v1821_v22 = vrot.slane %v1819_v53, 1  ;;  %v1835_v14 = vrot.slane %v1833_v57, 1  ;;  %v2493_v59 = vrot.slane %v3265_v15, 4 }
 0x339   : > { %v1844_v34 = vadd.f32 %v1843_v52, %v1840_v60  ;;  %v1849_v48 = vrot.slane %v1847_v36, 6  ;;  %v2568_v42 = vrot.slane %v3267_v17, 5  ;;  %v2488_v19 = vrot.slane %v3269_v18, 1 }
 0x33a   : > { %v1823_v50 = vadd.f32 %v1821_v22, %v1818_v2  ;;  %v1837_v20 = vadd.f32 %v1835_v14, %v1829_v11 }
 0x33b   : > { %v1851_v61 = vadd.f32 %v1849_v48, %v1844_v34 }
 0x33c   : > { %v3588_v25 = vsub.f32 %v3468_v7, %v1823_v50  ;;  %v3591_v62 = vsub.f32 %v3471_v12, %v1837_v20 }
 0x33d   : > { %v3594_v47 = vsub.f32 %v3474_v16, %v1851_v61 }
 0x33e   : > { %v3600_v23 = vsub.f32 0.0, %v3588_v25  ;;  %v3603_v63 = vsub.f32 0.0, %v3591_v62  ;;  %v1858_v7 = vmul.f32 %v3588_v25, %v3588_v25  ;;  %v1860_v12 = vmul.f32 %v3591_v62, %v3591_v62 }
 0x33f   : > { %v1855_v16 = vsub.f32 0.0, %v3594_v47  ;;  %v1865_v39 = vmul.f32 %v3594_v47, %v3594_v47  ;;  %v1881_v32 = vrot.slane %v3588_v25, 1  ;;  %v1898_v58 = vmul.f32 0.0, %v3594_v47 }
 0x340   : > { %v1859_v30 = vadd.f32 1.0, %v1858_v7  ;;  %v1862_v9 = vrot.slane %v1860_v12, 7  ;;  %v1873_v29 = vmul.f32 %v3603_v63, %v3591_v62  ;;  %v1890_v6 = vrot.slane %v3600_v23, 7 }
 0x341   : > { %v1867_v45 = vrot.slane %v1865_v39, 1  ;;  %v1871_v37 = vmul.f32 %v1855_v16, %v3594_v47  ;;  %v1878_v1 = vmul.f32 0.0, %v1855_v16  ;;  %v1883_v27 = vmul.f32 %v1881_v32, %v3591_v62 }
 0x342   : > { %v1864_v40 = vadd.f32 %v1862_v9, %v1859_v30  ;;  %v1875_v24 = vrot.slane %v1873_v29, 6  ;;  %v1892_v28 = vmul.f32 %v1890_v6, %v1855_v16  ;;  %v1901_v13 = vrot.slane %v3603_v63, 7 }
 0x343   : > { %v1879_v21 = vadd.f32 %v1878_v1, %v1878_v1  ;;  %v1885_v10 = vrot.slane %v1883_v27, 6  ;;  %v1908_v43 = vmul.f32 %v3600_v23, %v3588_v25  ;;  %v1888_v33 = vmul.f32 0.0, %v3591_v62 }
 0x344   : > { %v3623_v26 = vadd.f32 %v1867_v45, %v1864_v40  ;;  %v1894_v44 = vrot.slane %v1892_v28, 2  ;;  %v1877_v56 = vadd.f32 %v1875_v24, %v1871_v37  ;;  %v1899_v38 = vadd.f32 %v1898_v58, %v1898_v58 }
 0x345   : > { %v1903_v35 = vmul.f32 %v1901_v13, %v3600_v23  ;;  %v1914_v53 = vrot.slane %v3591_v62, 6  ;;  %v1887_v57 = vadd.f32 %v1885_v10, %v1879_v21  ;;  %v1917_v52 = vmul.f32 0.0, %v3600_v23 }
 0x346   : > { %2891 = vrcp.f32 %v3623_v26  ;;  %v1896_v60 = vadd.f32 %v1894_v44, %v1888_v33  ;;  %v1910_v2 = vrot.slane %v1908_v43, 7  ;;  %v1925_v11 = vrot.slane %v3594_v47, 1 }
 0x347   : > { %v1905_v36 = vrot.slane %v1903_v35, 7  ;;  %v1916_v22 = vmul.f32 %v1914_v53, %v3594_v47  ;;  %v1919_v34 = vrot.slane %v1917_v52, 7  ;;  %v1934_v48 = vrot.slane %v1855_v16, 2 }
 0x348   : > { %v1897_v14 = vadd.f32 %v1896_v60, %v1888_v33  ;;  %v1937_v50 = vmul.f32 0.0, %v3588_v25  ;;  %v1927_v61 = vmul.f32 %v1925_v11, %v3588_v25  ;;  %v1943_v7 = vrot.slane %v1908_v43, 1 }
 0x349   : > { %v1907_v20 = vadd.f32 %v1905_v36, %v1899_v38  ;;  %v1947_v12 = vmul.f32 2.0, %v1877_v56  ;;  %v1921_v39 = vadd.f32 %v1919_v34, %v1916_v22  ;;  %v1936_v32 = vmul.f32 %v1934_v48, %v3603_v63 }
 0x34a   : > { %v1939_v30 = vrot.slane %v1937_v50, 1  ;;  %v1950_v9 = vrot.slane %v3623_v26, 7  ;;  %v1912_v6 = vadd.f32 %v1910_v2, %v1871_v37  ;;  %v1923_v45 = vmul.f32 0.0, %v3603_v63 }
 0x34b   : > { %v1929_v1 = vrot.slane %v1927_v61, 1  ;;  %v1958_v27 = vmul.f32 2.0, %v1887_v57  ;;  %v1922_v24 = vadd.f32 %v1921_v39, %v1919_v34  ;;  %v1945_v58 = vadd.f32 %v1943_v7, %v1873_v29 }
 0x34c   : > { %v2892_v40 = vpop.eup %2891  ;;  %v1941_v28 = vadd.f32 %v1939_v30, %v1936_v32  ;;  %v1957_v21 = vmul.f32 2.0, %v1855_v16  ;;  %v1952_v13 = vadd.f32 %v1950_v9, %v1947_v12  ;;  %v1962_v33 = vmul.f32 2.0, %v1897_v14 }
 0x34d   : > { %v1931_v10 = vadd.f32 %v1929_v1, %v1923_v45  ;;  %v1954_v43 = vrot.slane %v2892_v40, 7  ;;  %v1967_v38 = vmul.f32 2.0, %v3594_v47  ;;  %v1968_v35 = vmul.f32 2.0, %v1907_v20 }
 0x34e   : > { %v1942_v44 = vadd.f32 %v1941_v28, %v1939_v30  ;;  %v1959_v56 = vadd.f32 %v1958_v27, %v1957_v21  ;;  %v1961_v60 = vmul.f32 2.0, %v3591_v62  ;;  %v1964_v57 = vrot.slane %v2892_v40, 1  ;;  %v3664_v28 = vld [vmem:[#allocation2 + $0x8] sm:$0xff] }
 0x34f   : > { %v1932_v53 = vadd.f32 %v1931_v10, %v1923_v45  ;;  %v3639_v37 = vmul.f32 %v1954_v43, %v1952_v13  ;;  %v1969_v36 = vadd.f32 %v1968_v35, %v1967_v38  ;;  %v1971_v29 = vmul.f32 2.0, %v1912_v6 }
 0x350   : > { %v3642_v52 = vmul.f32 %v1959_v56, %v1954_v43  ;;  %v1976_v16 = vmul.f32 2.0, %v1922_v24  ;;  %v1963_v2 = vadd.f32 %v1962_v33, %v1961_v60  ;;  %v1975_v22 = vmul.f32 2.0, %v3600_v23 }
 0x351   : > { %v1982_v11 = vmul.f32 2.0, %v3603_v63  ;;  %v1983_v14 = vmul.f32 2.0, %v1932_v53  ;;  %v3646_v34 = vmul.f32 %v1969_v36, %v1954_v43  ;;  %v1973_v47 = vadd.f32 %v1971_v29, %v1950_v9 }
 0x352   : > { %v1978_v48 = vrot.slane %v1976_v16, 1  ;;  %v1987_v50 = vmul.f32 2.0, %v1942_v44  ;;  %v1986_v62 = vmul.f32 2.0, %v3588_v25  ;;  %v1993_v61 = vmul.f32 2.0, %v1945_v58 }
 0x353   : > { %v1984_v20 = vadd.f32 %v1983_v14, %v1982_v11  ;;  %v1995_v7 = vrot.slane %v3623_v26, 1  ;;  %v3650_v12 = vmul.f32 %v1973_v47, %v1954_v43  ;;  %v2059_v23 = vrot.slane %v3639_v37, 4 }
 0x354   : > { %v1980_v39 = vadd.f32 %v1978_v48, %v1975_v22  ;;  %v1989_v32 = vrot.slane %v1987_v50, 7  ;;  %v3653_v30 = vmul.f32 %v1964_v57, %v1963_v2  ;;  %v2062_v9 = vrot.slane %v3646_v34, 3 }
 0x355   : > { %v3655_v63 = vmul.f32 %v1984_v20, %v1964_v57  ;;  %v2571_v6 = vrot.slane %v3269_v18, 2  ;;  %v1997_v1 = vadd.f32 %v1995_v7, %v1993_v61  ;;  %v2074_v26 = vrot.slane %v3642_v52, 4 }
 0x356   : > { %v3659_v45 = vmul.f32 %v2892_v40, %v1980_v39  ;;  %v1991_v25 = vadd.f32 %v1989_v32, %v1986_v62  ;;  %v2004_v27 = vrot.slane %v3646_v34, 6  ;;  %v2064_v24 = vmul.f32 %v2062_v9, %v3036_v5 }
 0x357   : > { %v2069_v58 = vmul.f32 %v3664_v28, %v3655_v63  ;;  %v2077_v21 = vrot.slane %v3650_v12, 3  ;;  %v3671_v13 = vmul.f32 %v1997_v1, %v1964_v57  ;;  %v2024_v43 = vrot.slane %v3650_v12, 6 }
 0x358   : > { %v3669_v10 = vmul.f32 %v2892_v40, %v1991_v25  ;;  %v2061_v33 = vmul.f32 %v2059_v23, %v3036_v5  ;;  %v2076_v44 = vmul.f32 %v2074_v26, %v3036_v5  ;;  %v2091_v38 = vrot.slane %v3653_v30, 2 }
 0x359   : > { %v2079_v56 = vmul.f32 %v2077_v21, %v3036_v5  ;;  %v2094_v35 = vrot.slane %v3659_v45, 2  ;;  %v2066_v53 = vrot.slane %v2064_v24, 1  ;;  %v2071_v60 = vrot.slane %v2069_v58, 2 }
 0x35a   : > { %v2106_v36 = vrot.slane %v3639_v37, 1  ;;  %v2109_v40 = vmul.f32 %v3664_v28, %v3646_v34  ;;  %v2084_v57 = vrot.slane %v3669_v10, 1  ;;  %v2114_v29 = vrot.slane %v3655_v63, 5 }
 0x35b   : > { %v2136_v16 = vrot.slane %v3653_v30, 7  ;;  %v2486_v2 = vmul.f32 %v2484_v46, %v3639_v37  ;;  %v2081_v22 = vrot.slane %v2079_v56, 1  ;;  %v2490_v11 = vmul.f32 %v2488_v19, %v3646_v34 }
 0x35c   : > { %v2495_v14 = vmul.f32 %v2493_v59, %v3655_v63  ;;  %v2531_v47 = vmul.f32 %v2484_v46, %v3642_v52  ;;  %v2532_v48 = vmul.f32 %v2488_v19, %v3650_v12  ;;  %v2536_v50 = vmul.f32 %v2534_v8, %v3669_v10 }
 0x35d   : > { %v2570_v20 = vmul.f32 %v2568_v42, %v3653_v30  ;;  %v2573_v62 = vmul.f32 %v2571_v6, %v3659_v45  ;;  %v2111_v61 = vrot.slane %v2109_v40, 1  ;;  %v2491_v7 = vadd.f32 %v2490_v11, %v2486_v2 }
 0x35e   : > { %v2497_v39 = vrot.slane %v2495_v14, 6  ;;  %v2578_v46 = vmul.f32 %v2493_v59, %v3671_v13  ;;  %v2533_v32 = vadd.f32 %v2532_v48, %v2531_v47  ;;  %v2538_v18 = vrot.slane %v2536_v50, 7 }
 0x35f   : > { %v2575_v19 = vrot.slane %v2573_v62, 1  ;;  %v2068_v23 = vadd.f32 %v2066_v53, %v2061_v33  ;;  %v2083_v8 = vadd.f32 %v2081_v22, %v2076_v44  ;;  %v2086_v25 = vmul.f32 %v3664_v28, %v2084_v57 }
 0x360   : > { %v3710_v9 = vadd.f32 %v2497_v39, %v2491_v7  ;;  %v2093_v17 = vmul.f32 %v2091_v38, %v3036_v5  ;;  %v3714_v42 = vadd.f32 %v2538_v18, %v2533_v32  ;;  %v2096_v1 = vmul.f32 %v2094_v35, %v3036_v5 }
 0x361   : > { %v2577_v6 = vadd.f32 %v2575_v19, %v2570_v20  ;;  %v2101_v15 = vmul.f32 %v3664_v28, %v3671_v13  ;;  %v2139_v59 = vrot.slane %v3659_v45, 7  ;;  %v2088_v26 = vrot.slane %v2086_v25, 2 }
 0x362   : > { %v2108_v24 = vmul.f32 %v3664_v28, %v2106_v36  ;;  %v2116_v58 = vmul.f32 %v3664_v28, %v2114_v29  ;;  %v2146_v21 = vrot.slane %v3671_v13, 5  ;;  %v3725_v44 = vadd.f32 %v2071_v60, %v2068_v23 }
 0x363   : > { %v3723_v33 = vadd.f32 %v2578_v46, %v2577_v6  ;;  %v2098_v56 = vrot.slane %v2096_v1, 1  ;;  %v3727_v38 = vadd.f32 %v2088_v26, %v2083_v8  ;;  %v2121_v40 = vrot.slane %v3642_v52, 1 }
 0x364   : > { %v2113_v35 = vadd.f32 %v2111_v61, %v2108_v24  ;;  %v2118_v53 = vrot.slane %v2116_v58, 2  ;;  %v2103_v2 = vrot.slane %v2101_v15, 2  ;;  %v2124_v36 = vmul.f32 %v3664_v28, %v3650_v12 }
 0x365   : > { %v2100_v57 = vadd.f32 %v2098_v56, %v2093_v17  ;;  %v2129_v29 = vrot.slane %v3669_v10, 6  ;;  %v2123_v11 = vmul.f32 %v3664_v28, %v2121_v40  ;;  %v2138_v60 = vmul.f32 %v3664_v28, %v2136_v16 }
 0x366   : > { %v3733_v22 = vadd.f32 %v2118_v53, %v2113_v35  ;;  %v2141_v14 = vmul.f32 %v3664_v28, %v2139_v59  ;;  %v2126_v48 = vrot.slane %v2124_v36, 1  ;;  %v2148_v20 = vmul.f32 %v3664_v28, %v2146_v21 }
 0x367   : > { %v3738_v47 = vadd.f32 %v2103_v2, %v2100_v57  ;;  %v2131_v50 = vmul.f32 %v3664_v28, %v2129_v29  ;;  %v2218_v61 = vrot.slane %v3725_v44, 6  ;;  %v2221_v7 = vrot.slane %v3727_v38, 5 }
 0x368   : > { %v2143_v62 = vrot.slane %v2141_v14, 1  ;;  %v2230_v39 = vrot.slane %v3733_v22, 1  ;;  %v2128_v46 = vadd.f32 %v2126_v48, %v2123_v11  ;;  %v2150_v18 = vrot.slane %v2148_v20, 2 }
 0x369   : > { %v2133_v32 = vrot.slane %v2131_v50, 2  ;;  %v2224_v16 = vrot.slane %v3738_v47, 4  ;;  %v2226_v23 = vsel %vm527_vm5, %v2218_v61, %v2221_v7  ;;  %v2000_v8 = vrot.slane %v3639_v37, 7 }
 0x36a   : > { %v2145_v19 = vadd.f32 %v2143_v62, %v2138_v60  ;;  %v2006_v28 = vmul.f32 %v2004_v27, %v3036_v5  ;;  %v2012_v6 = vrot.slane %v3655_v63, 3  ;;  %v2020_v1 = vrot.slane %v3642_v52, 7 }
 0x36b   : > { %v3751_v25 = vadd.f32 %v2133_v32, %v2128_v46  ;;  %v2227_v17 = vsel %vm895_vm9, %v2226_v23, %v2224_v16  ;;  %v2002_v59 = vmul.f32 %v2000_v8, %v3036_v5  ;;  %v2026_v24 = vmul.f32 %v2024_v43, %v3036_v5 }
 0x36c   : > { %v3756_v15 = vadd.f32 %v2150_v18, %v2145_v19  ;;  %2228 = vst [vmem:[#allocation2 + $0x6] sm:$0x7] %v2227_v17  ;;  %v2008_v26 = vrot.slane %v2006_v28, 1  ;;  %v2014_v58 = vmul.f32 %v2012_v6, %v3036_v5  ;;  %v2022_v21 = vmul.f32 %v2020_v1, %v3036_v5 }
 0x36d   : > { %v2235_v27 = vsel %vm527_vm5, %v2230_v39, %v3751_v25  ;;  %v2032_v56 = vrot.slane %v3669_v10, 4  ;;  %v2028_v40 = vrot.slane %v2026_v24, 1  ;;  %v2040_v57 = vrot.slane %v3653_v30, 5 }
 0x36e   : > { %v2233_v35 = vrot.slane %v3756_v15, 7  ;;  %v2010_v53 = vadd.f32 %v2008_v26, %v2002_v59  ;;  %v2016_v2 = vrot.slane %v2014_v58, 2  ;;  %v2044_v43 = vrot.slane %v3659_v45, 5 }
 0x36f   : > { %v2034_v36 = vmul.f32 %v2032_v56, %v3036_v5  ;;  %v2052_v29 = vrot.slane %v3671_v13, 3  ;;  %v2030_v60 = vadd.f32 %v2028_v40, %v2022_v21  ;;  %v2042_v14 = vmul.f32 %v2040_v57, %v3036_v5 }
 0x370   : > { %v2236_v11 = vsel %vm895_vm9, %v2235_v27, %v2233_v35  ;;  %v3774_v48 = vadd.f32 %v2016_v2, %v2010_v53  ;;  %v2046_v20 = vmul.f32 %v2044_v43, %v3036_v5  ;;  %v2469_v61 = vrot.slane %v3263_v3, 6 }
 0x371   : > { %2237 = vst [vmem:[#allocation2 + $0x9] sm:$0x7] %v2236_v11  ;;  %v2036_v50 = vrot.slane %v2034_v36, 2  ;;  %v2054_v62 = vmul.f32 %v2052_v29, %v3036_v5  ;;  %v3780_v7 = vrot.slane %v3218_v51, 6  ;;  %v3783_v39 = vrot.slane %v3218_v51, 7 }
 0x372   : > { %v2048_v32 = vrot.slane %v2046_v20, 1  ;;  %v2206_v16 = vrot.slane %v3774_v48, 3  ;;  %v2471_v19 = vmul.f32 %v2469_v61, %v3639_v37  ;;  %v2472_v23 = vrot.slane %v3263_v3, 7 }
 0x373   : > { %v3785_v46 = vadd.f32 %v2036_v50, %v2030_v60  ;;  %v2056_v18 = vrot.slane %v2054_v62, 2  ;;  %v2476_v5 = vrot.slane %v3263_v3, 2  ;;  %v2544_v8 = vrot.slane %v3218_v51, 1 }
 0x374   : > { %v2512_v28 = vmul.f32 0.05, %v3710_v9  ;;  %v2050_v17 = vadd.f32 %v2048_v32, %v2042_v14  ;;  %v2502_v1 = vmul.f32 %v3780_v7, %v3639_v37  ;;  %v2474_v59 = vmul.f32 %v2472_v23, %v3646_v34 }
 0x375   : > { %v2209_v6 = vrot.slane %v3785_v46, 2  ;;  %v2478_v26 = vmul.f32 %v2476_v5, %v3655_v63  ;;  %v2505_v24 = vmul.f32 %v3783_v39, %v3646_v34  ;;  %v2507_v27 = vmul.f32 %v3227_v55, %v3655_v63 }
 0x376   : > { %v3802_v58 = vadd.f32 %v2056_v18, %v2050_v17  ;;  %v2521_v21 = vmul.f32 %v2469_v61, %v3642_v52  ;;  %v2522_v56 = vmul.f32 %v2472_v23, %v3650_v12  ;;  %v2475_v37 = vadd.f32 %v2474_v59, %v2471_v19 }
 0x377   : > { %v2214_v9 = vsel %vm527_vm5, %v2206_v16, %v2209_v6  ;;  %v2480_v53 = vrot.slane %v2478_v26, 6  ;;  %v2506_v40 = vadd.f32 %v2505_v24, %v2502_v1  ;;  %v2509_v57 = vrot.slane %v2507_v27, 6 }
 0x378   : > { %v2239_v35 = vld [vmem:[#allocation2 + $0x8] sm:$0xf]  ;;  %v2212_v34 = vrot.slane %v3802_v58, 1  ;;  %v2523_v2 = vadd.f32 %v2522_v56, %v2521_v21  ;;  %v2524_v63 = vrot.slane %v3263_v3, 1  ;;  %v2541_v36 = vmul.f32 %v3780_v7, %v3642_v52  ;;  %v2253_v21 = vpop.permute.xlu0 %2252 }
 0x379   : > { %2801 = vmatpush.msk.msra.mxu3 %vm510_vm0, %v2239_v35  ;;  %v2482_v43 = vadd.f32 %v2480_v53, %v2475_v37  ;;  %v3812_v29 = vadd.f32 %v2509_v57, %v2506_v40  ;;  %v2542_v11 = vmul.f32 %v3783_v39, %v3650_v12  ;;  %v2546_v60 = vmul.f32 %v2544_v8, %v3669_v10  ;;  %v2244_v40 = vld [vmem:[%s3941_s4] sm:$0xff] }
 0x37a   : > { %v2215_v14 = vsel %vm895_vm9, %v2214_v9, %v2212_v34  ;;  %v2526_v50 = vmul.f32 %v2524_v63, %v3669_v10  ;;  %v2560_v20 = vmul.f32 %v3653_v30, %v3263_v3  ;;  %v2561_v52 = vmul.f32 %v3659_v45, %v3263_v3  ;;  %v2258_v9 = vpop.permute.xlu2 %2257  ;;  %v2245_v34 = vld [vmem:[%s3941_s4 + $0x8] sm:$0x3]  ;;  %v2302_v63 = vpop.permute.xlu1 %2301 }
 0x37b   : > { %v2551_v62 = vmul.f32 0.05, %v3714_v42  ;;  %2216 = vst [vmem:[#allocation2 + $0x3] sm:$0x7] %v2215_v14  ;;  %v3826_v61 = vadd.f32 %v2512_v28, %v2482_v43  ;;  %v2543_v12 = vadd.f32 %v2542_v11, %v2541_v36  ;;  %v2548_v32 = vrot.slane %v2546_v60, 7 }
 0x37c   : > { %v2528_v18 = vrot.slane %v2526_v50, 7  ;;  %v2563_v16 = vrot.slane %v2561_v52, 1  ;;  %v2580_v19 = vmul.f32 %v3653_v30, %v3218_v51  ;;  %v2581_v10 = vmul.f32 %v3659_v45, %v3218_v51  ;;  %v2240_v45 = vld [vmem:[%s3939_s2] sm:$0xff]  ;;  %v2249_v52 = vld [vmem:[%s3943_s6 + $0x8] sm:$0xf] }
 0x37d   : > { %v2588_v23 = vmul.f32 0.05, %v3723_v33  ;;  %v3833_v17 = vadd.f32 %v2548_v32, %v2543_v12  ;;  %v2566_v28 = vmul.f32 %v2476_v5, %v3671_v13  ;;  %v2586_v30 = vmul.f32 %v3227_v55, %v3671_v13  ;;  %v2241_v5 = vld [vmem:[%s3939_s2 + $0x8] sm:$0x3]  ;;  %v2248_v50 = vld [vmem:[%s3943_s6] sm:$0xff] }
 0x37e   : > { %v2530_v3 = vadd.f32 %v2528_v18, %v2523_v2  ;;  %v2565_v42 = vadd.f32 %v2563_v16, %v2560_v20  ;;  %v2583_v6 = vrot.slane %v2581_v10, 1  ;;  %v2609_v12 = vmul.f32 %v2544_v8, %v3785_v46 }
 0x37f   : > { %v2613_v32 = vmul.f32 %v3224_v54, %v3725_v44  ;;  %v2614_v18 = vmul.f32 %v3780_v7, %v3727_v38  ;;  %v2619_v16 = vrot.slane %v3218_v51, 3  ;;  %v2616_v8 = vmul.f32 %v3783_v39, %v3738_v47 }
 0x380   : > { %v3836_v1 = vadd.f32 %v2551_v62, %v2530_v3  ;;  %v2567_v59 = vadd.f32 %v2566_v28, %v2565_v42  ;;  %v2585_v26 = vadd.f32 %v2583_v6, %v2580_v19  ;;  %v2608_v62 = vmul.f32 %v3774_v48, %v3218_v51 }
 0x381   : > { %v2615_v10 = vadd.f32 %v2614_v18, %v2613_v32  ;;  %v2621_v3 = vmul.f32 %v2619_v16, %v3751_v25  ;;  %v2611_v42 = vmul.f32 %v3227_v55, %v3802_v58  ;;  %v2623_v54 = vrot.slane %v3218_v51, 4 }
 0x382   : > { %v2238_v24 = vld [vmem:[#allocation2] sm:$0xff]  ;;  %v3843_v33 = vadd.f32 %v2586_v30, %v2585_v26  ;;  %v3845_v27 = vadd.f32 %v2588_v23, %v2567_v59  ;;  %v2297_v36 = vpop.permute.xlu2 %2296  ;;  %v2610_v19 = vadd.f32 %v2609_v12, %v2608_v62  ;;  %v2618_v23 = vmul.f32 %v3227_v55, %v3733_v22 }
 0x383   : > { %2284 = vmatpush.msra.mxu3 %v2238_v24  ;;  %2655 = vst [vmem:[%s3020_s15] sm:$0xff] %v2238_v24  ;;  %v2617_v6 = vadd.f32 %v2616_v8, %v2615_v10  ;;  %v2625_v26 = vmul.f32 %v2623_v54, %v3756_v15 }
 0x384   : > { %2802 = vmatmul.msk.f32.vlgmr.msra.gmra.mxu3 %vm844_vm1, %v2240_v45  ;;  %v2612_v28 = vadd.f32 %v2611_v42, %v2610_v19  ;;  %v2622_v59 = vadd.f32 %v2621_v3, %v2618_v23 }
 0x385   : > { %v2631_v45 = vrot.slane %v2617_v6, 5 }
 0x386   : > { %v2628_v30 = vrot.slane %v2612_v28, 3 }
 0x38c   : > { %2803 = vmatmul.msk.f32.gmra.mxu3 %vm844_vm1, %v2241_v5  ;;  %v2626_v5 = vadd.f32 %v2625_v26, %v2622_v59 }
 0x407   : > { %v2286_v13 = vpop.f32.mrf.mxu3 }
 0x408   : > { %v2287_v35 = vadd.f32 %v2286_v13, %v2253_v21  ;;  %v2638_v13 = vmul.f32 -0.05, %v3235_v0  ;;  %v2384_v21 = vrot.slane %v3725_v44, 7  ;;  %v2381_v0 = vrot.slane %v3774_v48, 7 }
 0x40f   : > { %v2289_v56 = vpop.f32.mrf.mxu3 }
 0x410   : > { %v2290_v37 = vadd.f32 %v2289_v56, %v2258_v9  ;;  %v2391_v56 = vrot.slane %v3733_v22, 7 }
 0x412   : > { %2893 = vtanh.f32 %v2290_v37 }
 0x413   : > { %2895 = vtanh.f32 %v2287_v35 }
 0x418   : > { %v2894_v53 = vpop.eup %2893 }
 0x419   : > { %2804 = vmatpush.msk.msra.mxu2 %vm895_vm9, %v2894_v53  ;;  %v2896_v57 = vpop.eup %2895  ;;  %v2636_v53 = vsel %vm527_vm5, %v2628_v30, %v2631_v45 }
 0x41b   : > { %2328 = vmatpush.msra.mxu2 %v2896_v57 }
 0x41c   : > { %2805 = vmatmul.msk.f32.vlgmr.msra.gmra.mxu2 %vm888_vm10, %v2244_v40 }
 0x424   : > { %2806 = vmatmul.msk.f32.gmra.mxu2 %vm888_vm10, %v2245_v34 }
 0x49f   : > { %v2330_v2 = vpop.f32.mrf.mxu2 }
 0x4a0   : > { %v2331_v11 = vadd.f32 %v2330_v2, %v2297_v36  ;;  %v2634_v2 = vrot.slane %v2626_v5, 7  ;;  %v2398_v36 = vrot.slane %v3785_v46, 6 }
 0x4a7   : > { %v2333_v43 = vpop.f32.mrf.mxu2 }
 0x4a8   : > { %v2334_v60 = vadd.f32 %v2333_v43, %v2302_v63  ;;  %v2401_v43 = vrot.slane %v3727_v38, 6 }
 0x4aa   : > { %2897 = vtanh.f32 %v2334_v60  ;;  %v2409_v60 = vrot.slane %v3751_v25, 6 }
 0x4ab   : > { %2899 = vtanh.f32 %v2331_v11 }
 0x4b0   : > { %v2898_v14 = vpop.eup %2897 }
 0x4b1   : > { %2807 = vmatpush.msk.msrb.mxu3 %vm895_vm9, %v2898_v14  ;;  %v2900_v20 = vpop.eup %2899 }
 0x4b3   : > { %2362 = vmatpush.msrb.mxu3 %v2900_v20 }
 0x4b4   : > { %2808 = vmatmul.msk.f32.vlgmr.msrb.gmra.mxu3 %vm888_vm10, %v2248_v50  ;;  %v2637_v50 = vsel %vm895_vm9, %v2636_v53, %v2634_v2 }
 0x4bc   : > { %2809 = vmatmul.msk.f32.gmra.mxu3 %vm888_vm10, %v2249_v52 }
 0x537   : > { %v2364_v24 = vpop.f32.mrf.mxu3 }
 0x538   : > { %v2639_v9 = vmul.f32 0.05, %v2364_v24  ;;  %v2434_v37 = vmul.f32 %v2364_v24, %v3727_v38  ;;  %v2444_v51 = vrot.slane %v2364_v24, 1  ;;  %v2371_v40 = vmul.f32 %v2364_v24, %v3738_v47 }
 0x539   : > { %v2386_v57 = vmul.f32 %v2384_v21, %v2364_v24  ;;  %v2417_v34 = vrot.slane %v2364_v24, 2  ;;  %v2370_v11 = vmul.f32 %v2364_v24, %v3802_v58  ;;  %v2383_v20 = vmul.f32 %v2381_v0, %v2364_v24 }
 0x53a   : > { %v2640_v35 = vsub.f32 %v2638_v13, %v2639_v9  ;;  %v2447_v14 = vmul.f32 %v2444_v51, %v3738_v47  ;;  %v2400_v52 = vmul.f32 %v2398_v36, %v2364_v24  ;;  %v2433_v62 = vmul.f32 %v2364_v24, %v3785_v46 }
 0x53b   : > { %v2436_v12 = vrot.slane %v2434_v37, 3  ;;  %v2373_v32 = vrot.slane %v2371_v40, 3  ;;  %v2388_v18 = vrot.slane %v2386_v57, 3  ;;  %v2419_v16 = vmul.f32 %v2417_v34, %v3774_v48 }
 0x53c   : > { %v2641_v63 = vadd.f32 %v2640_v35, %v3254_v31  ;;  %v2449_v3 = vrot.slane %v2447_v14, 3  ;;  %v2446_v8 = vmul.f32 %v2444_v51, %v3802_v58 }
 0x53d   : > { %v2438_v59 = vadd.f32 %v2436_v12, %v2433_v62  ;;  %v2390_v5 = vadd.f32 %v2388_v18, %v2383_v20  ;;  %v2375_v35 = vadd.f32 %v2373_v32, %v2370_v11 }
 0x53e   : > { %v2642_v19 = vadd.f32 %v2641_v63, %v2637_v50  ;;  %v2451_v13 = vadd.f32 %v2449_v3, %v2446_v8 }
 0x53f   : > { %v2367_v31 = vpop.f32.mrf.mxu3 }
 0x540   : > { %v2376_v38 = vmul.f32 %v2367_v31, %v3756_v15  ;;  %v2393_v10 = vmul.f32 %v2391_v56, %v2367_v31  ;;  %v2403_v23 = vmul.f32 %v2401_v43, %v2367_v31  ;;  %v2421_v42 = vrot.slane %v2367_v31, 2 }
 0x541   : > { %v2439_v47 = vmul.f32 %v2367_v31, %v3751_v25  ;;  %v2452_v54 = vrot.slane %v2367_v31, 1  ;;  %v2411_v6 = vmul.f32 %v2409_v60, %v2367_v31  ;;  %v2644_v9 = vmul.f32 0.0011111111, %v2642_v19 }
 0x542   : > { %v2395_v28 = vrot.slane %v2393_v10, 6  ;;  %v2405_v46 = vrot.slane %v2403_v23, 3  ;;  %v2423_v26 = vmul.f32 %v2421_v42, %v3725_v44  ;;  %v2428_v48 = vmul.f32 %v2421_v42, %v3733_v22 }
 0x543   : > { %v2441_v30 = vrot.slane %v2439_v47, 6  ;;  %v2454_v45 = vmul.f32 %v2452_v54, %v3756_v15  ;;  %v2378_v24 = vrot.slane %v2376_v38, 6  ;;  %v2413_v51 = vrot.slane %v2411_v6, 6 }
 0x544   : > { %v2407_v21 = vadd.f32 %v2405_v46, %v2400_v52  ;;  %v2425_v25 = vrot.slane %v2423_v26, 3  ;;  %v2397_v37 = vadd.f32 %v2395_v28, %v2390_v5  ;;  %v2646_v53 = vadd.f32 %v2644_v9, %v511_v41 }
 0x545   : > { %v2443_v56 = vadd.f32 %v2441_v30, %v2438_v59  ;;  %v2456_v58 = vrot.slane %v2454_v45, 6  ;;  %v2430_v40 = vrot.slane %v2428_v48, 6  ;;  %v2380_v34 = vadd.f32 %v2378_v24, %v2375_v35 }
 0x546   : > { %v2427_v44 = vadd.f32 %v2425_v25, %v2419_v16  ;;  %2647 = vst [vmem:[#allocation2 + $0xc] sm:$0x7] %v2646_v53  ;;  %v2415_v15 = vadd.f32 %v2413_v51, %v2407_v21 }
 0x547   : > { %v2458_v22 = vadd.f32 %v2456_v58, %v2451_v13  ;;  %v2461_v57 = vrot.slane %v2443_v56, 7 }
 0x548   : > { %v2432_v2 = vadd.f32 %v2430_v40, %v2427_v44 }
 0x549   : > { %v2463_v63 = vsub.f32 %v2397_v37, %v2461_v57  ;;  %v2465_v0 = vrot.slane %v2458_v22, 6 }
 0x54a   : > { %v2459_v36 = vsub.f32 %v2380_v34, %v2432_v2 }
 0x54b   : > { %v2467_v43 = vsub.f32 %v2415_v15, %v2465_v0  ;;  %v2590_v60 = vmul.f32 0.05, %v2463_v63 }
 0x54c   : > { %v2553_v11 = vmul.f32 0.05, %v2459_v36 }
 0x54d   : > { %v2514_v14 = vmul.f32 0.05, %v2467_v43  ;;  %v2592_v50 = vrot.slane %v2590_v60, 4 }
 0x54e   : > { %v2555_v52 = vrot.slane %v2553_v11, 1 }
 0x54f   : > { %v2516_v20 = vrot.slane %v2514_v14, 3  ;;  %v2594_v4 = vadd.f32 %v2592_v50, %v3845_v27 }
 0x550   : > { %v2557_v62 = vadd.f32 %v2555_v52, %v3836_v1 }
 0x551   : > { %v2518_v41 = vadd.f32 %v2516_v20, %v3826_v61  ;;  %v2595_v12 = vadd.f32 %v2594_v4, %v3843_v33 }
 0x552   : > { %v2558_v32 = vadd.f32 %v2557_v62, %v3833_v17 }
 0x553   : > { %v2519_v31 = vadd.f32 %v2518_v41, %v3812_v29  ;;  %v2596_v18 = vadd.f32 %v2595_v12, %v3227_v55 }
 0x554   : > { %v2559_v19 = vadd.f32 %v2558_v32, %v3783_v39 }
 0x555   : > { %v2520_v16 = vadd.f32 %v2519_v31, %v3780_v7  ;;  %v2604_v10 = vrot.slane %v2596_v18, 6 }
 0x556   : > { %v2601_v27 = vrot.slane %v2559_v19, 1 }
 0x557   : > { %v2598_v38 = vrot.slane %v2520_v16, 2 }
 0x559   : > { %v2606_v61 = vsel %vm527_vm5, %v2598_v38, %v2601_v27 }
 0x55a   : > { %v2607_v1 = vsel %vm895_vm9, %v2606_v61, %v2604_v10 }
 0x55b   : > { %v2643_v33 = vmul.f32 %v2607_v1, %v3216_v49 }
 0x55d   : > { %2648 = vst [vmem:[#allocation2 + $0xf] sm:$0x7] %v2643_v33 }
 0x564   : > { %v2652_v23 = vld [vmem:[#allocation2 + $0x8] sm:$0xff]  ;;  %v2653_v29 = vld [vmem:[#allocation2 + $0x10] sm:$0xff] }
 0x565   : > { %2656 = vst [vmem:[%s3020_s15 + $0x8] sm:$0xff] %v2652_v23 }
 0x566   : > { %2657 = vst [vmem:[%s3020_s15 + $0x10] sm:$0xff] %v2653_v29 }
 0x567 PF: > { %s22_s23 = sadd.s32 1, %s2924_s23   ;;  %s3950_s21 = smov %s2920_s22 }
 0x568   : > { %p19_p6 = scmp.ge.s32.totalorder %s22_s23, 6   ;;  %s3951_s22 = smov %s3953_s24 }
 0x56a   :  { %21 = sbr.rel (!%p19_p6) target bundleno = 2 (0x2), region = 105 }

</bundles_post_ra>
